<compile_context>
chip_gen: v5e
topology: v5e:2x2
jax: 0.10.0
libtpu: 0.0.40
codegen_flags: <defaults>
</compile_context>

<pallas_src>
import functools

import jax
import jax.numpy as jnp
from jax.experimental import pallas as pl
from jax.experimental.pallas import tpu as pltpu


# ----------------------------- fused LSTM-stack kernel -----------------------------

def _lstm_stack_kernel(T, B, H,
                       len_ref, x_ref,
                       w1_ih_ref, w1_hh_ref, b1_ref,
                       w2_ih_ref, w2_hh_ref, b2_ref,
                       fc1_w_ref, fc1_b_ref, fc2_w_ref, fc2_b_ref,
                       out_ref):
    H4 = 4 * H
    lens = len_ref[...]                                            # (B, 1) int32
    # Lane mask selecting the forward-direction gate columns [0, 4H).
    fwd_cols = jax.lax.broadcasted_iota(jnp.int32, (1, 2 * H4), 1) < H4

    def bidir_layer(xproj, w_hh, bias, want_outputs):
        """One bidirectional layer over the full sequence.

        xproj: (T*B, 8H) hoisted input projection; fwd gate pre-activations in
               columns [0,4H), rev in [4H,8H); rows grouped per timestep.
        Returns per-timestep fwd/rev outputs (lists of (B,H), or None) and the
        final h carries of each direction.
        """
        h_f = c_f = h_r = c_r = jnp.zeros((B, H), jnp.float32)
        out_f = [None] * T
        out_r = [None] * T
        for s in range(T):                                         # unrolled at trace time
            tf, tr = s, T - 1 - s                                  # fwd / rev time index
            x_tf = xproj[tf * B:(tf + 1) * B, :]                   # (B, 8H)
            x_tr = xproj[tr * B:(tr + 1) * B, :]
            xg = jnp.where(fwd_cols, x_tf, x_tr)                   # fwd@tf | rev@tr
            h_cat = jnp.concatenate([h_f, h_r], axis=1)            # (B, 2H)
            gates = (xg
                     + jnp.dot(h_cat, w_hh, preferred_element_type=jnp.float32)
                     + bias)                                       # (B, 8H)
            sg = jax.nn.sigmoid(gates)                             # one full-tile EUP pass
            th = jnp.tanh(gates)                                   # one full-tile EUP pass

            def cell(off, c):                                      # PyTorch gate order i,f,g,o
                i = sg[:, off + 0 * H: off + 1 * H]
                f = sg[:, off + 1 * H: off + 2 * H]
                g = th[:, off + 2 * H: off + 3 * H]
                o = sg[:, off + 3 * H: off + 4 * H]
                c_new = f * c + i * g
                return o * jnp.tanh(c_new), c_new

            nh_f, nc_f = cell(0, c_f)
            nh_r, nc_r = cell(H4, c_r)
            vf = tf < lens                                         # (B, 1) bool
            vr = tr < lens
            h_f = jnp.where(vf, nh_f, h_f)                         # freeze state on padding
            c_f = jnp.where(vf, nc_f, c_f)
            h_r = jnp.where(vr, nh_r, h_r)
            c_r = jnp.where(vr, nc_r, c_r)
            if want_outputs:
                out_f[tf] = jnp.where(vf, h_f, 0.0)                # pad_packed: zero padding
                out_r[tr] = jnp.where(vr, h_r, 0.0)
        return out_f, out_r, h_f, h_r

    # ---- layer 1: hoisted input projection over all timesteps ----
    xp1 = jnp.dot(x_ref[...], w1_ih_ref[...], preferred_element_type=jnp.float32)
    o1f, o1r, _, _ = bidir_layer(xp1, w1_hh_ref[...], b1_ref[...], want_outputs=True)

    # ---- layer 2: input = layer-1 bidirectional output (kept entirely in VMEM values) ----
    seq1 = jnp.concatenate(
        [jnp.concatenate([o1f[t], o1r[t]], axis=1) for t in range(T)], axis=0)  # (T*B, 2H)
    xp2 = jnp.dot(seq1, w2_ih_ref[...], preferred_element_type=jnp.float32)
    _, _, h_f2, h_r2 = bidir_layer(xp2, w2_hh_ref[...], b2_ref[...], want_outputs=False)

    # out_forward == final fwd carry (frozen at t = len-1); out_reverse == rev carry (== t=0).
    feat = jnp.concatenate([h_f2, h_r2], axis=1)                   # (B, 2H)

    # ---- MLP head; Dropout(p=0.5) is inference-mode identity ----
    hid = jnp.maximum(
        jnp.dot(feat, fc1_w_ref[...], preferred_element_type=jnp.float32) + fc1_b_ref[...],
        0.0)
    out_ref[...] = (jnp.dot(hid, fc2_w_ref[...], preferred_element_type=jnp.float32)
                    + fc2_b_ref[...])


# ----------------------------- weight fusion (wrapper side) -----------------------------

def _fuse_layer_weights(p, layer):
    """Fuse fwd/rev weights of one layer: W_ih^T -> (D, 8H), block-diag W_hh^T -> (2H, 8H)."""
    wih_f, whh_f = p[f"w_ih_l{layer}"], p[f"w_hh_l{layer}"]
    bih_f, bhh_f = p[f"b_ih_l{layer}"], p[f"b_hh_l{layer}"]
    wih_r, whh_r = p[f"w_ih_l{layer}_rev"], p[f"w_hh_l{layer}_rev"]
    bih_r, bhh_r = p[f"b_ih_l{layer}_rev"], p[f"b_hh_l{layer}_rev"]
    H = whh_f.shape[1]
    w_ih = jnp.concatenate([wih_f.T, wih_r.T], axis=1)                       # (D, 8H)
    z = jnp.zeros((H, 4 * H), jnp.float32)
    w_hh = jnp.concatenate([jnp.concatenate([whh_f.T, z], axis=1),
                            jnp.concatenate([z, whh_r.T], axis=1)], axis=0)  # (2H, 8H)
    bias = jnp.concatenate([bih_f + bhh_f, bih_r + bhh_r]).reshape(1, 8 * H)
    return w_ih, w_hh, bias


# ----------------------------- Parameters -----------------------------

def init_params(key, vocab_size, dim):
    H = dim
    ks = jax.random.split(key, 24)

    def unif(k, shape, bound):
        return jax.random.uniform(k, shape, jnp.float32, -bound, bound)

    kH = 1.0 / float(jnp.sqrt(jnp.float32(H)))
    p = {"embedding": jax.random.normal(ks[0], (vocab_size, 256), jnp.float32)}
    idx = 1
    for layer in range(2):
        in_size = 256 if layer == 0 else 2 * H
        for suffix in ("", "_rev"):
            p[f"w_ih_l{layer}{suffix}"] = unif(ks[idx], (4 * H, in_size), kH); idx += 1
            p[f"w_hh_l{layer}{suffix}"] = unif(ks[idx], (4 * H, H), kH); idx += 1
            p[f"b_ih_l{layer}{suffix}"] = unif(ks[idx], (4 * H,), kH); idx += 1
            p[f"b_hh_l{layer}{suffix}"] = unif(ks[idx], (4 * H,), kH); idx += 1
    k1 = 1.0 / float(jnp.sqrt(jnp.float32(2 * H)))
    k2 = 1.0 / float(jnp.sqrt(jnp.float32(64)))
    p["fc1_w"] = unif(ks[idx], (64, 2 * H), k1); idx += 1
    p["fc1_b"] = unif(ks[idx], (64,), k1); idx += 1
    p["fc2_w"] = unif(ks[idx], (10, 64), k2); idx += 1
    p["fc2_b"] = unif(ks[idx], (10,), k2); idx += 1
    return p


# ----------------------------- Forward pass -----------------------------

def lstm_model_forward(params, text, text_len, *, dim):
    H = dim
    B, T = text.shape
    # Embedding gather stays in XLA (data-dependent gather); everything after
    # it runs in the single fused Pallas kernel.
    emb = jnp.take(params["embedding"], text, axis=0)                  # (B, T, 256)
    x = jnp.transpose(emb, (1, 0, 2)).reshape(T * B, 256).astype(jnp.float32)  # time-major rows
    lens = text_len.astype(jnp.int32).reshape(B, 1)

    w1_ih, w1_hh, b1 = _fuse_layer_weights(params, 0)
    w2_ih, w2_hh, b2 = _fuse_layer_weights(params, 1)

    vmem = pl.BlockSpec(memory_space=pltpu.MemorySpace.VMEM)
    kernel = functools.partial(_lstm_stack_kernel, T, B, H)
    # TODO(synk): Dropout(p=0.5) is treated as inference-mode identity.
    return pl.pallas_call(
        kernel,
        out_shape=jax.ShapeDtypeStruct((B, 10), jnp.float32),
        in_specs=[vmem] * 12,
        out_specs=vmem,
    )(lens, x, w1_ih, w1_hh, b1, w2_ih, w2_hh, b2,
      jnp.transpose(params["fc1_w"]), params["fc1_b"].reshape(1, -1),
      jnp.transpose(params["fc2_w"]), params["fc2_b"].reshape(1, -1))


# ----------------------------- Main -----------------------------

if __name__ == "__main__":
    VOCAB, DIM, B, T = 50, 32, 2, 8
    key = jax.random.PRNGKey(0)
    pkey, tkey = jax.random.split(key)
    params = init_params(pkey, VOCAB, DIM)

    text = jax.random.randint(tkey, (B, T), 0, VOCAB, dtype=jnp.int32)
    text_len = jnp.array([T, 5], dtype=jnp.int32)

    fwd = jax.jit(functools.partial(lstm_model_forward, dim=DIM))
    logits = fwd(params, text, text_len)
    jax.block_until_ready(logits)
    assert logits.shape == (B, 10) and logits.dtype == jnp.float32
    assert bool(jnp.all(jnp.isfinite(logits)))
    print("KERNEL_OK")
</pallas_src>

<mosaic_0001>
module attributes {stable_mosaic.version = 11 : i64} {
  func.func @_lstm_stack_kernel(%arg0: memref<2x1xi32, #tpu.memory_space<vmem>>, %arg1: memref<16x256xf32, #tpu.memory_space<vmem>>, %arg2: memref<256x256xf32, #tpu.memory_space<vmem>>, %arg3: memref<64x256xf32, #tpu.memory_space<vmem>>, %arg4: memref<1x256xf32, #tpu.memory_space<vmem>>, %arg5: memref<64x256xf32, #tpu.memory_space<vmem>>, %arg6: memref<64x256xf32, #tpu.memory_space<vmem>>, %arg7: memref<1x256xf32, #tpu.memory_space<vmem>>, %arg8: memref<64x64xf32, #tpu.memory_space<vmem>>, %arg9: memref<1x64xf32, #tpu.memory_space<vmem>>, %arg10: memref<64x10xf32, #tpu.memory_space<vmem>>, %arg11: memref<1x10xf32, #tpu.memory_space<vmem>>, %arg12: memref<2x10xf32, #tpu.memory_space<vmem>>) attributes {dimension_semantics = [], scalar_prefetch = 0 : i64, scratch_operands = 0 : i64, tpu.core_type = #tpu.core_type<tc>} {
    %c0 = arith.constant 0 : index
    %c0_0 = arith.constant 0 : index
    %0 = vector.load %arg0[%c0, %c0_0] : memref<2x1xi32, #tpu.memory_space<vmem>>, vector<2x1xi32>
    %1 = tpu.iota {dimensions = array<i32: 1>} : vector<1x256xi32>
    %c128_i32 = arith.constant 128 : i32
    %2 = vector.broadcast %c128_i32 : i32 to vector<1x256xi32>
    %3 = arith.cmpi slt, %1, %2 : vector<1x256xi32>
    %c0_1 = arith.constant 0 : index
    %c0_2 = arith.constant 0 : index
    %4 = vector.load %arg1[%c0_1, %c0_2] : memref<16x256xf32, #tpu.memory_space<vmem>>, vector<16x256xf32>
    %c0_3 = arith.constant 0 : index
    %c0_4 = arith.constant 0 : index
    %5 = vector.load %arg2[%c0_3, %c0_4] : memref<256x256xf32, #tpu.memory_space<vmem>>, vector<256x256xf32>
    %cst = arith.constant dense<0.000000e+00> : vector<16x256xf32>
    %6 = tpu.matmul %4, %5, %cst {dimension_numbers = #tpu.dot_dimension_numbers<[1], [0], [0], [1], [0, 0, 1, 1], [], []>} : vector<16x256xf32>, vector<256x256xf32>, vector<16x256xf32> -> vector<16x256xf32>
    %c0_5 = arith.constant 0 : index
    %c0_6 = arith.constant 0 : index
    %7 = vector.load %arg3[%c0_5, %c0_6] : memref<64x256xf32, #tpu.memory_space<vmem>>, vector<64x256xf32>
    %c0_7 = arith.constant 0 : index
    %c0_8 = arith.constant 0 : index
    %8 = vector.load %arg4[%c0_7, %c0_8] : memref<1x256xf32, #tpu.memory_space<vmem>>, vector<1x256xf32>
    %cst_9 = arith.constant 0.000000e+00 : f32
    %9 = vector.broadcast %cst_9 : f32 to vector<2x32xf32>
    %10 = vector.extract_strided_slice %6 {offsets = [0, 0], sizes = [2, 256], strides = [1, 1]} : vector<16x256xf32> to vector<2x256xf32>
    %11 = vector.extract_strided_slice %6 {offsets = [14, 0], sizes = [2, 256], strides = [1, 1]} : vector<16x256xf32> to vector<2x256xf32>
    %12 = vector.shape_cast %3 : vector<1x256xi1> to vector<1x256xi1>
    %13 = vector.broadcast %12 : vector<1x256xi1> to vector<2x256xi1>
    %14 = arith.select %13, %10, %11 : vector<2x256xi1>, vector<2x256xf32>
    %15 = tpu.concatenate %9, %9 in 1 : vector<2x32xf32>, vector<2x32xf32> -> vector<2x64xf32>
    %cst_10 = arith.constant dense<0.000000e+00> : vector<2x256xf32>
    %16 = tpu.matmul %15, %7, %cst_10 {dimension_numbers = #tpu.dot_dimension_numbers<[1], [0], [0], [1], [0, 0, 1, 1], [], []>} : vector<2x64xf32>, vector<64x256xf32>, vector<2x256xf32> -> vector<2x256xf32>
    %17 = arith.addf %14, %16 : vector<2x256xf32>
    %18 = vector.broadcast %8 : vector<1x256xf32> to vector<2x256xf32>
    %19 = arith.addf %17, %18 : vector<2x256xf32>
    %20 = arith.negf %19 : vector<2x256xf32>
    %21 = math.exp %20 : vector<2x256xf32>
    %cst_11 = arith.constant 1.000000e+00 : f32
    %22 = vector.broadcast %cst_11 : f32 to vector<2x256xf32>
    %23 = arith.addf %22, %21 : vector<2x256xf32>
    %24 = arith.divf %22, %23 : vector<2x256xf32>
    %25 = math.tanh %19 : vector<2x256xf32>
    %26 = vector.extract_strided_slice %24 {offsets = [0, 0], sizes = [2, 32], strides = [1, 1]} : vector<2x256xf32> to vector<2x32xf32>
    %27 = vector.extract_strided_slice %24 {offsets = [0, 32], sizes = [2, 32], strides = [1, 1]} : vector<2x256xf32> to vector<2x32xf32>
    %28 = vector.extract_strided_slice %25 {offsets = [0, 64], sizes = [2, 32], strides = [1, 1]} : vector<2x256xf32> to vector<2x32xf32>
    %29 = vector.extract_strided_slice %24 {offsets = [0, 96], sizes = [2, 32], strides = [1, 1]} : vector<2x256xf32> to vector<2x32xf32>
    %30 = arith.mulf %27, %9 : vector<2x32xf32>
    %31 = arith.mulf %26, %28 : vector<2x32xf32>
    %32 = arith.addf %30, %31 : vector<2x32xf32>
    %33 = math.tanh %32 : vector<2x32xf32>
    %34 = arith.mulf %29, %33 : vector<2x32xf32>
    %35 = vector.extract_strided_slice %24 {offsets = [0, 128], sizes = [2, 32], strides = [1, 1]} : vector<2x256xf32> to vector<2x32xf32>
    %36 = vector.extract_strided_slice %24 {offsets = [0, 160], sizes = [2, 32], strides = [1, 1]} : vector<2x256xf32> to vector<2x32xf32>
    %37 = vector.extract_strided_slice %25 {offsets = [0, 192], sizes = [2, 32], strides = [1, 1]} : vector<2x256xf32> to vector<2x32xf32>
    %38 = vector.extract_strided_slice %24 {offsets = [0, 224], sizes = [2, 32], strides = [1, 1]} : vector<2x256xf32> to vector<2x32xf32>
    %39 = arith.mulf %36, %9 : vector<2x32xf32>
    %40 = arith.mulf %35, %37 : vector<2x32xf32>
    %41 = arith.addf %39, %40 : vector<2x32xf32>
    %42 = math.tanh %41 : vector<2x32xf32>
    %43 = arith.mulf %38, %42 : vector<2x32xf32>
    %c0_i32 = arith.constant 0 : i32
    %44 = vector.broadcast %c0_i32 : i32 to vector<2x1xi32>
    %45 = arith.cmpi sgt, %0, %44 : vector<2x1xi32>
    %c7_i32 = arith.constant 7 : i32
    %46 = vector.broadcast %c7_i32 : i32 to vector<2x1xi32>
    %47 = arith.cmpi sgt, %0, %46 : vector<2x1xi32>
    %48 = vector.shape_cast %45 : vector<2x1xi1> to vector<2x1xi1>
    %49 = vector.broadcast %48 : vector<2x1xi1> to vector<2x32xi1>
    %50 = arith.select %49, %34, %9 : vector<2x32xi1>, vector<2x32xf32>
    %51 = vector.shape_cast %45 : vector<2x1xi1> to vector<2x1xi1>
    %52 = vector.broadcast %51 : vector<2x1xi1> to vector<2x32xi1>
    %53 = arith.select %52, %32, %9 : vector<2x32xi1>, vector<2x32xf32>
    %54 = vector.shape_cast %47 : vector<2x1xi1> to vector<2x1xi1>
    %55 = vector.broadcast %54 : vector<2x1xi1> to vector<2x32xi1>
    %56 = arith.select %55, %43, %9 : vector<2x32xi1>, vector<2x32xf32>
    %57 = vector.shape_cast %47 : vector<2x1xi1> to vector<2x1xi1>
    %58 = vector.broadcast %57 : vector<2x1xi1> to vector<2x32xi1>
    %59 = arith.select %58, %41, %9 : vector<2x32xi1>, vector<2x32xf32>
    %cst_12 = arith.constant 0.000000e+00 : f32
    %60 = vector.shape_cast %45 : vector<2x1xi1> to vector<2x1xi1>
    %61 = vector.broadcast %60 : vector<2x1xi1> to vector<2x32xi1>
    %62 = vector.broadcast %cst_12 : f32 to vector<2x32xf32>
    %63 = arith.select %61, %50, %62 : vector<2x32xi1>, vector<2x32xf32>
    %cst_13 = arith.constant 0.000000e+00 : f32
    %64 = vector.shape_cast %47 : vector<2x1xi1> to vector<2x1xi1>
    %65 = vector.broadcast %64 : vector<2x1xi1> to vector<2x32xi1>
    %66 = vector.broadcast %cst_13 : f32 to vector<2x32xf32>
    %67 = arith.select %65, %56, %66 : vector<2x32xi1>, vector<2x32xf32>
    %68 = vector.extract_strided_slice %6 {offsets = [2, 0], sizes = [2, 256], strides = [1, 1]} : vector<16x256xf32> to vector<2x256xf32>
    %69 = vector.extract_strided_slice %6 {offsets = [12, 0], sizes = [2, 256], strides = [1, 1]} : vector<16x256xf32> to vector<2x256xf32>
    %70 = vector.shape_cast %3 : vector<1x256xi1> to vector<1x256xi1>
    %71 = vector.broadcast %70 : vector<1x256xi1> to vector<2x256xi1>
    %72 = arith.select %71, %68, %69 : vector<2x256xi1>, vector<2x256xf32>
    %73 = tpu.concatenate %50, %56 in 1 : vector<2x32xf32>, vector<2x32xf32> -> vector<2x64xf32>
    %cst_14 = arith.constant dense<0.000000e+00> : vector<2x256xf32>
    %74 = tpu.matmul %73, %7, %cst_14 {dimension_numbers = #tpu.dot_dimension_numbers<[1], [0], [0], [1], [0, 0, 1, 1], [], []>} : vector<2x64xf32>, vector<64x256xf32>, vector<2x256xf32> -> vector<2x256xf32>
    %75 = arith.addf %72, %74 : vector<2x256xf32>
    %76 = vector.broadcast %8 : vector<1x256xf32> to vector<2x256xf32>
    %77 = arith.addf %75, %76 : vector<2x256xf32>
    %78 = arith.negf %77 : vector<2x256xf32>
    %79 = math.exp %78 : vector<2x256xf32>
    %cst_15 = arith.constant 1.000000e+00 : f32
    %80 = vector.broadcast %cst_15 : f32 to vector<2x256xf32>
    %81 = arith.addf %80, %79 : vector<2x256xf32>
    %82 = arith.divf %80, %81 : vector<2x256xf32>
    %83 = math.tanh %77 : vector<2x256xf32>
    %84 = vector.extract_strided_slice %82 {offsets = [0, 0], sizes = [2, 32], strides = [1, 1]} : vector<2x256xf32> to vector<2x32xf32>
    %85 = vector.extract_strided_slice %82 {offsets = [0, 32], sizes = [2, 32], strides = [1, 1]} : vector<2x256xf32> to vector<2x32xf32>
    %86 = vector.extract_strided_slice %83 {offsets = [0, 64], sizes = [2, 32], strides = [1, 1]} : vector<2x256xf32> to vector<2x32xf32>
    %87 = vector.extract_strided_slice %82 {offsets = [0, 96], sizes = [2, 32], strides = [1, 1]} : vector<2x256xf32> to vector<2x32xf32>
    %88 = arith.mulf %85, %53 : vector<2x32xf32>
    %89 = arith.mulf %84, %86 : vector<2x32xf32>
    %90 = arith.addf %88, %89 : vector<2x32xf32>
    %91 = math.tanh %90 : vector<2x32xf32>
    %92 = arith.mulf %87, %91 : vector<2x32xf32>
    %93 = vector.extract_strided_slice %82 {offsets = [0, 128], sizes = [2, 32], strides = [1, 1]} : vector<2x256xf32> to vector<2x32xf32>
    %94 = vector.extract_strided_slice %82 {offsets = [0, 160], sizes = [2, 32], strides = [1, 1]} : vector<2x256xf32> to vector<2x32xf32>
    %95 = vector.extract_strided_slice %83 {offsets = [0, 192], sizes = [2, 32], strides = [1, 1]} : vector<2x256xf32> to vector<2x32xf32>
    %96 = vector.extract_strided_slice %82 {offsets = [0, 224], sizes = [2, 32], strides = [1, 1]} : vector<2x256xf32> to vector<2x32xf32>
    %97 = arith.mulf %94, %59 : vector<2x32xf32>
    %98 = arith.mulf %93, %95 : vector<2x32xf32>
    %99 = arith.addf %97, %98 : vector<2x32xf32>
    %100 = math.tanh %99 : vector<2x32xf32>
    %101 = arith.mulf %96, %100 : vector<2x32xf32>
    %c1_i32 = arith.constant 1 : i32
    %102 = vector.broadcast %c1_i32 : i32 to vector<2x1xi32>
    %103 = arith.cmpi sgt, %0, %102 : vector<2x1xi32>
    %c6_i32 = arith.constant 6 : i32
    %104 = vector.broadcast %c6_i32 : i32 to vector<2x1xi32>
    %105 = arith.cmpi sgt, %0, %104 : vector<2x1xi32>
    %106 = vector.shape_cast %103 : vector<2x1xi1> to vector<2x1xi1>
    %107 = vector.broadcast %106 : vector<2x1xi1> to vector<2x32xi1>
    %108 = arith.select %107, %92, %50 : vector<2x32xi1>, vector<2x32xf32>
    %109 = vector.shape_cast %103 : vector<2x1xi1> to vector<2x1xi1>
    %110 = vector.broadcast %109 : vector<2x1xi1> to vector<2x32xi1>
    %111 = arith.select %110, %90, %53 : vector<2x32xi1>, vector<2x32xf32>
    %112 = vector.shape_cast %105 : vector<2x1xi1> to vector<2x1xi1>
    %113 = vector.broadcast %112 : vector<2x1xi1> to vector<2x32xi1>
    %114 = arith.select %113, %101, %56 : vector<2x32xi1>, vector<2x32xf32>
    %115 = vector.shape_cast %105 : vector<2x1xi1> to vector<2x1xi1>
    %116 = vector.broadcast %115 : vector<2x1xi1> to vector<2x32xi1>
    %117 = arith.select %116, %99, %59 : vector<2x32xi1>, vector<2x32xf32>
    %cst_16 = arith.constant 0.000000e+00 : f32
    %118 = vector.shape_cast %103 : vector<2x1xi1> to vector<2x1xi1>
    %119 = vector.broadcast %118 : vector<2x1xi1> to vector<2x32xi1>
    %120 = vector.broadcast %cst_16 : f32 to vector<2x32xf32>
    %121 = arith.select %119, %108, %120 : vector<2x32xi1>, vector<2x32xf32>
    %cst_17 = arith.constant 0.000000e+00 : f32
    %122 = vector.shape_cast %105 : vector<2x1xi1> to vector<2x1xi1>
    %123 = vector.broadcast %122 : vector<2x1xi1> to vector<2x32xi1>
    %124 = vector.broadcast %cst_17 : f32 to vector<2x32xf32>
    %125 = arith.select %123, %114, %124 : vector<2x32xi1>, vector<2x32xf32>
    %126 = vector.extract_strided_slice %6 {offsets = [4, 0], sizes = [2, 256], strides = [1, 1]} : vector<16x256xf32> to vector<2x256xf32>
    %127 = vector.extract_strided_slice %6 {offsets = [10, 0], sizes = [2, 256], strides = [1, 1]} : vector<16x256xf32> to vector<2x256xf32>
    %128 = vector.shape_cast %3 : vector<1x256xi1> to vector<1x256xi1>
    %129 = vector.broadcast %128 : vector<1x256xi1> to vector<2x256xi1>
    %130 = arith.select %129, %126, %127 : vector<2x256xi1>, vector<2x256xf32>
    %131 = tpu.concatenate %108, %114 in 1 : vector<2x32xf32>, vector<2x32xf32> -> vector<2x64xf32>
    %cst_18 = arith.constant dense<0.000000e+00> : vector<2x256xf32>
    %132 = tpu.matmul %131, %7, %cst_18 {dimension_numbers = #tpu.dot_dimension_numbers<[1], [0], [0], [1], [0, 0, 1, 1], [], []>} : vector<2x64xf32>, vector<64x256xf32>, vector<2x256xf32> -> vector<2x256xf32>
    %133 = arith.addf %130, %132 : vector<2x256xf32>
    %134 = vector.broadcast %8 : vector<1x256xf32> to vector<2x256xf32>
    %135 = arith.addf %133, %134 : vector<2x256xf32>
    %136 = arith.negf %135 : vector<2x256xf32>
    %137 = math.exp %136 : vector<2x256xf32>
    %cst_19 = arith.constant 1.000000e+00 : f32
    %138 = vector.broadcast %cst_19 : f32 to vector<2x256xf32>
    %139 = arith.addf %138, %137 : vector<2x256xf32>
    %140 = arith.divf %138, %139 : vector<2x256xf32>
    %141 = math.tanh %135 : vector<2x256xf32>
    %142 = vector.extract_strided_slice %140 {offsets = [0, 0], sizes = [2, 32], strides = [1, 1]} : vector<2x256xf32> to vector<2x32xf32>
    %143 = vector.extract_strided_slice %140 {offsets = [0, 32], sizes = [2, 32], strides = [1, 1]} : vector<2x256xf32> to vector<2x32xf32>
    %144 = vector.extract_strided_slice %141 {offsets = [0, 64], sizes = [2, 32], strides = [1, 1]} : vector<2x256xf32> to vector<2x32xf32>
    %145 = vector.extract_strided_slice %140 {offsets = [0, 96], sizes = [2, 32], strides = [1, 1]} : vector<2x256xf32> to vector<2x32xf32>
    %146 = arith.mulf %143, %111 : vector<2x32xf32>
    %147 = arith.mulf %142, %144 : vector<2x32xf32>
    %148 = arith.addf %146, %147 : vector<2x32xf32>
    %149 = math.tanh %148 : vector<2x32xf32>
    %150 = arith.mulf %145, %149 : vector<2x32xf32>
    %151 = vector.extract_strided_slice %140 {offsets = [0, 128], sizes = [2, 32], strides = [1, 1]} : vector<2x256xf32> to vector<2x32xf32>
    %152 = vector.extract_strided_slice %140 {offsets = [0, 160], sizes = [2, 32], strides = [1, 1]} : vector<2x256xf32> to vector<2x32xf32>
    %153 = vector.extract_strided_slice %141 {offsets = [0, 192], sizes = [2, 32], strides = [1, 1]} : vector<2x256xf32> to vector<2x32xf32>
    %154 = vector.extract_strided_slice %140 {offsets = [0, 224], sizes = [2, 32], strides = [1, 1]} : vector<2x256xf32> to vector<2x32xf32>
    %155 = arith.mulf %152, %117 : vector<2x32xf32>
    %156 = arith.mulf %151, %153 : vector<2x32xf32>
    %157 = arith.addf %155, %156 : vector<2x32xf32>
    %158 = math.tanh %157 : vector<2x32xf32>
    %159 = arith.mulf %154, %158 : vector<2x32xf32>
    %c2_i32 = arith.constant 2 : i32
    %160 = vector.broadcast %c2_i32 : i32 to vector<2x1xi32>
    %161 = arith.cmpi sgt, %0, %160 : vector<2x1xi32>
    %c5_i32 = arith.constant 5 : i32
    %162 = vector.broadcast %c5_i32 : i32 to vector<2x1xi32>
    %163 = arith.cmpi sgt, %0, %162 : vector<2x1xi32>
    %164 = vector.shape_cast %161 : vector<2x1xi1> to vector<2x1xi1>
    %165 = vector.broadcast %164 : vector<2x1xi1> to vector<2x32xi1>
    %166 = arith.select %165, %150, %108 : vector<2x32xi1>, vector<2x32xf32>
    %167 = vector.shape_cast %161 : vector<2x1xi1> to vector<2x1xi1>
    %168 = vector.broadcast %167 : vector<2x1xi1> to vector<2x32xi1>
    %169 = arith.select %168, %148, %111 : vector<2x32xi1>, vector<2x32xf32>
    %170 = vector.shape_cast %163 : vector<2x1xi1> to vector<2x1xi1>
    %171 = vector.broadcast %170 : vector<2x1xi1> to vector<2x32xi1>
    %172 = arith.select %171, %159, %114 : vector<2x32xi1>, vector<2x32xf32>
    %173 = vector.shape_cast %163 : vector<2x1xi1> to vector<2x1xi1>
    %174 = vector.broadcast %173 : vector<2x1xi1> to vector<2x32xi1>
    %175 = arith.select %174, %157, %117 : vector<2x32xi1>, vector<2x32xf32>
    %cst_20 = arith.constant 0.000000e+00 : f32
    %176 = vector.shape_cast %161 : vector<2x1xi1> to vector<2x1xi1>
    %177 = vector.broadcast %176 : vector<2x1xi1> to vector<2x32xi1>
    %178 = vector.broadcast %cst_20 : f32 to vector<2x32xf32>
    %179 = arith.select %177, %166, %178 : vector<2x32xi1>, vector<2x32xf32>
    %cst_21 = arith.constant 0.000000e+00 : f32
    %180 = vector.shape_cast %163 : vector<2x1xi1> to vector<2x1xi1>
    %181 = vector.broadcast %180 : vector<2x1xi1> to vector<2x32xi1>
    %182 = vector.broadcast %cst_21 : f32 to vector<2x32xf32>
    %183 = arith.select %181, %172, %182 : vector<2x32xi1>, vector<2x32xf32>
    %184 = vector.extract_strided_slice %6 {offsets = [6, 0], sizes = [2, 256], strides = [1, 1]} : vector<16x256xf32> to vector<2x256xf32>
    %185 = vector.extract_strided_slice %6 {offsets = [8, 0], sizes = [2, 256], strides = [1, 1]} : vector<16x256xf32> to vector<2x256xf32>
    %186 = vector.shape_cast %3 : vector<1x256xi1> to vector<1x256xi1>
    %187 = vector.broadcast %186 : vector<1x256xi1> to vector<2x256xi1>
    %188 = arith.select %187, %184, %185 : vector<2x256xi1>, vector<2x256xf32>
    %189 = tpu.concatenate %166, %172 in 1 : vector<2x32xf32>, vector<2x32xf32> -> vector<2x64xf32>
    %cst_22 = arith.constant dense<0.000000e+00> : vector<2x256xf32>
    %190 = tpu.matmul %189, %7, %cst_22 {dimension_numbers = #tpu.dot_dimension_numbers<[1], [0], [0], [1], [0, 0, 1, 1], [], []>} : vector<2x64xf32>, vector<64x256xf32>, vector<2x256xf32> -> vector<2x256xf32>
    %191 = arith.addf %188, %190 : vector<2x256xf32>
    %192 = vector.broadcast %8 : vector<1x256xf32> to vector<2x256xf32>
    %193 = arith.addf %191, %192 : vector<2x256xf32>
    %194 = arith.negf %193 : vector<2x256xf32>
    %195 = math.exp %194 : vector<2x256xf32>
    %cst_23 = arith.constant 1.000000e+00 : f32
    %196 = vector.broadcast %cst_23 : f32 to vector<2x256xf32>
    %197 = arith.addf %196, %195 : vector<2x256xf32>
    %198 = arith.divf %196, %197 : vector<2x256xf32>
    %199 = math.tanh %193 : vector<2x256xf32>
    %200 = vector.extract_strided_slice %198 {offsets = [0, 0], sizes = [2, 32], strides = [1, 1]} : vector<2x256xf32> to vector<2x32xf32>
    %201 = vector.extract_strided_slice %198 {offsets = [0, 32], sizes = [2, 32], strides = [1, 1]} : vector<2x256xf32> to vector<2x32xf32>
    %202 = vector.extract_strided_slice %199 {offsets = [0, 64], sizes = [2, 32], strides = [1, 1]} : vector<2x256xf32> to vector<2x32xf32>
    %203 = vector.extract_strided_slice %198 {offsets = [0, 96], sizes = [2, 32], strides = [1, 1]} : vector<2x256xf32> to vector<2x32xf32>
    %204 = arith.mulf %201, %169 : vector<2x32xf32>
    %205 = arith.mulf %200, %202 : vector<2x32xf32>
    %206 = arith.addf %204, %205 : vector<2x32xf32>
    %207 = math.tanh %206 : vector<2x32xf32>
    %208 = arith.mulf %203, %207 : vector<2x32xf32>
    %209 = vector.extract_strided_slice %198 {offsets = [0, 128], sizes = [2, 32], strides = [1, 1]} : vector<2x256xf32> to vector<2x32xf32>
    %210 = vector.extract_strided_slice %198 {offsets = [0, 160], sizes = [2, 32], strides = [1, 1]} : vector<2x256xf32> to vector<2x32xf32>
    %211 = vector.extract_strided_slice %199 {offsets = [0, 192], sizes = [2, 32], strides = [1, 1]} : vector<2x256xf32> to vector<2x32xf32>
    %212 = vector.extract_strided_slice %198 {offsets = [0, 224], sizes = [2, 32], strides = [1, 1]} : vector<2x256xf32> to vector<2x32xf32>
    %213 = arith.mulf %210, %175 : vector<2x32xf32>
    %214 = arith.mulf %209, %211 : vector<2x32xf32>
    %215 = arith.addf %213, %214 : vector<2x32xf32>
    %216 = math.tanh %215 : vector<2x32xf32>
    %217 = arith.mulf %212, %216 : vector<2x32xf32>
    %c3_i32 = arith.constant 3 : i32
    %218 = vector.broadcast %c3_i32 : i32 to vector<2x1xi32>
    %219 = arith.cmpi sgt, %0, %218 : vector<2x1xi32>
    %c4_i32 = arith.constant 4 : i32
    %220 = vector.broadcast %c4_i32 : i32 to vector<2x1xi32>
    %221 = arith.cmpi sgt, %0, %220 : vector<2x1xi32>
    %222 = vector.shape_cast %219 : vector<2x1xi1> to vector<2x1xi1>
    %223 = vector.broadcast %222 : vector<2x1xi1> to vector<2x32xi1>
    %224 = arith.select %223, %208, %166 : vector<2x32xi1>, vector<2x32xf32>
    %225 = vector.shape_cast %219 : vector<2x1xi1> to vector<2x1xi1>
    %226 = vector.broadcast %225 : vector<2x1xi1> to vector<2x32xi1>
    %227 = arith.select %226, %206, %169 : vector<2x32xi1>, vector<2x32xf32>
    %228 = vector.shape_cast %221 : vector<2x1xi1> to vector<2x1xi1>
    %229 = vector.broadcast %228 : vector<2x1xi1> to vector<2x32xi1>
    %230 = arith.select %229, %217, %172 : vector<2x32xi1>, vector<2x32xf32>
    %231 = vector.shape_cast %221 : vector<2x1xi1> to vector<2x1xi1>
    %232 = vector.broadcast %231 : vector<2x1xi1> to vector<2x32xi1>
    %233 = arith.select %232, %215, %175 : vector<2x32xi1>, vector<2x32xf32>
    %cst_24 = arith.constant 0.000000e+00 : f32
    %234 = vector.shape_cast %219 : vector<2x1xi1> to vector<2x1xi1>
    %235 = vector.broadcast %234 : vector<2x1xi1> to vector<2x32xi1>
    %236 = vector.broadcast %cst_24 : f32 to vector<2x32xf32>
    %237 = arith.select %235, %224, %236 : vector<2x32xi1>, vector<2x32xf32>
    %cst_25 = arith.constant 0.000000e+00 : f32
    %238 = vector.shape_cast %221 : vector<2x1xi1> to vector<2x1xi1>
    %239 = vector.broadcast %238 : vector<2x1xi1> to vector<2x32xi1>
    %240 = vector.broadcast %cst_25 : f32 to vector<2x32xf32>
    %241 = arith.select %239, %230, %240 : vector<2x32xi1>, vector<2x32xf32>
    %242 = vector.extract_strided_slice %6 {offsets = [8, 0], sizes = [2, 256], strides = [1, 1]} : vector<16x256xf32> to vector<2x256xf32>
    %243 = vector.extract_strided_slice %6 {offsets = [6, 0], sizes = [2, 256], strides = [1, 1]} : vector<16x256xf32> to vector<2x256xf32>
    %244 = vector.shape_cast %3 : vector<1x256xi1> to vector<1x256xi1>
    %245 = vector.broadcast %244 : vector<1x256xi1> to vector<2x256xi1>
    %246 = arith.select %245, %242, %243 : vector<2x256xi1>, vector<2x256xf32>
    %247 = tpu.concatenate %224, %230 in 1 : vector<2x32xf32>, vector<2x32xf32> -> vector<2x64xf32>
    %cst_26 = arith.constant dense<0.000000e+00> : vector<2x256xf32>
    %248 = tpu.matmul %247, %7, %cst_26 {dimension_numbers = #tpu.dot_dimension_numbers<[1], [0], [0], [1], [0, 0, 1, 1], [], []>} : vector<2x64xf32>, vector<64x256xf32>, vector<2x256xf32> -> vector<2x256xf32>
    %249 = arith.addf %246, %248 : vector<2x256xf32>
    %250 = vector.broadcast %8 : vector<1x256xf32> to vector<2x256xf32>
    %251 = arith.addf %249, %250 : vector<2x256xf32>
    %252 = arith.negf %251 : vector<2x256xf32>
    %253 = math.exp %252 : vector<2x256xf32>
    %cst_27 = arith.constant 1.000000e+00 : f32
    %254 = vector.broadcast %cst_27 : f32 to vector<2x256xf32>
    %255 = arith.addf %254, %253 : vector<2x256xf32>
    %256 = arith.divf %254, %255 : vector<2x256xf32>
    %257 = math.tanh %251 : vector<2x256xf32>
    %258 = vector.extract_strided_slice %256 {offsets = [0, 0], sizes = [2, 32], strides = [1, 1]} : vector<2x256xf32> to vector<2x32xf32>
    %259 = vector.extract_strided_slice %256 {offsets = [0, 32], sizes = [2, 32], strides = [1, 1]} : vector<2x256xf32> to vector<2x32xf32>
    %260 = vector.extract_strided_slice %257 {offsets = [0, 64], sizes = [2, 32], strides = [1, 1]} : vector<2x256xf32> to vector<2x32xf32>
    %261 = vector.extract_strided_slice %256 {offsets = [0, 96], sizes = [2, 32], strides = [1, 1]} : vector<2x256xf32> to vector<2x32xf32>
    %262 = arith.mulf %259, %227 : vector<2x32xf32>
    %263 = arith.mulf %258, %260 : vector<2x32xf32>
    %264 = arith.addf %262, %263 : vector<2x32xf32>
    %265 = math.tanh %264 : vector<2x32xf32>
    %266 = arith.mulf %261, %265 : vector<2x32xf32>
    %267 = vector.extract_strided_slice %256 {offsets = [0, 128], sizes = [2, 32], strides = [1, 1]} : vector<2x256xf32> to vector<2x32xf32>
    %268 = vector.extract_strided_slice %256 {offsets = [0, 160], sizes = [2, 32], strides = [1, 1]} : vector<2x256xf32> to vector<2x32xf32>
    %269 = vector.extract_strided_slice %257 {offsets = [0, 192], sizes = [2, 32], strides = [1, 1]} : vector<2x256xf32> to vector<2x32xf32>
    %270 = vector.extract_strided_slice %256 {offsets = [0, 224], sizes = [2, 32], strides = [1, 1]} : vector<2x256xf32> to vector<2x32xf32>
    %271 = arith.mulf %268, %233 : vector<2x32xf32>
    %272 = arith.mulf %267, %269 : vector<2x32xf32>
    %273 = arith.addf %271, %272 : vector<2x32xf32>
    %274 = math.tanh %273 : vector<2x32xf32>
    %275 = arith.mulf %270, %274 : vector<2x32xf32>
    %c4_i32_28 = arith.constant 4 : i32
    %276 = vector.broadcast %c4_i32_28 : i32 to vector<2x1xi32>
    %277 = arith.cmpi sgt, %0, %276 : vector<2x1xi32>
    %c3_i32_29 = arith.constant 3 : i32
    %278 = vector.broadcast %c3_i32_29 : i32 to vector<2x1xi32>
    %279 = arith.cmpi sgt, %0, %278 : vector<2x1xi32>
    %280 = vector.shape_cast %277 : vector<2x1xi1> to vector<2x1xi1>
    %281 = vector.broadcast %280 : vector<2x1xi1> to vector<2x32xi1>
    %282 = arith.select %281, %266, %224 : vector<2x32xi1>, vector<2x32xf32>
    %283 = vector.shape_cast %277 : vector<2x1xi1> to vector<2x1xi1>
    %284 = vector.broadcast %283 : vector<2x1xi1> to vector<2x32xi1>
    %285 = arith.select %284, %264, %227 : vector<2x32xi1>, vector<2x32xf32>
    %286 = vector.shape_cast %279 : vector<2x1xi1> to vector<2x1xi1>
    %287 = vector.broadcast %286 : vector<2x1xi1> to vector<2x32xi1>
    %288 = arith.select %287, %275, %230 : vector<2x32xi1>, vector<2x32xf32>
    %289 = vector.shape_cast %279 : vector<2x1xi1> to vector<2x1xi1>
    %290 = vector.broadcast %289 : vector<2x1xi1> to vector<2x32xi1>
    %291 = arith.select %290, %273, %233 : vector<2x32xi1>, vector<2x32xf32>
    %cst_30 = arith.constant 0.000000e+00 : f32
    %292 = vector.shape_cast %277 : vector<2x1xi1> to vector<2x1xi1>
    %293 = vector.broadcast %292 : vector<2x1xi1> to vector<2x32xi1>
    %294 = vector.broadcast %cst_30 : f32 to vector<2x32xf32>
    %295 = arith.select %293, %282, %294 : vector<2x32xi1>, vector<2x32xf32>
    %cst_31 = arith.constant 0.000000e+00 : f32
    %296 = vector.shape_cast %279 : vector<2x1xi1> to vector<2x1xi1>
    %297 = vector.broadcast %296 : vector<2x1xi1> to vector<2x32xi1>
    %298 = vector.broadcast %cst_31 : f32 to vector<2x32xf32>
    %299 = arith.select %297, %288, %298 : vector<2x32xi1>, vector<2x32xf32>
    %300 = vector.extract_strided_slice %6 {offsets = [10, 0], sizes = [2, 256], strides = [1, 1]} : vector<16x256xf32> to vector<2x256xf32>
    %301 = vector.extract_strided_slice %6 {offsets = [4, 0], sizes = [2, 256], strides = [1, 1]} : vector<16x256xf32> to vector<2x256xf32>
    %302 = vector.shape_cast %3 : vector<1x256xi1> to vector<1x256xi1>
    %303 = vector.broadcast %302 : vector<1x256xi1> to vector<2x256xi1>
    %304 = arith.select %303, %300, %301 : vector<2x256xi1>, vector<2x256xf32>
    %305 = tpu.concatenate %282, %288 in 1 : vector<2x32xf32>, vector<2x32xf32> -> vector<2x64xf32>
    %cst_32 = arith.constant dense<0.000000e+00> : vector<2x256xf32>
    %306 = tpu.matmul %305, %7, %cst_32 {dimension_numbers = #tpu.dot_dimension_numbers<[1], [0], [0], [1], [0, 0, 1, 1], [], []>} : vector<2x64xf32>, vector<64x256xf32>, vector<2x256xf32> -> vector<2x256xf32>
    %307 = arith.addf %304, %306 : vector<2x256xf32>
    %308 = vector.broadcast %8 : vector<1x256xf32> to vector<2x256xf32>
    %309 = arith.addf %307, %308 : vector<2x256xf32>
    %310 = arith.negf %309 : vector<2x256xf32>
    %311 = math.exp %310 : vector<2x256xf32>
    %cst_33 = arith.constant 1.000000e+00 : f32
    %312 = vector.broadcast %cst_33 : f32 to vector<2x256xf32>
    %313 = arith.addf %312, %311 : vector<2x256xf32>
    %314 = arith.divf %312, %313 : vector<2x256xf32>
    %315 = math.tanh %309 : vector<2x256xf32>
    %316 = vector.extract_strided_slice %314 {offsets = [0, 0], sizes = [2, 32], strides = [1, 1]} : vector<2x256xf32> to vector<2x32xf32>
    %317 = vector.extract_strided_slice %314 {offsets = [0, 32], sizes = [2, 32], strides = [1, 1]} : vector<2x256xf32> to vector<2x32xf32>
    %318 = vector.extract_strided_slice %315 {offsets = [0, 64], sizes = [2, 32], strides = [1, 1]} : vector<2x256xf32> to vector<2x32xf32>
    %319 = vector.extract_strided_slice %314 {offsets = [0, 96], sizes = [2, 32], strides = [1, 1]} : vector<2x256xf32> to vector<2x32xf32>
    %320 = arith.mulf %317, %285 : vector<2x32xf32>
    %321 = arith.mulf %316, %318 : vector<2x32xf32>
    %322 = arith.addf %320, %321 : vector<2x32xf32>
    %323 = math.tanh %322 : vector<2x32xf32>
    %324 = arith.mulf %319, %323 : vector<2x32xf32>
    %325 = vector.extract_strided_slice %314 {offsets = [0, 128], sizes = [2, 32], strides = [1, 1]} : vector<2x256xf32> to vector<2x32xf32>
    %326 = vector.extract_strided_slice %314 {offsets = [0, 160], sizes = [2, 32], strides = [1, 1]} : vector<2x256xf32> to vector<2x32xf32>
    %327 = vector.extract_strided_slice %315 {offsets = [0, 192], sizes = [2, 32], strides = [1, 1]} : vector<2x256xf32> to vector<2x32xf32>
    %328 = vector.extract_strided_slice %314 {offsets = [0, 224], sizes = [2, 32], strides = [1, 1]} : vector<2x256xf32> to vector<2x32xf32>
    %329 = arith.mulf %326, %291 : vector<2x32xf32>
    %330 = arith.mulf %325, %327 : vector<2x32xf32>
    %331 = arith.addf %329, %330 : vector<2x32xf32>
    %332 = math.tanh %331 : vector<2x32xf32>
    %333 = arith.mulf %328, %332 : vector<2x32xf32>
    %c5_i32_34 = arith.constant 5 : i32
    %334 = vector.broadcast %c5_i32_34 : i32 to vector<2x1xi32>
    %335 = arith.cmpi sgt, %0, %334 : vector<2x1xi32>
    %c2_i32_35 = arith.constant 2 : i32
    %336 = vector.broadcast %c2_i32_35 : i32 to vector<2x1xi32>
    %337 = arith.cmpi sgt, %0, %336 : vector<2x1xi32>
    %338 = vector.shape_cast %335 : vector<2x1xi1> to vector<2x1xi1>
    %339 = vector.broadcast %338 : vector<2x1xi1> to vector<2x32xi1>
    %340 = arith.select %339, %324, %282 : vector<2x32xi1>, vector<2x32xf32>
    %341 = vector.shape_cast %335 : vector<2x1xi1> to vector<2x1xi1>
    %342 = vector.broadcast %341 : vector<2x1xi1> to vector<2x32xi1>
    %343 = arith.select %342, %322, %285 : vector<2x32xi1>, vector<2x32xf32>
    %344 = vector.shape_cast %337 : vector<2x1xi1> to vector<2x1xi1>
    %345 = vector.broadcast %344 : vector<2x1xi1> to vector<2x32xi1>
    %346 = arith.select %345, %333, %288 : vector<2x32xi1>, vector<2x32xf32>
    %347 = vector.shape_cast %337 : vector<2x1xi1> to vector<2x1xi1>
    %348 = vector.broadcast %347 : vector<2x1xi1> to vector<2x32xi1>
    %349 = arith.select %348, %331, %291 : vector<2x32xi1>, vector<2x32xf32>
    %cst_36 = arith.constant 0.000000e+00 : f32
    %350 = vector.shape_cast %335 : vector<2x1xi1> to vector<2x1xi1>
    %351 = vector.broadcast %350 : vector<2x1xi1> to vector<2x32xi1>
    %352 = vector.broadcast %cst_36 : f32 to vector<2x32xf32>
    %353 = arith.select %351, %340, %352 : vector<2x32xi1>, vector<2x32xf32>
    %cst_37 = arith.constant 0.000000e+00 : f32
    %354 = vector.shape_cast %337 : vector<2x1xi1> to vector<2x1xi1>
    %355 = vector.broadcast %354 : vector<2x1xi1> to vector<2x32xi1>
    %356 = vector.broadcast %cst_37 : f32 to vector<2x32xf32>
    %357 = arith.select %355, %346, %356 : vector<2x32xi1>, vector<2x32xf32>
    %358 = vector.extract_strided_slice %6 {offsets = [12, 0], sizes = [2, 256], strides = [1, 1]} : vector<16x256xf32> to vector<2x256xf32>
    %359 = vector.extract_strided_slice %6 {offsets = [2, 0], sizes = [2, 256], strides = [1, 1]} : vector<16x256xf32> to vector<2x256xf32>
    %360 = vector.shape_cast %3 : vector<1x256xi1> to vector<1x256xi1>
    %361 = vector.broadcast %360 : vector<1x256xi1> to vector<2x256xi1>
    %362 = arith.select %361, %358, %359 : vector<2x256xi1>, vector<2x256xf32>
    %363 = tpu.concatenate %340, %346 in 1 : vector<2x32xf32>, vector<2x32xf32> -> vector<2x64xf32>
    %cst_38 = arith.constant dense<0.000000e+00> : vector<2x256xf32>
    %364 = tpu.matmul %363, %7, %cst_38 {dimension_numbers = #tpu.dot_dimension_numbers<[1], [0], [0], [1], [0, 0, 1, 1], [], []>} : vector<2x64xf32>, vector<64x256xf32>, vector<2x256xf32> -> vector<2x256xf32>
    %365 = arith.addf %362, %364 : vector<2x256xf32>
    %366 = vector.broadcast %8 : vector<1x256xf32> to vector<2x256xf32>
    %367 = arith.addf %365, %366 : vector<2x256xf32>
    %368 = arith.negf %367 : vector<2x256xf32>
    %369 = math.exp %368 : vector<2x256xf32>
    %cst_39 = arith.constant 1.000000e+00 : f32
    %370 = vector.broadcast %cst_39 : f32 to vector<2x256xf32>
    %371 = arith.addf %370, %369 : vector<2x256xf32>
    %372 = arith.divf %370, %371 : vector<2x256xf32>
    %373 = math.tanh %367 : vector<2x256xf32>
    %374 = vector.extract_strided_slice %372 {offsets = [0, 0], sizes = [2, 32], strides = [1, 1]} : vector<2x256xf32> to vector<2x32xf32>
    %375 = vector.extract_strided_slice %372 {offsets = [0, 32], sizes = [2, 32], strides = [1, 1]} : vector<2x256xf32> to vector<2x32xf32>
    %376 = vector.extract_strided_slice %373 {offsets = [0, 64], sizes = [2, 32], strides = [1, 1]} : vector<2x256xf32> to vector<2x32xf32>
    %377 = vector.extract_strided_slice %372 {offsets = [0, 96], sizes = [2, 32], strides = [1, 1]} : vector<2x256xf32> to vector<2x32xf32>
    %378 = arith.mulf %375, %343 : vector<2x32xf32>
    %379 = arith.mulf %374, %376 : vector<2x32xf32>
    %380 = arith.addf %378, %379 : vector<2x32xf32>
    %381 = math.tanh %380 : vector<2x32xf32>
    %382 = arith.mulf %377, %381 : vector<2x32xf32>
    %383 = vector.extract_strided_slice %372 {offsets = [0, 128], sizes = [2, 32], strides = [1, 1]} : vector<2x256xf32> to vector<2x32xf32>
    %384 = vector.extract_strided_slice %372 {offsets = [0, 160], sizes = [2, 32], strides = [1, 1]} : vector<2x256xf32> to vector<2x32xf32>
    %385 = vector.extract_strided_slice %373 {offsets = [0, 192], sizes = [2, 32], strides = [1, 1]} : vector<2x256xf32> to vector<2x32xf32>
    %386 = vector.extract_strided_slice %372 {offsets = [0, 224], sizes = [2, 32], strides = [1, 1]} : vector<2x256xf32> to vector<2x32xf32>
    %387 = arith.mulf %384, %349 : vector<2x32xf32>
    %388 = arith.mulf %383, %385 : vector<2x32xf32>
    %389 = arith.addf %387, %388 : vector<2x32xf32>
    %390 = math.tanh %389 : vector<2x32xf32>
    %391 = arith.mulf %386, %390 : vector<2x32xf32>
    %c6_i32_40 = arith.constant 6 : i32
    %392 = vector.broadcast %c6_i32_40 : i32 to vector<2x1xi32>
    %393 = arith.cmpi sgt, %0, %392 : vector<2x1xi32>
    %c1_i32_41 = arith.constant 1 : i32
    %394 = vector.broadcast %c1_i32_41 : i32 to vector<2x1xi32>
    %395 = arith.cmpi sgt, %0, %394 : vector<2x1xi32>
    %396 = vector.shape_cast %393 : vector<2x1xi1> to vector<2x1xi1>
    %397 = vector.broadcast %396 : vector<2x1xi1> to vector<2x32xi1>
    %398 = arith.select %397, %382, %340 : vector<2x32xi1>, vector<2x32xf32>
    %399 = vector.shape_cast %393 : vector<2x1xi1> to vector<2x1xi1>
    %400 = vector.broadcast %399 : vector<2x1xi1> to vector<2x32xi1>
    %401 = arith.select %400, %380, %343 : vector<2x32xi1>, vector<2x32xf32>
    %402 = vector.shape_cast %395 : vector<2x1xi1> to vector<2x1xi1>
    %403 = vector.broadcast %402 : vector<2x1xi1> to vector<2x32xi1>
    %404 = arith.select %403, %391, %346 : vector<2x32xi1>, vector<2x32xf32>
    %405 = vector.shape_cast %395 : vector<2x1xi1> to vector<2x1xi1>
    %406 = vector.broadcast %405 : vector<2x1xi1> to vector<2x32xi1>
    %407 = arith.select %406, %389, %349 : vector<2x32xi1>, vector<2x32xf32>
    %cst_42 = arith.constant 0.000000e+00 : f32
    %408 = vector.shape_cast %393 : vector<2x1xi1> to vector<2x1xi1>
    %409 = vector.broadcast %408 : vector<2x1xi1> to vector<2x32xi1>
    %410 = vector.broadcast %cst_42 : f32 to vector<2x32xf32>
    %411 = arith.select %409, %398, %410 : vector<2x32xi1>, vector<2x32xf32>
    %cst_43 = arith.constant 0.000000e+00 : f32
    %412 = vector.shape_cast %395 : vector<2x1xi1> to vector<2x1xi1>
    %413 = vector.broadcast %412 : vector<2x1xi1> to vector<2x32xi1>
    %414 = vector.broadcast %cst_43 : f32 to vector<2x32xf32>
    %415 = arith.select %413, %404, %414 : vector<2x32xi1>, vector<2x32xf32>
    %416 = vector.extract_strided_slice %6 {offsets = [14, 0], sizes = [2, 256], strides = [1, 1]} : vector<16x256xf32> to vector<2x256xf32>
    %417 = vector.extract_strided_slice %6 {offsets = [0, 0], sizes = [2, 256], strides = [1, 1]} : vector<16x256xf32> to vector<2x256xf32>
    %418 = vector.shape_cast %3 : vector<1x256xi1> to vector<1x256xi1>
    %419 = vector.broadcast %418 : vector<1x256xi1> to vector<2x256xi1>
    %420 = arith.select %419, %416, %417 : vector<2x256xi1>, vector<2x256xf32>
    %421 = tpu.concatenate %398, %404 in 1 : vector<2x32xf32>, vector<2x32xf32> -> vector<2x64xf32>
    %cst_44 = arith.constant dense<0.000000e+00> : vector<2x256xf32>
    %422 = tpu.matmul %421, %7, %cst_44 {dimension_numbers = #tpu.dot_dimension_numbers<[1], [0], [0], [1], [0, 0, 1, 1], [], []>} : vector<2x64xf32>, vector<64x256xf32>, vector<2x256xf32> -> vector<2x256xf32>
    %423 = arith.addf %420, %422 : vector<2x256xf32>
    %424 = vector.broadcast %8 : vector<1x256xf32> to vector<2x256xf32>
    %425 = arith.addf %423, %424 : vector<2x256xf32>
    %426 = arith.negf %425 : vector<2x256xf32>
    %427 = math.exp %426 : vector<2x256xf32>
    %cst_45 = arith.constant 1.000000e+00 : f32
    %428 = vector.broadcast %cst_45 : f32 to vector<2x256xf32>
    %429 = arith.addf %428, %427 : vector<2x256xf32>
    %430 = arith.divf %428, %429 : vector<2x256xf32>
    %431 = math.tanh %425 : vector<2x256xf32>
    %432 = vector.extract_strided_slice %430 {offsets = [0, 0], sizes = [2, 32], strides = [1, 1]} : vector<2x256xf32> to vector<2x32xf32>
    %433 = vector.extract_strided_slice %430 {offsets = [0, 32], sizes = [2, 32], strides = [1, 1]} : vector<2x256xf32> to vector<2x32xf32>
    %434 = vector.extract_strided_slice %431 {offsets = [0, 64], sizes = [2, 32], strides = [1, 1]} : vector<2x256xf32> to vector<2x32xf32>
    %435 = vector.extract_strided_slice %430 {offsets = [0, 96], sizes = [2, 32], strides = [1, 1]} : vector<2x256xf32> to vector<2x32xf32>
    %436 = arith.mulf %433, %401 : vector<2x32xf32>
    %437 = arith.mulf %432, %434 : vector<2x32xf32>
    %438 = arith.addf %436, %437 : vector<2x32xf32>
    %439 = math.tanh %438 : vector<2x32xf32>
    %440 = arith.mulf %435, %439 : vector<2x32xf32>
    %441 = vector.extract_strided_slice %430 {offsets = [0, 128], sizes = [2, 32], strides = [1, 1]} : vector<2x256xf32> to vector<2x32xf32>
    %442 = vector.extract_strided_slice %430 {offsets = [0, 160], sizes = [2, 32], strides = [1, 1]} : vector<2x256xf32> to vector<2x32xf32>
    %443 = vector.extract_strided_slice %431 {offsets = [0, 192], sizes = [2, 32], strides = [1, 1]} : vector<2x256xf32> to vector<2x32xf32>
    %444 = vector.extract_strided_slice %430 {offsets = [0, 224], sizes = [2, 32], strides = [1, 1]} : vector<2x256xf32> to vector<2x32xf32>
    %445 = arith.mulf %442, %407 : vector<2x32xf32>
    %446 = arith.mulf %441, %443 : vector<2x32xf32>
    %447 = arith.addf %445, %446 : vector<2x32xf32>
    %448 = math.tanh %447 : vector<2x32xf32>
    %449 = arith.mulf %444, %448 : vector<2x32xf32>
    %c7_i32_46 = arith.constant 7 : i32
    %450 = vector.broadcast %c7_i32_46 : i32 to vector<2x1xi32>
    %451 = arith.cmpi sgt, %0, %450 : vector<2x1xi32>
    %c0_i32_47 = arith.constant 0 : i32
    %452 = vector.broadcast %c0_i32_47 : i32 to vector<2x1xi32>
    %453 = arith.cmpi sgt, %0, %452 : vector<2x1xi32>
    %454 = vector.shape_cast %451 : vector<2x1xi1> to vector<2x1xi1>
    %455 = vector.broadcast %454 : vector<2x1xi1> to vector<2x32xi1>
    %456 = arith.select %455, %440, %398 : vector<2x32xi1>, vector<2x32xf32>
    %457 = vector.shape_cast %453 : vector<2x1xi1> to vector<2x1xi1>
    %458 = vector.broadcast %457 : vector<2x1xi1> to vector<2x32xi1>
    %459 = arith.select %458, %449, %404 : vector<2x32xi1>, vector<2x32xf32>
    %cst_48 = arith.constant 0.000000e+00 : f32
    %460 = vector.shape_cast %451 : vector<2x1xi1> to vector<2x1xi1>
    %461 = vector.broadcast %460 : vector<2x1xi1> to vector<2x32xi1>
    %462 = vector.broadcast %cst_48 : f32 to vector<2x32xf32>
    %463 = arith.select %461, %456, %462 : vector<2x32xi1>, vector<2x32xf32>
    %cst_49 = arith.constant 0.000000e+00 : f32
    %464 = vector.shape_cast %453 : vector<2x1xi1> to vector<2x1xi1>
    %465 = vector.broadcast %464 : vector<2x1xi1> to vector<2x32xi1>
    %466 = vector.broadcast %cst_49 : f32 to vector<2x32xf32>
    %467 = arith.select %465, %459, %466 : vector<2x32xi1>, vector<2x32xf32>
    %468 = tpu.concatenate %63, %467 in 1 : vector<2x32xf32>, vector<2x32xf32> -> vector<2x64xf32>
    %469 = tpu.concatenate %121, %415 in 1 : vector<2x32xf32>, vector<2x32xf32> -> vector<2x64xf32>
    %470 = tpu.concatenate %179, %357 in 1 : vector<2x32xf32>, vector<2x32xf32> -> vector<2x64xf32>
    %471 = tpu.concatenate %237, %299 in 1 : vector<2x32xf32>, vector<2x32xf32> -> vector<2x64xf32>
    %472 = tpu.concatenate %295, %241 in 1 : vector<2x32xf32>, vector<2x32xf32> -> vector<2x64xf32>
    %473 = tpu.concatenate %353, %183 in 1 : vector<2x32xf32>, vector<2x32xf32> -> vector<2x64xf32>
    %474 = tpu.concatenate %411, %125 in 1 : vector<2x32xf32>, vector<2x32xf32> -> vector<2x64xf32>
    %475 = tpu.concatenate %463, %67 in 1 : vector<2x32xf32>, vector<2x32xf32> -> vector<2x64xf32>
    %476 = tpu.concatenate %468, %469, %470, %471, %472, %473, %474, %475 in 0 : vector<2x64xf32>, vector<2x64xf32>, vector<2x64xf32>, vector<2x64xf32>, vector<2x64xf32>, vector<2x64xf32>, vector<2x64xf32>, vector<2x64xf32> -> vector<16x64xf32>
    %c0_50 = arith.constant 0 : index
    %c0_51 = arith.constant 0 : index
    %477 = vector.load %arg5[%c0_50, %c0_51] : memref<64x256xf32, #tpu.memory_space<vmem>>, vector<64x256xf32>
    %cst_52 = arith.constant dense<0.000000e+00> : vector<16x256xf32>
    %478 = tpu.matmul %476, %477, %cst_52 {dimension_numbers = #tpu.dot_dimension_numbers<[1], [0], [0], [1], [0, 0, 1, 1], [], []>} : vector<16x64xf32>, vector<64x256xf32>, vector<16x256xf32> -> vector<16x256xf32>
    %c0_53 = arith.constant 0 : index
    %c0_54 = arith.constant 0 : index
    %479 = vector.load %arg6[%c0_53, %c0_54] : memref<64x256xf32, #tpu.memory_space<vmem>>, vector<64x256xf32>
    %c0_55 = arith.constant 0 : index
    %c0_56 = arith.constant 0 : index
    %480 = vector.load %arg7[%c0_55, %c0_56] : memref<1x256xf32, #tpu.memory_space<vmem>>, vector<1x256xf32>
    %cst_57 = arith.constant 0.000000e+00 : f32
    %481 = vector.broadcast %cst_57 : f32 to vector<2x32xf32>
    %482 = vector.extract_strided_slice %478 {offsets = [0, 0], sizes = [2, 256], strides = [1, 1]} : vector<16x256xf32> to vector<2x256xf32>
    %483 = vector.extract_strided_slice %478 {offsets = [14, 0], sizes = [2, 256], strides = [1, 1]} : vector<16x256xf32> to vector<2x256xf32>
    %484 = vector.shape_cast %3 : vector<1x256xi1> to vector<1x256xi1>
    %485 = vector.broadcast %484 : vector<1x256xi1> to vector<2x256xi1>
    %486 = arith.select %485, %482, %483 : vector<2x256xi1>, vector<2x256xf32>
    %487 = tpu.concatenate %481, %481 in 1 : vector<2x32xf32>, vector<2x32xf32> -> vector<2x64xf32>
    %cst_58 = arith.constant dense<0.000000e+00> : vector<2x256xf32>
    %488 = tpu.matmul %487, %479, %cst_58 {dimension_numbers = #tpu.dot_dimension_numbers<[1], [0], [0], [1], [0, 0, 1, 1], [], []>} : vector<2x64xf32>, vector<64x256xf32>, vector<2x256xf32> -> vector<2x256xf32>
    %489 = arith.addf %486, %488 : vector<2x256xf32>
    %490 = vector.broadcast %480 : vector<1x256xf32> to vector<2x256xf32>
    %491 = arith.addf %489, %490 : vector<2x256xf32>
    %492 = arith.negf %491 : vector<2x256xf32>
    %493 = math.exp %492 : vector<2x256xf32>
    %cst_59 = arith.constant 1.000000e+00 : f32
    %494 = vector.broadcast %cst_59 : f32 to vector<2x256xf32>
    %495 = arith.addf %494, %493 : vector<2x256xf32>
    %496 = arith.divf %494, %495 : vector<2x256xf32>
    %497 = math.tanh %491 : vector<2x256xf32>
    %498 = vector.extract_strided_slice %496 {offsets = [0, 0], sizes = [2, 32], strides = [1, 1]} : vector<2x256xf32> to vector<2x32xf32>
    %499 = vector.extract_strided_slice %496 {offsets = [0, 32], sizes = [2, 32], strides = [1, 1]} : vector<2x256xf32> to vector<2x32xf32>
    %500 = vector.extract_strided_slice %497 {offsets = [0, 64], sizes = [2, 32], strides = [1, 1]} : vector<2x256xf32> to vector<2x32xf32>
    %501 = vector.extract_strided_slice %496 {offsets = [0, 96], sizes = [2, 32], strides = [1, 1]} : vector<2x256xf32> to vector<2x32xf32>
    %502 = arith.mulf %499, %481 : vector<2x32xf32>
    %503 = arith.mulf %498, %500 : vector<2x32xf32>
    %504 = arith.addf %502, %503 : vector<2x32xf32>
    %505 = math.tanh %504 : vector<2x32xf32>
    %506 = arith.mulf %501, %505 : vector<2x32xf32>
    %507 = vector.extract_strided_slice %496 {offsets = [0, 128], sizes = [2, 32], strides = [1, 1]} : vector<2x256xf32> to vector<2x32xf32>
    %508 = vector.extract_strided_slice %496 {offsets = [0, 160], sizes = [2, 32], strides = [1, 1]} : vector<2x256xf32> to vector<2x32xf32>
    %509 = vector.extract_strided_slice %497 {offsets = [0, 192], sizes = [2, 32], strides = [1, 1]} : vector<2x256xf32> to vector<2x32xf32>
    %510 = vector.extract_strided_slice %496 {offsets = [0, 224], sizes = [2, 32], strides = [1, 1]} : vector<2x256xf32> to vector<2x32xf32>
    %511 = arith.mulf %508, %481 : vector<2x32xf32>
    %512 = arith.mulf %507, %509 : vector<2x32xf32>
    %513 = arith.addf %511, %512 : vector<2x32xf32>
    %514 = math.tanh %513 : vector<2x32xf32>
    %515 = arith.mulf %510, %514 : vector<2x32xf32>
    %c0_i32_60 = arith.constant 0 : i32
    %516 = vector.broadcast %c0_i32_60 : i32 to vector<2x1xi32>
    %517 = arith.cmpi sgt, %0, %516 : vector<2x1xi32>
    %c7_i32_61 = arith.constant 7 : i32
    %518 = vector.broadcast %c7_i32_61 : i32 to vector<2x1xi32>
    %519 = arith.cmpi sgt, %0, %518 : vector<2x1xi32>
    %520 = vector.shape_cast %517 : vector<2x1xi1> to vector<2x1xi1>
    %521 = vector.broadcast %520 : vector<2x1xi1> to vector<2x32xi1>
    %522 = arith.select %521, %506, %481 : vector<2x32xi1>, vector<2x32xf32>
    %523 = vector.shape_cast %517 : vector<2x1xi1> to vector<2x1xi1>
    %524 = vector.broadcast %523 : vector<2x1xi1> to vector<2x32xi1>
    %525 = arith.select %524, %504, %481 : vector<2x32xi1>, vector<2x32xf32>
    %526 = vector.shape_cast %519 : vector<2x1xi1> to vector<2x1xi1>
    %527 = vector.broadcast %526 : vector<2x1xi1> to vector<2x32xi1>
    %528 = arith.select %527, %515, %481 : vector<2x32xi1>, vector<2x32xf32>
    %529 = vector.shape_cast %519 : vector<2x1xi1> to vector<2x1xi1>
    %530 = vector.broadcast %529 : vector<2x1xi1> to vector<2x32xi1>
    %531 = arith.select %530, %513, %481 : vector<2x32xi1>, vector<2x32xf32>
    %532 = vector.extract_strided_slice %478 {offsets = [2, 0], sizes = [2, 256], strides = [1, 1]} : vector<16x256xf32> to vector<2x256xf32>
    %533 = vector.extract_strided_slice %478 {offsets = [12, 0], sizes = [2, 256], strides = [1, 1]} : vector<16x256xf32> to vector<2x256xf32>
    %534 = vector.shape_cast %3 : vector<1x256xi1> to vector<1x256xi1>
    %535 = vector.broadcast %534 : vector<1x256xi1> to vector<2x256xi1>
    %536 = arith.select %535, %532, %533 : vector<2x256xi1>, vector<2x256xf32>
    %537 = tpu.concatenate %522, %528 in 1 : vector<2x32xf32>, vector<2x32xf32> -> vector<2x64xf32>
    %cst_62 = arith.constant dense<0.000000e+00> : vector<2x256xf32>
    %538 = tpu.matmul %537, %479, %cst_62 {dimension_numbers = #tpu.dot_dimension_numbers<[1], [0], [0], [1], [0, 0, 1, 1], [], []>} : vector<2x64xf32>, vector<64x256xf32>, vector<2x256xf32> -> vector<2x256xf32>
    %539 = arith.addf %536, %538 : vector<2x256xf32>
    %540 = vector.broadcast %480 : vector<1x256xf32> to vector<2x256xf32>
    %541 = arith.addf %539, %540 : vector<2x256xf32>
    %542 = arith.negf %541 : vector<2x256xf32>
    %543 = math.exp %542 : vector<2x256xf32>
    %cst_63 = arith.constant 1.000000e+00 : f32
    %544 = vector.broadcast %cst_63 : f32 to vector<2x256xf32>
    %545 = arith.addf %544, %543 : vector<2x256xf32>
    %546 = arith.divf %544, %545 : vector<2x256xf32>
    %547 = math.tanh %541 : vector<2x256xf32>
    %548 = vector.extract_strided_slice %546 {offsets = [0, 0], sizes = [2, 32], strides = [1, 1]} : vector<2x256xf32> to vector<2x32xf32>
    %549 = vector.extract_strided_slice %546 {offsets = [0, 32], sizes = [2, 32], strides = [1, 1]} : vector<2x256xf32> to vector<2x32xf32>
    %550 = vector.extract_strided_slice %547 {offsets = [0, 64], sizes = [2, 32], strides = [1, 1]} : vector<2x256xf32> to vector<2x32xf32>
    %551 = vector.extract_strided_slice %546 {offsets = [0, 96], sizes = [2, 32], strides = [1, 1]} : vector<2x256xf32> to vector<2x32xf32>
    %552 = arith.mulf %549, %525 : vector<2x32xf32>
    %553 = arith.mulf %548, %550 : vector<2x32xf32>
    %554 = arith.addf %552, %553 : vector<2x32xf32>
    %555 = math.tanh %554 : vector<2x32xf32>
    %556 = arith.mulf %551, %555 : vector<2x32xf32>
    %557 = vector.extract_strided_slice %546 {offsets = [0, 128], sizes = [2, 32], strides = [1, 1]} : vector<2x256xf32> to vector<2x32xf32>
    %558 = vector.extract_strided_slice %546 {offsets = [0, 160], sizes = [2, 32], strides = [1, 1]} : vector<2x256xf32> to vector<2x32xf32>
    %559 = vector.extract_strided_slice %547 {offsets = [0, 192], sizes = [2, 32], strides = [1, 1]} : vector<2x256xf32> to vector<2x32xf32>
    %560 = vector.extract_strided_slice %546 {offsets = [0, 224], sizes = [2, 32], strides = [1, 1]} : vector<2x256xf32> to vector<2x32xf32>
    %561 = arith.mulf %558, %531 : vector<2x32xf32>
    %562 = arith.mulf %557, %559 : vector<2x32xf32>
    %563 = arith.addf %561, %562 : vector<2x32xf32>
    %564 = math.tanh %563 : vector<2x32xf32>
    %565 = arith.mulf %560, %564 : vector<2x32xf32>
    %c1_i32_64 = arith.constant 1 : i32
    %566 = vector.broadcast %c1_i32_64 : i32 to vector<2x1xi32>
    %567 = arith.cmpi sgt, %0, %566 : vector<2x1xi32>
    %c6_i32_65 = arith.constant 6 : i32
    %568 = vector.broadcast %c6_i32_65 : i32 to vector<2x1xi32>
    %569 = arith.cmpi sgt, %0, %568 : vector<2x1xi32>
    %570 = vector.shape_cast %567 : vector<2x1xi1> to vector<2x1xi1>
    %571 = vector.broadcast %570 : vector<2x1xi1> to vector<2x32xi1>
    %572 = arith.select %571, %556, %522 : vector<2x32xi1>, vector<2x32xf32>
    %573 = vector.shape_cast %567 : vector<2x1xi1> to vector<2x1xi1>
    %574 = vector.broadcast %573 : vector<2x1xi1> to vector<2x32xi1>
    %575 = arith.select %574, %554, %525 : vector<2x32xi1>, vector<2x32xf32>
    %576 = vector.shape_cast %569 : vector<2x1xi1> to vector<2x1xi1>
    %577 = vector.broadcast %576 : vector<2x1xi1> to vector<2x32xi1>
    %578 = arith.select %577, %565, %528 : vector<2x32xi1>, vector<2x32xf32>
    %579 = vector.shape_cast %569 : vector<2x1xi1> to vector<2x1xi1>
    %580 = vector.broadcast %579 : vector<2x1xi1> to vector<2x32xi1>
    %581 = arith.select %580, %563, %531 : vector<2x32xi1>, vector<2x32xf32>
    %582 = vector.extract_strided_slice %478 {offsets = [4, 0], sizes = [2, 256], strides = [1, 1]} : vector<16x256xf32> to vector<2x256xf32>
    %583 = vector.extract_strided_slice %478 {offsets = [10, 0], sizes = [2, 256], strides = [1, 1]} : vector<16x256xf32> to vector<2x256xf32>
    %584 = vector.shape_cast %3 : vector<1x256xi1> to vector<1x256xi1>
    %585 = vector.broadcast %584 : vector<1x256xi1> to vector<2x256xi1>
    %586 = arith.select %585, %582, %583 : vector<2x256xi1>, vector<2x256xf32>
    %587 = tpu.concatenate %572, %578 in 1 : vector<2x32xf32>, vector<2x32xf32> -> vector<2x64xf32>
    %cst_66 = arith.constant dense<0.000000e+00> : vector<2x256xf32>
    %588 = tpu.matmul %587, %479, %cst_66 {dimension_numbers = #tpu.dot_dimension_numbers<[1], [0], [0], [1], [0, 0, 1, 1], [], []>} : vector<2x64xf32>, vector<64x256xf32>, vector<2x256xf32> -> vector<2x256xf32>
    %589 = arith.addf %586, %588 : vector<2x256xf32>
    %590 = vector.broadcast %480 : vector<1x256xf32> to vector<2x256xf32>
    %591 = arith.addf %589, %590 : vector<2x256xf32>
    %592 = arith.negf %591 : vector<2x256xf32>
    %593 = math.exp %592 : vector<2x256xf32>
    %cst_67 = arith.constant 1.000000e+00 : f32
    %594 = vector.broadcast %cst_67 : f32 to vector<2x256xf32>
    %595 = arith.addf %594, %593 : vector<2x256xf32>
    %596 = arith.divf %594, %595 : vector<2x256xf32>
    %597 = math.tanh %591 : vector<2x256xf32>
    %598 = vector.extract_strided_slice %596 {offsets = [0, 0], sizes = [2, 32], strides = [1, 1]} : vector<2x256xf32> to vector<2x32xf32>
    %599 = vector.extract_strided_slice %596 {offsets = [0, 32], sizes = [2, 32], strides = [1, 1]} : vector<2x256xf32> to vector<2x32xf32>
    %600 = vector.extract_strided_slice %597 {offsets = [0, 64], sizes = [2, 32], strides = [1, 1]} : vector<2x256xf32> to vector<2x32xf32>
    %601 = vector.extract_strided_slice %596 {offsets = [0, 96], sizes = [2, 32], strides = [1, 1]} : vector<2x256xf32> to vector<2x32xf32>
    %602 = arith.mulf %599, %575 : vector<2x32xf32>
    %603 = arith.mulf %598, %600 : vector<2x32xf32>
    %604 = arith.addf %602, %603 : vector<2x32xf32>
    %605 = math.tanh %604 : vector<2x32xf32>
    %606 = arith.mulf %601, %605 : vector<2x32xf32>
    %607 = vector.extract_strided_slice %596 {offsets = [0, 128], sizes = [2, 32], strides = [1, 1]} : vector<2x256xf32> to vector<2x32xf32>
    %608 = vector.extract_strided_slice %596 {offsets = [0, 160], sizes = [2, 32], strides = [1, 1]} : vector<2x256xf32> to vector<2x32xf32>
    %609 = vector.extract_strided_slice %597 {offsets = [0, 192], sizes = [2, 32], strides = [1, 1]} : vector<2x256xf32> to vector<2x32xf32>
    %610 = vector.extract_strided_slice %596 {offsets = [0, 224], sizes = [2, 32], strides = [1, 1]} : vector<2x256xf32> to vector<2x32xf32>
    %611 = arith.mulf %608, %581 : vector<2x32xf32>
    %612 = arith.mulf %607, %609 : vector<2x32xf32>
    %613 = arith.addf %611, %612 : vector<2x32xf32>
    %614 = math.tanh %613 : vector<2x32xf32>
    %615 = arith.mulf %610, %614 : vector<2x32xf32>
    %c2_i32_68 = arith.constant 2 : i32
    %616 = vector.broadcast %c2_i32_68 : i32 to vector<2x1xi32>
    %617 = arith.cmpi sgt, %0, %616 : vector<2x1xi32>
    %c5_i32_69 = arith.constant 5 : i32
    %618 = vector.broadcast %c5_i32_69 : i32 to vector<2x1xi32>
    %619 = arith.cmpi sgt, %0, %618 : vector<2x1xi32>
    %620 = vector.shape_cast %617 : vector<2x1xi1> to vector<2x1xi1>
    %621 = vector.broadcast %620 : vector<2x1xi1> to vector<2x32xi1>
    %622 = arith.select %621, %606, %572 : vector<2x32xi1>, vector<2x32xf32>
    %623 = vector.shape_cast %617 : vector<2x1xi1> to vector<2x1xi1>
    %624 = vector.broadcast %623 : vector<2x1xi1> to vector<2x32xi1>
    %625 = arith.select %624, %604, %575 : vector<2x32xi1>, vector<2x32xf32>
    %626 = vector.shape_cast %619 : vector<2x1xi1> to vector<2x1xi1>
    %627 = vector.broadcast %626 : vector<2x1xi1> to vector<2x32xi1>
    %628 = arith.select %627, %615, %578 : vector<2x32xi1>, vector<2x32xf32>
    %629 = vector.shape_cast %619 : vector<2x1xi1> to vector<2x1xi1>
    %630 = vector.broadcast %629 : vector<2x1xi1> to vector<2x32xi1>
    %631 = arith.select %630, %613, %581 : vector<2x32xi1>, vector<2x32xf32>
    %632 = vector.extract_strided_slice %478 {offsets = [6, 0], sizes = [2, 256], strides = [1, 1]} : vector<16x256xf32> to vector<2x256xf32>
    %633 = vector.extract_strided_slice %478 {offsets = [8, 0], sizes = [2, 256], strides = [1, 1]} : vector<16x256xf32> to vector<2x256xf32>
    %634 = vector.shape_cast %3 : vector<1x256xi1> to vector<1x256xi1>
    %635 = vector.broadcast %634 : vector<1x256xi1> to vector<2x256xi1>
    %636 = arith.select %635, %632, %633 : vector<2x256xi1>, vector<2x256xf32>
    %637 = tpu.concatenate %622, %628 in 1 : vector<2x32xf32>, vector<2x32xf32> -> vector<2x64xf32>
    %cst_70 = arith.constant dense<0.000000e+00> : vector<2x256xf32>
    %638 = tpu.matmul %637, %479, %cst_70 {dimension_numbers = #tpu.dot_dimension_numbers<[1], [0], [0], [1], [0, 0, 1, 1], [], []>} : vector<2x64xf32>, vector<64x256xf32>, vector<2x256xf32> -> vector<2x256xf32>
    %639 = arith.addf %636, %638 : vector<2x256xf32>
    %640 = vector.broadcast %480 : vector<1x256xf32> to vector<2x256xf32>
    %641 = arith.addf %639, %640 : vector<2x256xf32>
    %642 = arith.negf %641 : vector<2x256xf32>
    %643 = math.exp %642 : vector<2x256xf32>
    %cst_71 = arith.constant 1.000000e+00 : f32
    %644 = vector.broadcast %cst_71 : f32 to vector<2x256xf32>
    %645 = arith.addf %644, %643 : vector<2x256xf32>
    %646 = arith.divf %644, %645 : vector<2x256xf32>
    %647 = math.tanh %641 : vector<2x256xf32>
    %648 = vector.extract_strided_slice %646 {offsets = [0, 0], sizes = [2, 32], strides = [1, 1]} : vector<2x256xf32> to vector<2x32xf32>
    %649 = vector.extract_strided_slice %646 {offsets = [0, 32], sizes = [2, 32], strides = [1, 1]} : vector<2x256xf32> to vector<2x32xf32>
    %650 = vector.extract_strided_slice %647 {offsets = [0, 64], sizes = [2, 32], strides = [1, 1]} : vector<2x256xf32> to vector<2x32xf32>
    %651 = vector.extract_strided_slice %646 {offsets = [0, 96], sizes = [2, 32], strides = [1, 1]} : vector<2x256xf32> to vector<2x32xf32>
    %652 = arith.mulf %649, %625 : vector<2x32xf32>
    %653 = arith.mulf %648, %650 : vector<2x32xf32>
    %654 = arith.addf %652, %653 : vector<2x32xf32>
    %655 = math.tanh %654 : vector<2x32xf32>
    %656 = arith.mulf %651, %655 : vector<2x32xf32>
    %657 = vector.extract_strided_slice %646 {offsets = [0, 128], sizes = [2, 32], strides = [1, 1]} : vector<2x256xf32> to vector<2x32xf32>
    %658 = vector.extract_strided_slice %646 {offsets = [0, 160], sizes = [2, 32], strides = [1, 1]} : vector<2x256xf32> to vector<2x32xf32>
    %659 = vector.extract_strided_slice %647 {offsets = [0, 192], sizes = [2, 32], strides = [1, 1]} : vector<2x256xf32> to vector<2x32xf32>
    %660 = vector.extract_strided_slice %646 {offsets = [0, 224], sizes = [2, 32], strides = [1, 1]} : vector<2x256xf32> to vector<2x32xf32>
    %661 = arith.mulf %658, %631 : vector<2x32xf32>
    %662 = arith.mulf %657, %659 : vector<2x32xf32>
    %663 = arith.addf %661, %662 : vector<2x32xf32>
    %664 = math.tanh %663 : vector<2x32xf32>
    %665 = arith.mulf %660, %664 : vector<2x32xf32>
    %c3_i32_72 = arith.constant 3 : i32
    %666 = vector.broadcast %c3_i32_72 : i32 to vector<2x1xi32>
    %667 = arith.cmpi sgt, %0, %666 : vector<2x1xi32>
    %c4_i32_73 = arith.constant 4 : i32
    %668 = vector.broadcast %c4_i32_73 : i32 to vector<2x1xi32>
    %669 = arith.cmpi sgt, %0, %668 : vector<2x1xi32>
    %670 = vector.shape_cast %667 : vector<2x1xi1> to vector<2x1xi1>
    %671 = vector.broadcast %670 : vector<2x1xi1> to vector<2x32xi1>
    %672 = arith.select %671, %656, %622 : vector<2x32xi1>, vector<2x32xf32>
    %673 = vector.shape_cast %667 : vector<2x1xi1> to vector<2x1xi1>
    %674 = vector.broadcast %673 : vector<2x1xi1> to vector<2x32xi1>
    %675 = arith.select %674, %654, %625 : vector<2x32xi1>, vector<2x32xf32>
    %676 = vector.shape_cast %669 : vector<2x1xi1> to vector<2x1xi1>
    %677 = vector.broadcast %676 : vector<2x1xi1> to vector<2x32xi1>
    %678 = arith.select %677, %665, %628 : vector<2x32xi1>, vector<2x32xf32>
    %679 = vector.shape_cast %669 : vector<2x1xi1> to vector<2x1xi1>
    %680 = vector.broadcast %679 : vector<2x1xi1> to vector<2x32xi1>
    %681 = arith.select %680, %663, %631 : vector<2x32xi1>, vector<2x32xf32>
    %682 = vector.extract_strided_slice %478 {offsets = [8, 0], sizes = [2, 256], strides = [1, 1]} : vector<16x256xf32> to vector<2x256xf32>
    %683 = vector.extract_strided_slice %478 {offsets = [6, 0], sizes = [2, 256], strides = [1, 1]} : vector<16x256xf32> to vector<2x256xf32>
    %684 = vector.shape_cast %3 : vector<1x256xi1> to vector<1x256xi1>
    %685 = vector.broadcast %684 : vector<1x256xi1> to vector<2x256xi1>
    %686 = arith.select %685, %682, %683 : vector<2x256xi1>, vector<2x256xf32>
    %687 = tpu.concatenate %672, %678 in 1 : vector<2x32xf32>, vector<2x32xf32> -> vector<2x64xf32>
    %cst_74 = arith.constant dense<0.000000e+00> : vector<2x256xf32>
    %688 = tpu.matmul %687, %479, %cst_74 {dimension_numbers = #tpu.dot_dimension_numbers<[1], [0], [0], [1], [0, 0, 1, 1], [], []>} : vector<2x64xf32>, vector<64x256xf32>, vector<2x256xf32> -> vector<2x256xf32>
    %689 = arith.addf %686, %688 : vector<2x256xf32>
    %690 = vector.broadcast %480 : vector<1x256xf32> to vector<2x256xf32>
    %691 = arith.addf %689, %690 : vector<2x256xf32>
    %692 = arith.negf %691 : vector<2x256xf32>
    %693 = math.exp %692 : vector<2x256xf32>
    %cst_75 = arith.constant 1.000000e+00 : f32
    %694 = vector.broadcast %cst_75 : f32 to vector<2x256xf32>
    %695 = arith.addf %694, %693 : vector<2x256xf32>
    %696 = arith.divf %694, %695 : vector<2x256xf32>
    %697 = math.tanh %691 : vector<2x256xf32>
    %698 = vector.extract_strided_slice %696 {offsets = [0, 0], sizes = [2, 32], strides = [1, 1]} : vector<2x256xf32> to vector<2x32xf32>
    %699 = vector.extract_strided_slice %696 {offsets = [0, 32], sizes = [2, 32], strides = [1, 1]} : vector<2x256xf32> to vector<2x32xf32>
    %700 = vector.extract_strided_slice %697 {offsets = [0, 64], sizes = [2, 32], strides = [1, 1]} : vector<2x256xf32> to vector<2x32xf32>
    %701 = vector.extract_strided_slice %696 {offsets = [0, 96], sizes = [2, 32], strides = [1, 1]} : vector<2x256xf32> to vector<2x32xf32>
    %702 = arith.mulf %699, %675 : vector<2x32xf32>
    %703 = arith.mulf %698, %700 : vector<2x32xf32>
    %704 = arith.addf %702, %703 : vector<2x32xf32>
    %705 = math.tanh %704 : vector<2x32xf32>
    %706 = arith.mulf %701, %705 : vector<2x32xf32>
    %707 = vector.extract_strided_slice %696 {offsets = [0, 128], sizes = [2, 32], strides = [1, 1]} : vector<2x256xf32> to vector<2x32xf32>
    %708 = vector.extract_strided_slice %696 {offsets = [0, 160], sizes = [2, 32], strides = [1, 1]} : vector<2x256xf32> to vector<2x32xf32>
    %709 = vector.extract_strided_slice %697 {offsets = [0, 192], sizes = [2, 32], strides = [1, 1]} : vector<2x256xf32> to vector<2x32xf32>
    %710 = vector.extract_strided_slice %696 {offsets = [0, 224], sizes = [2, 32], strides = [1, 1]} : vector<2x256xf32> to vector<2x32xf32>
    %711 = arith.mulf %708, %681 : vector<2x32xf32>
    %712 = arith.mulf %707, %709 : vector<2x32xf32>
    %713 = arith.addf %711, %712 : vector<2x32xf32>
    %714 = math.tanh %713 : vector<2x32xf32>
    %715 = arith.mulf %710, %714 : vector<2x32xf32>
    %c4_i32_76 = arith.constant 4 : i32
    %716 = vector.broadcast %c4_i32_76 : i32 to vector<2x1xi32>
    %717 = arith.cmpi sgt, %0, %716 : vector<2x1xi32>
    %c3_i32_77 = arith.constant 3 : i32
    %718 = vector.broadcast %c3_i32_77 : i32 to vector<2x1xi32>
    %719 = arith.cmpi sgt, %0, %718 : vector<2x1xi32>
    %720 = vector.shape_cast %717 : vector<2x1xi1> to vector<2x1xi1>
    %721 = vector.broadcast %720 : vector<2x1xi1> to vector<2x32xi1>
    %722 = arith.select %721, %706, %672 : vector<2x32xi1>, vector<2x32xf32>
    %723 = vector.shape_cast %717 : vector<2x1xi1> to vector<2x1xi1>
    %724 = vector.broadcast %723 : vector<2x1xi1> to vector<2x32xi1>
    %725 = arith.select %724, %704, %675 : vector<2x32xi1>, vector<2x32xf32>
    %726 = vector.shape_cast %719 : vector<2x1xi1> to vector<2x1xi1>
    %727 = vector.broadcast %726 : vector<2x1xi1> to vector<2x32xi1>
    %728 = arith.select %727, %715, %678 : vector<2x32xi1>, vector<2x32xf32>
    %729 = vector.shape_cast %719 : vector<2x1xi1> to vector<2x1xi1>
    %730 = vector.broadcast %729 : vector<2x1xi1> to vector<2x32xi1>
    %731 = arith.select %730, %713, %681 : vector<2x32xi1>, vector<2x32xf32>
    %732 = vector.extract_strided_slice %478 {offsets = [10, 0], sizes = [2, 256], strides = [1, 1]} : vector<16x256xf32> to vector<2x256xf32>
    %733 = vector.extract_strided_slice %478 {offsets = [4, 0], sizes = [2, 256], strides = [1, 1]} : vector<16x256xf32> to vector<2x256xf32>
    %734 = vector.shape_cast %3 : vector<1x256xi1> to vector<1x256xi1>
    %735 = vector.broadcast %734 : vector<1x256xi1> to vector<2x256xi1>
    %736 = arith.select %735, %732, %733 : vector<2x256xi1>, vector<2x256xf32>
    %737 = tpu.concatenate %722, %728 in 1 : vector<2x32xf32>, vector<2x32xf32> -> vector<2x64xf32>
    %cst_78 = arith.constant dense<0.000000e+00> : vector<2x256xf32>
    %738 = tpu.matmul %737, %479, %cst_78 {dimension_numbers = #tpu.dot_dimension_numbers<[1], [0], [0], [1], [0, 0, 1, 1], [], []>} : vector<2x64xf32>, vector<64x256xf32>, vector<2x256xf32> -> vector<2x256xf32>
    %739 = arith.addf %736, %738 : vector<2x256xf32>
    %740 = vector.broadcast %480 : vector<1x256xf32> to vector<2x256xf32>
    %741 = arith.addf %739, %740 : vector<2x256xf32>
    %742 = arith.negf %741 : vector<2x256xf32>
    %743 = math.exp %742 : vector<2x256xf32>
    %cst_79 = arith.constant 1.000000e+00 : f32
    %744 = vector.broadcast %cst_79 : f32 to vector<2x256xf32>
    %745 = arith.addf %744, %743 : vector<2x256xf32>
    %746 = arith.divf %744, %745 : vector<2x256xf32>
    %747 = math.tanh %741 : vector<2x256xf32>
    %748 = vector.extract_strided_slice %746 {offsets = [0, 0], sizes = [2, 32], strides = [1, 1]} : vector<2x256xf32> to vector<2x32xf32>
    %749 = vector.extract_strided_slice %746 {offsets = [0, 32], sizes = [2, 32], strides = [1, 1]} : vector<2x256xf32> to vector<2x32xf32>
    %750 = vector.extract_strided_slice %747 {offsets = [0, 64], sizes = [2, 32], strides = [1, 1]} : vector<2x256xf32> to vector<2x32xf32>
    %751 = vector.extract_strided_slice %746 {offsets = [0, 96], sizes = [2, 32], strides = [1, 1]} : vector<2x256xf32> to vector<2x32xf32>
    %752 = arith.mulf %749, %725 : vector<2x32xf32>
    %753 = arith.mulf %748, %750 : vector<2x32xf32>
    %754 = arith.addf %752, %753 : vector<2x32xf32>
    %755 = math.tanh %754 : vector<2x32xf32>
    %756 = arith.mulf %751, %755 : vector<2x32xf32>
    %757 = vector.extract_strided_slice %746 {offsets = [0, 128], sizes = [2, 32], strides = [1, 1]} : vector<2x256xf32> to vector<2x32xf32>
    %758 = vector.extract_strided_slice %746 {offsets = [0, 160], sizes = [2, 32], strides = [1, 1]} : vector<2x256xf32> to vector<2x32xf32>
    %759 = vector.extract_strided_slice %747 {offsets = [0, 192], sizes = [2, 32], strides = [1, 1]} : vector<2x256xf32> to vector<2x32xf32>
    %760 = vector.extract_strided_slice %746 {offsets = [0, 224], sizes = [2, 32], strides = [1, 1]} : vector<2x256xf32> to vector<2x32xf32>
    %761 = arith.mulf %758, %731 : vector<2x32xf32>
    %762 = arith.mulf %757, %759 : vector<2x32xf32>
    %763 = arith.addf %761, %762 : vector<2x32xf32>
    %764 = math.tanh %763 : vector<2x32xf32>
    %765 = arith.mulf %760, %764 : vector<2x32xf32>
    %c5_i32_80 = arith.constant 5 : i32
    %766 = vector.broadcast %c5_i32_80 : i32 to vector<2x1xi32>
    %767 = arith.cmpi sgt, %0, %766 : vector<2x1xi32>
    %c2_i32_81 = arith.constant 2 : i32
    %768 = vector.broadcast %c2_i32_81 : i32 to vector<2x1xi32>
    %769 = arith.cmpi sgt, %0, %768 : vector<2x1xi32>
    %770 = vector.shape_cast %767 : vector<2x1xi1> to vector<2x1xi1>
    %771 = vector.broadcast %770 : vector<2x1xi1> to vector<2x32xi1>
    %772 = arith.select %771, %756, %722 : vector<2x32xi1>, vector<2x32xf32>
    %773 = vector.shape_cast %767 : vector<2x1xi1> to vector<2x1xi1>
    %774 = vector.broadcast %773 : vector<2x1xi1> to vector<2x32xi1>
    %775 = arith.select %774, %754, %725 : vector<2x32xi1>, vector<2x32xf32>
    %776 = vector.shape_cast %769 : vector<2x1xi1> to vector<2x1xi1>
    %777 = vector.broadcast %776 : vector<2x1xi1> to vector<2x32xi1>
    %778 = arith.select %777, %765, %728 : vector<2x32xi1>, vector<2x32xf32>
    %779 = vector.shape_cast %769 : vector<2x1xi1> to vector<2x1xi1>
    %780 = vector.broadcast %779 : vector<2x1xi1> to vector<2x32xi1>
    %781 = arith.select %780, %763, %731 : vector<2x32xi1>, vector<2x32xf32>
    %782 = vector.extract_strided_slice %478 {offsets = [12, 0], sizes = [2, 256], strides = [1, 1]} : vector<16x256xf32> to vector<2x256xf32>
    %783 = vector.extract_strided_slice %478 {offsets = [2, 0], sizes = [2, 256], strides = [1, 1]} : vector<16x256xf32> to vector<2x256xf32>
    %784 = vector.shape_cast %3 : vector<1x256xi1> to vector<1x256xi1>
    %785 = vector.broadcast %784 : vector<1x256xi1> to vector<2x256xi1>
    %786 = arith.select %785, %782, %783 : vector<2x256xi1>, vector<2x256xf32>
    %787 = tpu.concatenate %772, %778 in 1 : vector<2x32xf32>, vector<2x32xf32> -> vector<2x64xf32>
    %cst_82 = arith.constant dense<0.000000e+00> : vector<2x256xf32>
    %788 = tpu.matmul %787, %479, %cst_82 {dimension_numbers = #tpu.dot_dimension_numbers<[1], [0], [0], [1], [0, 0, 1, 1], [], []>} : vector<2x64xf32>, vector<64x256xf32>, vector<2x256xf32> -> vector<2x256xf32>
    %789 = arith.addf %786, %788 : vector<2x256xf32>
    %790 = vector.broadcast %480 : vector<1x256xf32> to vector<2x256xf32>
    %791 = arith.addf %789, %790 : vector<2x256xf32>
    %792 = arith.negf %791 : vector<2x256xf32>
    %793 = math.exp %792 : vector<2x256xf32>
    %cst_83 = arith.constant 1.000000e+00 : f32
    %794 = vector.broadcast %cst_83 : f32 to vector<2x256xf32>
    %795 = arith.addf %794, %793 : vector<2x256xf32>
    %796 = arith.divf %794, %795 : vector<2x256xf32>
    %797 = math.tanh %791 : vector<2x256xf32>
    %798 = vector.extract_strided_slice %796 {offsets = [0, 0], sizes = [2, 32], strides = [1, 1]} : vector<2x256xf32> to vector<2x32xf32>
    %799 = vector.extract_strided_slice %796 {offsets = [0, 32], sizes = [2, 32], strides = [1, 1]} : vector<2x256xf32> to vector<2x32xf32>
    %800 = vector.extract_strided_slice %797 {offsets = [0, 64], sizes = [2, 32], strides = [1, 1]} : vector<2x256xf32> to vector<2x32xf32>
    %801 = vector.extract_strided_slice %796 {offsets = [0, 96], sizes = [2, 32], strides = [1, 1]} : vector<2x256xf32> to vector<2x32xf32>
    %802 = arith.mulf %799, %775 : vector<2x32xf32>
    %803 = arith.mulf %798, %800 : vector<2x32xf32>
    %804 = arith.addf %802, %803 : vector<2x32xf32>
    %805 = math.tanh %804 : vector<2x32xf32>
    %806 = arith.mulf %801, %805 : vector<2x32xf32>
    %807 = vector.extract_strided_slice %796 {offsets = [0, 128], sizes = [2, 32], strides = [1, 1]} : vector<2x256xf32> to vector<2x32xf32>
    %808 = vector.extract_strided_slice %796 {offsets = [0, 160], sizes = [2, 32], strides = [1, 1]} : vector<2x256xf32> to vector<2x32xf32>
    %809 = vector.extract_strided_slice %797 {offsets = [0, 192], sizes = [2, 32], strides = [1, 1]} : vector<2x256xf32> to vector<2x32xf32>
    %810 = vector.extract_strided_slice %796 {offsets = [0, 224], sizes = [2, 32], strides = [1, 1]} : vector<2x256xf32> to vector<2x32xf32>
    %811 = arith.mulf %808, %781 : vector<2x32xf32>
    %812 = arith.mulf %807, %809 : vector<2x32xf32>
    %813 = arith.addf %811, %812 : vector<2x32xf32>
    %814 = math.tanh %813 : vector<2x32xf32>
    %815 = arith.mulf %810, %814 : vector<2x32xf32>
    %c6_i32_84 = arith.constant 6 : i32
    %816 = vector.broadcast %c6_i32_84 : i32 to vector<2x1xi32>
    %817 = arith.cmpi sgt, %0, %816 : vector<2x1xi32>
    %c1_i32_85 = arith.constant 1 : i32
    %818 = vector.broadcast %c1_i32_85 : i32 to vector<2x1xi32>
    %819 = arith.cmpi sgt, %0, %818 : vector<2x1xi32>
    %820 = vector.shape_cast %817 : vector<2x1xi1> to vector<2x1xi1>
    %821 = vector.broadcast %820 : vector<2x1xi1> to vector<2x32xi1>
    %822 = arith.select %821, %806, %772 : vector<2x32xi1>, vector<2x32xf32>
    %823 = vector.shape_cast %817 : vector<2x1xi1> to vector<2x1xi1>
    %824 = vector.broadcast %823 : vector<2x1xi1> to vector<2x32xi1>
    %825 = arith.select %824, %804, %775 : vector<2x32xi1>, vector<2x32xf32>
    %826 = vector.shape_cast %819 : vector<2x1xi1> to vector<2x1xi1>
    %827 = vector.broadcast %826 : vector<2x1xi1> to vector<2x32xi1>
    %828 = arith.select %827, %815, %778 : vector<2x32xi1>, vector<2x32xf32>
    %829 = vector.shape_cast %819 : vector<2x1xi1> to vector<2x1xi1>
    %830 = vector.broadcast %829 : vector<2x1xi1> to vector<2x32xi1>
    %831 = arith.select %830, %813, %781 : vector<2x32xi1>, vector<2x32xf32>
    %832 = vector.extract_strided_slice %478 {offsets = [14, 0], sizes = [2, 256], strides = [1, 1]} : vector<16x256xf32> to vector<2x256xf32>
    %833 = vector.extract_strided_slice %478 {offsets = [0, 0], sizes = [2, 256], strides = [1, 1]} : vector<16x256xf32> to vector<2x256xf32>
    %834 = vector.shape_cast %3 : vector<1x256xi1> to vector<1x256xi1>
    %835 = vector.broadcast %834 : vector<1x256xi1> to vector<2x256xi1>
    %836 = arith.select %835, %832, %833 : vector<2x256xi1>, vector<2x256xf32>
    %837 = tpu.concatenate %822, %828 in 1 : vector<2x32xf32>, vector<2x32xf32> -> vector<2x64xf32>
    %cst_86 = arith.constant dense<0.000000e+00> : vector<2x256xf32>
    %838 = tpu.matmul %837, %479, %cst_86 {dimension_numbers = #tpu.dot_dimension_numbers<[1], [0], [0], [1], [0, 0, 1, 1], [], []>} : vector<2x64xf32>, vector<64x256xf32>, vector<2x256xf32> -> vector<2x256xf32>
    %839 = arith.addf %836, %838 : vector<2x256xf32>
    %840 = vector.broadcast %480 : vector<1x256xf32> to vector<2x256xf32>
    %841 = arith.addf %839, %840 : vector<2x256xf32>
    %842 = arith.negf %841 : vector<2x256xf32>
    %843 = math.exp %842 : vector<2x256xf32>
    %cst_87 = arith.constant 1.000000e+00 : f32
    %844 = vector.broadcast %cst_87 : f32 to vector<2x256xf32>
    %845 = arith.addf %844, %843 : vector<2x256xf32>
    %846 = arith.divf %844, %845 : vector<2x256xf32>
    %847 = math.tanh %841 : vector<2x256xf32>
    %848 = vector.extract_strided_slice %846 {offsets = [0, 0], sizes = [2, 32], strides = [1, 1]} : vector<2x256xf32> to vector<2x32xf32>
    %849 = vector.extract_strided_slice %846 {offsets = [0, 32], sizes = [2, 32], strides = [1, 1]} : vector<2x256xf32> to vector<2x32xf32>
    %850 = vector.extract_strided_slice %847 {offsets = [0, 64], sizes = [2, 32], strides = [1, 1]} : vector<2x256xf32> to vector<2x32xf32>
    %851 = vector.extract_strided_slice %846 {offsets = [0, 96], sizes = [2, 32], strides = [1, 1]} : vector<2x256xf32> to vector<2x32xf32>
    %852 = arith.mulf %849, %825 : vector<2x32xf32>
    %853 = arith.mulf %848, %850 : vector<2x32xf32>
    %854 = arith.addf %852, %853 : vector<2x32xf32>
    %855 = math.tanh %854 : vector<2x32xf32>
    %856 = arith.mulf %851, %855 : vector<2x32xf32>
    %857 = vector.extract_strided_slice %846 {offsets = [0, 128], sizes = [2, 32], strides = [1, 1]} : vector<2x256xf32> to vector<2x32xf32>
    %858 = vector.extract_strided_slice %846 {offsets = [0, 160], sizes = [2, 32], strides = [1, 1]} : vector<2x256xf32> to vector<2x32xf32>
    %859 = vector.extract_strided_slice %847 {offsets = [0, 192], sizes = [2, 32], strides = [1, 1]} : vector<2x256xf32> to vector<2x32xf32>
    %860 = vector.extract_strided_slice %846 {offsets = [0, 224], sizes = [2, 32], strides = [1, 1]} : vector<2x256xf32> to vector<2x32xf32>
    %861 = arith.mulf %858, %831 : vector<2x32xf32>
    %862 = arith.mulf %857, %859 : vector<2x32xf32>
    %863 = arith.addf %861, %862 : vector<2x32xf32>
    %864 = math.tanh %863 : vector<2x32xf32>
    %865 = arith.mulf %860, %864 : vector<2x32xf32>
    %c7_i32_88 = arith.constant 7 : i32
    %866 = vector.broadcast %c7_i32_88 : i32 to vector<2x1xi32>
    %867 = arith.cmpi sgt, %0, %866 : vector<2x1xi32>
    %c0_i32_89 = arith.constant 0 : i32
    %868 = vector.broadcast %c0_i32_89 : i32 to vector<2x1xi32>
    %869 = arith.cmpi sgt, %0, %868 : vector<2x1xi32>
    %870 = vector.shape_cast %867 : vector<2x1xi1> to vector<2x1xi1>
    %871 = vector.broadcast %870 : vector<2x1xi1> to vector<2x32xi1>
    %872 = arith.select %871, %856, %822 : vector<2x32xi1>, vector<2x32xf32>
    %873 = vector.shape_cast %869 : vector<2x1xi1> to vector<2x1xi1>
    %874 = vector.broadcast %873 : vector<2x1xi1> to vector<2x32xi1>
    %875 = arith.select %874, %865, %828 : vector<2x32xi1>, vector<2x32xf32>
    %876 = tpu.concatenate %872, %875 in 1 : vector<2x32xf32>, vector<2x32xf32> -> vector<2x64xf32>
    %c0_90 = arith.constant 0 : index
    %c0_91 = arith.constant 0 : index
    %877 = vector.load %arg8[%c0_90, %c0_91] : memref<64x64xf32, #tpu.memory_space<vmem>>, vector<64x64xf32>
    %cst_92 = arith.constant dense<0.000000e+00> : vector<2x64xf32>
    %878 = tpu.matmul %876, %877, %cst_92 {dimension_numbers = #tpu.dot_dimension_numbers<[1], [0], [0], [1], [0, 0, 1, 1], [], []>} : vector<2x64xf32>, vector<64x64xf32>, vector<2x64xf32> -> vector<2x64xf32>
    %c0_93 = arith.constant 0 : index
    %c0_94 = arith.constant 0 : index
    %879 = vector.load %arg9[%c0_93, %c0_94] : memref<1x64xf32, #tpu.memory_space<vmem>>, vector<1x64xf32>
    %880 = vector.broadcast %879 : vector<1x64xf32> to vector<2x64xf32>
    %881 = arith.addf %878, %880 : vector<2x64xf32>
    %cst_95 = arith.constant 0.000000e+00 : f32
    %882 = vector.broadcast %cst_95 : f32 to vector<2x64xf32>
    %883 = arith.maximumf %881, %882 : vector<2x64xf32>
    %c0_96 = arith.constant 0 : index
    %c0_97 = arith.constant 0 : index
    %884 = vector.load %arg10[%c0_96, %c0_97] : memref<64x10xf32, #tpu.memory_space<vmem>>, vector<64x10xf32>
    %cst_98 = arith.constant dense<0.000000e+00> : vector<2x10xf32>
    %885 = tpu.matmul %883, %884, %cst_98 {dimension_numbers = #tpu.dot_dimension_numbers<[1], [0], [0], [1], [0, 0, 1, 1], [], []>} : vector<2x64xf32>, vector<64x10xf32>, vector<2x10xf32> -> vector<2x10xf32>
    %c0_99 = arith.constant 0 : index
    %c0_100 = arith.constant 0 : index
    %886 = vector.load %arg11[%c0_99, %c0_100] : memref<1x10xf32, #tpu.memory_space<vmem>>, vector<1x10xf32>
    %887 = vector.broadcast %886 : vector<1x10xf32> to vector<2x10xf32>
    %888 = arith.addf %885, %887 : vector<2x10xf32>
    %c0_101 = arith.constant 0 : index
    %c0_102 = arith.constant 0 : index
    %889 = vector.load %arg12[%c0_101, %c0_102] : memref<2x10xf32, #tpu.memory_space<vmem>>, vector<2x10xf32>
    tpu.vector_store %arg12[%c0_101, %c0_102], %888 {strides = array<i32>} : memref<2x10xf32, #tpu.memory_space<vmem>>, vector<2x10xf32>,
    return
  }
}

</mosaic_0001>

<bundles_post_ra>
// kernel: lstm_model_forward.1
= control target key start
LH: loop header
LB: loop body
LE: loop exit
PB: predicated region body
PF: predicated region fallthrough
CT: control target
= control target key end

     0   :  { %s5132_s0 = inlined_call_operand.vmem [shape: s32[2,1], index: 0, kind: input, shape index: {}]   ;;  %s5133_s1 = inlined_call_operand.vmem [shape: f32[16,256], index: 1, kind: input, shape index: {}]   ;;  %s5134_s2 = inlined_call_operand.vmem [shape: f32[256,256], index: 2, kind: input, shape index: {}]   ;;  %s5135_s3 = inlined_call_operand.vmem [shape: f32[64,256], index: 3, kind: input, shape index: {}]   ;;  %s5136_s4 = inlined_call_operand.vmem [shape: f32[1,256], index: 4, kind: input, shape index: {}]   ;;  %s5137_s5 = inlined_call_operand.vmem [shape: f32[64,256], index: 5, kind: input, shape index: {}]   ;;  %s5138_s6 = inlined_call_operand.vmem [shape: f32[64,256], index: 6, kind: input, shape index: {}]   ;;  %s5139_s7 = inlined_call_operand.vmem [shape: f32[1,256], index: 7, kind: input, shape index: {}]   ;;  %s5140_s8 = inlined_call_operand.vmem [shape: f32[64,64], index: 8, kind: input, shape index: {}]   ;;  %s5141_s9 = inlined_call_operand.vmem [shape: f32[1,64], index: 9, kind: input, shape index: {}]   ;;  %s5142_s10 = inlined_call_operand.vmem [shape: f32[64,10], index: 10, kind: input, shape index: {}]   ;;  %s5143_s11 = inlined_call_operand.vmem [shape: f32[1,10], index: 11, kind: input, shape index: {}]   ;;  %s5144_s12 = inlined_call_operand.hbm [shape: f32[2,10], index: 12, kind: output, shape index: {}]  }
   0x1   :  { %v82_v0 = vld [vmem:[%s5134_s2 + $0xf0] sm:$0xff]  ;;  %v83_v2 = vld [vmem:[%s5134_s2 + $0xf8] sm:$0xff]  ;;  %v80_v4 = vld [vmem:[%s5134_s2 + $0xe0] sm:$0xff] }
   0x2   :  { %v114_v1 = vld [vmem:[%s5134_s2 + $0x1f0] sm:$0xff]  ;;  %116 = vmatpush.msra.mxu0 %v82_v0  ;;  %v115_v3 = vld [vmem:[%s5134_s2 + $0x1f8] sm:$0xff]  ;;  %v112_v5 = vld [vmem:[%s5134_s2 + $0x1e0] sm:$0xff]  ;;  %162 = vmatpush.msra.mxu2 %v83_v2 }
   0x3   :  { %139 = vmatpush.msra.mxu1 %v114_v1  ;;  %185 = vmatpush.msra.mxu3 %v115_v3  ;;  %v81_v6 = vld [vmem:[%s5134_s2 + $0xe8] sm:$0xff]  ;;  %v78_v8 = vld [vmem:[%s5134_s2 + $0xd0] sm:$0xff]  ;;  %v79_v10 = vld [vmem:[%s5134_s2 + $0xd8] sm:$0xff] }
   0x4   :  { %v113_v7 = vld [vmem:[%s5134_s2 + $0x1e8] sm:$0xff]  ;;  %117 = vmatpush.msra.mxu0 %v80_v4  ;;  %v110_v9 = vld [vmem:[%s5134_s2 + $0x1d0] sm:$0xff]  ;;  %v111_v11 = vld [vmem:[%s5134_s2 + $0x1d8] sm:$0xff]  ;;  %163 = vmatpush.msra.mxu2 %v81_v6 }
   0x5   :  { %140 = vmatpush.msra.mxu1 %v112_v5  ;;  %186 = vmatpush.msra.mxu3 %v113_v7  ;;  %v76_v12 = vld [vmem:[%s5134_s2 + $0xc0] sm:$0xff]  ;;  %v77_v14 = vld [vmem:[%s5134_s2 + $0xc8] sm:$0xff]  ;;  %v74_v16 = vld [vmem:[%s5134_s2 + $0xb0] sm:$0xff] }
   0x6   :  { %v108_v13 = vld [vmem:[%s5134_s2 + $0x1c0] sm:$0xff]  ;;  %118 = vmatpush.msra.mxu0 %v78_v8  ;;  %v109_v15 = vld [vmem:[%s5134_s2 + $0x1c8] sm:$0xff]  ;;  %164 = vmatpush.msra.mxu2 %v79_v10  ;;  %v106_v17 = vld [vmem:[%s5134_s2 + $0x1b0] sm:$0xff] }
   0x7   :  { %141 = vmatpush.msra.mxu1 %v110_v9  ;;  %187 = vmatpush.msra.mxu3 %v111_v11  ;;  %v75_v18 = vld [vmem:[%s5134_s2 + $0xb8] sm:$0xff]  ;;  %v72_v20 = vld [vmem:[%s5134_s2 + $0xa0] sm:$0xff]  ;;  %v73_v22 = vld [vmem:[%s5134_s2 + $0xa8] sm:$0xff] }
   0x8   :  { %119 = vmatpush.msra.mxu0 %v76_v12  ;;  %v107_v19 = vld [vmem:[%s5134_s2 + $0x1b8] sm:$0xff]  ;;  %165 = vmatpush.msra.mxu2 %v77_v14  ;;  %v104_v21 = vld [vmem:[%s5134_s2 + $0x1a0] sm:$0xff]  ;;  %v105_v23 = vld [vmem:[%s5134_s2 + $0x1a8] sm:$0xff] }
   0x9   :  { %142 = vmatpush.msra.mxu1 %v108_v13  ;;  %188 = vmatpush.msra.mxu3 %v109_v15  ;;  %v70_v24 = vld [vmem:[%s5134_s2 + $0x90] sm:$0xff]  ;;  %v71_v26 = vld [vmem:[%s5134_s2 + $0x98] sm:$0xff]  ;;  %v68_v28 = vld [vmem:[%s5134_s2 + $0x80] sm:$0xff] }
   0xa   :  { %120 = vmatpush.msra.mxu0 %v74_v16  ;;  %166 = vmatpush.msra.mxu2 %v75_v18  ;;  %v102_v25 = vld [vmem:[%s5134_s2 + $0x190] sm:$0xff]  ;;  %v103_v27 = vld [vmem:[%s5134_s2 + $0x198] sm:$0xff]  ;;  %v100_v29 = vld [vmem:[%s5134_s2 + $0x180] sm:$0xff] }
   0xb   :  { %143 = vmatpush.msra.mxu1 %v106_v17  ;;  %189 = vmatpush.msra.mxu3 %v107_v19  ;;  %v69_v30 = vld [vmem:[%s5134_s2 + $0x88] sm:$0xff]  ;;  %v66_v32 = vld [vmem:[%s5134_s2 + $0x70] sm:$0xff]  ;;  %v67_v34 = vld [vmem:[%s5134_s2 + $0x78] sm:$0xff] }
   0xc   :  { %121 = vmatpush.msra.mxu0 %v72_v20  ;;  %167 = vmatpush.msra.mxu2 %v73_v22  ;;  %v101_v31 = vld [vmem:[%s5134_s2 + $0x188] sm:$0xff]  ;;  %v98_v33 = vld [vmem:[%s5134_s2 + $0x170] sm:$0xff]  ;;  %v99_v35 = vld [vmem:[%s5134_s2 + $0x178] sm:$0xff] }
   0xd   :  { %144 = vmatpush.msra.mxu1 %v104_v21  ;;  %190 = vmatpush.msra.mxu3 %v105_v23  ;;  %v64_v36 = vld [vmem:[%s5134_s2 + $0x60] sm:$0xff]  ;;  %v65_v38 = vld [vmem:[%s5134_s2 + $0x68] sm:$0xff]  ;;  %v62_v40 = vld [vmem:[%s5134_s2 + $0x50] sm:$0xff] }
   0xe   :  { %122 = vmatpush.msra.mxu0 %v70_v24  ;;  %168 = vmatpush.msra.mxu2 %v71_v26  ;;  %v96_v37 = vld [vmem:[%s5134_s2 + $0x160] sm:$0xff]  ;;  %v97_v39 = vld [vmem:[%s5134_s2 + $0x168] sm:$0xff]  ;;  %v94_v41 = vld [vmem:[%s5134_s2 + $0x150] sm:$0xff] }
   0xf   :  { %145 = vmatpush.msra.mxu1 %v102_v25  ;;  %191 = vmatpush.msra.mxu3 %v103_v27  ;;  %v63_v42 = vld [vmem:[%s5134_s2 + $0x58] sm:$0xff]  ;;  %v60_v44 = vld [vmem:[%s5134_s2 + $0x40] sm:$0xff]  ;;  %v61_v46 = vld [vmem:[%s5134_s2 + $0x48] sm:$0xff] }
  0x10   :  { %123 = vmatpush.msra.mxu0 %v68_v28  ;;  %169 = vmatpush.msra.mxu2 %v69_v30  ;;  %v95_v43 = vld [vmem:[%s5134_s2 + $0x158] sm:$0xff]  ;;  %v92_v45 = vld [vmem:[%s5134_s2 + $0x140] sm:$0xff]  ;;  %v93_v47 = vld [vmem:[%s5134_s2 + $0x148] sm:$0xff] }
  0x11   :  { %146 = vmatpush.msra.mxu1 %v100_v29  ;;  %192 = vmatpush.msra.mxu3 %v101_v31  ;;  %v58_v48 = vld [vmem:[%s5134_s2 + $0x30] sm:$0xff]  ;;  %v59_v50 = vld [vmem:[%s5134_s2 + $0x38] sm:$0xff]  ;;  %v56_v52 = vld [vmem:[%s5134_s2 + $0x20] sm:$0xff] }
  0x12   :  { %124 = vmatpush.msra.mxu0 %v66_v32  ;;  %170 = vmatpush.msra.mxu2 %v67_v34  ;;  %v90_v49 = vld [vmem:[%s5134_s2 + $0x130] sm:$0xff]  ;;  %v91_v51 = vld [vmem:[%s5134_s2 + $0x138] sm:$0xff]  ;;  %v88_v53 = vld [vmem:[%s5134_s2 + $0x120] sm:$0xff] }
  0x13   :  { %147 = vmatpush.msra.mxu1 %v98_v33  ;;  %193 = vmatpush.msra.mxu3 %v99_v35  ;;  %v57_v54 = vld [vmem:[%s5134_s2 + $0x28] sm:$0xff]  ;;  %v54_v56 = vld [vmem:[%s5134_s2 + $0x10] sm:$0xff]  ;;  %v55_v58 = vld [vmem:[%s5134_s2 + $0x18] sm:$0xff] }
  0x14   :  { %125 = vmatpush.msra.mxu0 %v64_v36  ;;  %171 = vmatpush.msra.mxu2 %v65_v38  ;;  %v89_v55 = vld [vmem:[%s5134_s2 + $0x128] sm:$0xff]  ;;  %v86_v57 = vld [vmem:[%s5134_s2 + $0x110] sm:$0xff]  ;;  %v87_v59 = vld [vmem:[%s5134_s2 + $0x118] sm:$0xff] }
  0x15   :  { %148 = vmatpush.msra.mxu1 %v96_v37  ;;  %194 = vmatpush.msra.mxu3 %v97_v39  ;;  %v52_v60 = vld [vmem:[%s5134_s2] sm:$0xff] }
  0x16   :  { %126 = vmatpush.msra.mxu0 %v62_v40  ;;  %172 = vmatpush.msra.mxu2 %v63_v42  ;;  %v84_v61 = vld [vmem:[%s5134_s2 + $0x100] sm:$0xff] }
  0x17   :  { %149 = vmatpush.msra.mxu1 %v94_v41  ;;  %195 = vmatpush.msra.mxu3 %v95_v43 }
  0x18   :  { %127 = vmatpush.msra.mxu0 %v60_v44  ;;  %173 = vmatpush.msra.mxu2 %v61_v46 }
  0x19   :  { %150 = vmatpush.msra.mxu1 %v92_v45  ;;  %196 = vmatpush.msra.mxu3 %v93_v47 }
  0x1a   :  { %128 = vmatpush.msra.mxu0 %v58_v48  ;;  %174 = vmatpush.msra.mxu2 %v59_v50 }
  0x1b   :  { %151 = vmatpush.msra.mxu1 %v90_v49  ;;  %197 = vmatpush.msra.mxu3 %v91_v51 }
  0x1c   :  { %129 = vmatpush.msra.mxu0 %v56_v52  ;;  %175 = vmatpush.msra.mxu2 %v57_v54 }
  0x1d   :  { %152 = vmatpush.msra.mxu1 %v88_v53  ;;  %198 = vmatpush.msra.mxu3 %v89_v55 }
  0x1e   :  { %17 = vsyncpa [#allocation3], 0  ;;  %130 = vmatpush.msra.mxu0 %v54_v56  ;;  %v53_v62 = vld [vmem:[%s5134_s2 + $0x8] sm:$0xff]  ;;  %176 = vmatpush.msra.mxu2 %v55_v58  ;;  %v48_v0 = vld [vmem:[%s5133_s1] sm:$0xff]  ;;  %v3503_v20 = vmov 0.0   ;;  %v3505_v49 = vmov 0  }
  0x1f   :  { %153 = vmatpush.msra.mxu1 %v86_v57  ;;  %v85_v63 = vld [vmem:[%s5134_s2 + $0x108] sm:$0xff]  ;;  %199 = vmatpush.msra.mxu3 %v87_v59  ;;  %v3775_v2 = vld [vmem:[%s5135_s3 + $0x70] sm:$0xff]  ;;  %v3780_v3 = vld [vmem:[%s5135_s3 + $0x78] sm:$0xff]  ;;  %vm394_vm12 = vcmask 261120   ;;  %vm237_vm13 = vcmask 523264   ;;  %s3507_s27 = smov 96  }
  0x20   :  { %v49_v1 = vld [vmem:[%s5133_s1 + $0x8] sm:$0xff]  ;;  %131 = vmatpush.msra.mxu0 %v52_v60  ;;  %177 = vmatpush.msra.mxu2 %v53_v62  ;;  %v3785_v4 = vld [vmem:[%s5135_s3 + $0x60] sm:$0xff]  ;;  %v3797_v6 = vld [vmem:[%s5135_s3 + $0x50] sm:$0xff]  ;;  %s3508_s18 = smov [#allocation2]  }
  0x21   :  { %154 = vmatpush.msra.mxu1 %v84_v61  ;;  %200 = vmatpush.msra.mxu3 %v85_v63  ;;  %v3790_v5 = vld [vmem:[%s5135_s3 + $0x68] sm:$0xff]  ;;  %v3802_v7 = vld [vmem:[%s5135_s3 + $0x58] sm:$0xff]  ;;  %v3811_v8 = vld [vmem:[%s5135_s3 + $0x40] sm:$0xff]  ;;  %s3133_s19 = sshll.u32 %s3508_s18, 4  ;;  %s3134_s19 = int_to_ptr.vmem [resolvable:$true] %s3133_s19 }
  0x22   :  { %132 = vmatmul.f32.vlgmr.msra.gmra.mxu0 %v48_v0  ;;  %155 = vmatmul.f32.vlgmr.msra.gmra.mxu1 %v49_v1  ;;  %v51_v9 = vld [vmem:[%s5133_s1 + $0x18] sm:$0xff]  ;;  %v50_v10 = vld [vmem:[%s5133_s1 + $0x10] sm:$0xff]  ;;  %v3834_v12 = vld [vmem:[%s5135_s3 + $0x48] sm:$0xff] }
  0x23   :  { %178 = vmatmul.f32.vlgmr.msra.gmra.mxu2 %v48_v0  ;;  %201 = vmatmul.f32.vlgmr.msra.gmra.mxu3 %v49_v1  ;;  %v3826_v11 = vld [vmem:[%s5135_s3 + $0x30] sm:$0xff]  ;;  %v3839_v13 = vld [vmem:[%s5135_s3 + $0x20] sm:$0xff]  ;;  %v3845_v14 = vld [vmem:[%s5135_s3 + $0x38] sm:$0xff] }
  0x24   :  { %249 = vmatpush.msrb.mxu0 %v3775_v2  ;;  %269 = vmatpush.msrb.mxu1 %v3780_v3  ;;  %v3851_v15 = vld [vmem:[%s5135_s3 + $0x10] sm:$0xff]  ;;  %v3858_v16 = vld [vmem:[%s5135_s3 + $0x28] sm:$0xff]  ;;  %v3865_v17 = vld [vmem:[%s5135_s3] sm:$0xff] }
  0x25   :  { %427 = vmatpush.msrb.mxu3 %v3780_v3  ;;  %407 = vmatpush.msrb.mxu2 %v3775_v2  ;;  %v3872_v18 = vld [vmem:[%s5135_s3 + $0x18] sm:$0xff]  ;;  %v3881_v19 = vld [vmem:[%s5135_s3 + $0x8] sm:$0xff]  ;;  %v224_v29 = vld [vmem:[%s5136_s4] sm:$0x3]  ;;  %s3504_s4 = smov 64  }
  0x26   :  { %250 = vmatpush.msrb.mxu0 %v3785_v4  ;;  %270 = vmatpush.msrb.mxu1 %v3790_v5  ;;  %v3949_v33 = vperm.slane %v224_v29, 0  ;;  %v3958_v41 = vperm.slane %v224_v29, 1  ;;  %v3968_v50 = vld [vmem:[%s5132_s0] sm:$0x3]  ;;  %s3506_s0 = smov 32  }
  0x27   :  { %428 = vmatpush.msrb.mxu3 %v3790_v5  ;;  %408 = vmatpush.msrb.mxu2 %v3785_v4  ;;  %vm364_vm0 = vcmp.gt.s32.totalorder %v3968_v50, 0  ;;  %vm365_vm9 = vcmp.gt.s32.totalorder %v3968_v50, 7 }
  0x28   :  { %251 = vmatpush.msrb.mxu0 %v3797_v6  ;;  %271 = vmatpush.msrb.mxu1 %v3802_v7  ;;  %v366_v51 = vsel %vm364_vm0, 1, %v3505_v49 }
  0x29   :  { %429 = vmatpush.msrb.mxu3 %v3802_v7  ;;  %409 = vmatpush.msrb.mxu2 %v3797_v6 }
  0x2a   :  { %252 = vmatpush.msrb.mxu0 %v3811_v8  ;;  %158 = vmatmul.f32.gmra.mxu1 %v51_v9 }
  0x2b   :  { %135 = vmatmul.f32.gmra.mxu0 %v50_v10  ;;  %181 = vmatmul.f32.gmra.mxu2 %v50_v10 }
  0x2c   :  { %204 = vmatmul.f32.gmra.mxu3 %v51_v9  ;;  %253 = vmatpush.msrb.mxu0 %v3826_v11 }
  0x2d   :  { %272 = vmatpush.msrb.mxu1 %v3834_v12  ;;  %430 = vmatpush.msrb.mxu3 %v3834_v12 }
  0x2e   :  { %254 = vmatpush.msrb.mxu0 %v3839_v13  ;;  %410 = vmatpush.msrb.mxu2 %v3811_v8 }
  0x2f   :  { %273 = vmatpush.msrb.mxu1 %v3845_v14  ;;  %431 = vmatpush.msrb.mxu3 %v3845_v14 }
  0x30   :  { %255 = vmatpush.msrb.mxu0 %v3851_v15  ;;  %411 = vmatpush.msrb.mxu2 %v3826_v11 }
  0x31   :  { %274 = vmatpush.msrb.mxu1 %v3858_v16  ;;  %432 = vmatpush.msrb.mxu3 %v3858_v16 }
  0x32   :  { %256 = vmatpush.msrb.mxu0 %v3865_v17  ;;  %412 = vmatpush.msrb.mxu2 %v3839_v13 }
  0x33   :  { %275 = vmatpush.msrb.mxu1 %v3872_v18  ;;  %257 = vmatmul.f32.vlgmr.msrb.gmra.mxu0 %v3503_v20 }
  0x34   :  { %433 = vmatpush.msrb.mxu3 %v3872_v18  ;;  %413 = vmatpush.msrb.mxu2 %v3851_v15 }
  0x35   :  { %276 = vmatpush.msrb.mxu1 %v3881_v19  ;;  %592 = vmatpush.msra.mxu0 %v3775_v2 }
  0x36   :  { %277 = vmatmul.f32.vlgmr.msrb.gmra.mxu1 %v3503_v20  ;;  %434 = vmatpush.msrb.mxu3 %v3881_v19 }
  0x37   :  { %414 = vmatpush.msrb.mxu2 %v3865_v17  ;;  %612 = vmatpush.msra.mxu1 %v3780_v3 }
  0x38   :  { %593 = vmatpush.msra.mxu0 %v3785_v4  ;;  %792 = vmatpush.msra.mxu3 %v3780_v3 }
  0x39   :  { %772 = vmatpush.msra.mxu2 %v3775_v2  ;;  %613 = vmatpush.msra.mxu1 %v3790_v5 }
  0x3a   :  { %594 = vmatpush.msra.mxu0 %v3797_v6  ;;  %793 = vmatpush.msra.mxu3 %v3790_v5 }
  0x3b   :  { %773 = vmatpush.msra.mxu2 %v3785_v4  ;;  %614 = vmatpush.msra.mxu1 %v3802_v7 }
  0x3c   :  { %595 = vmatpush.msra.mxu0 %v3811_v8  ;;  %794 = vmatpush.msra.mxu3 %v3802_v7 }
  0x3d   :  { %774 = vmatpush.msra.mxu2 %v3797_v6  ;;  %615 = vmatpush.msra.mxu1 %v3834_v12 }
  0x3e   :  { %596 = vmatpush.msra.mxu0 %v3826_v11  ;;  %795 = vmatpush.msra.mxu3 %v3834_v12 }
  0x3f   :  { %775 = vmatpush.msra.mxu2 %v3811_v8  ;;  %616 = vmatpush.msra.mxu1 %v3845_v14 }
  0x40   :  { %597 = vmatpush.msra.mxu0 %v3839_v13  ;;  %796 = vmatpush.msra.mxu3 %v3845_v14 }
  0x41   :  { %776 = vmatpush.msra.mxu2 %v3826_v11  ;;  %617 = vmatpush.msra.mxu1 %v3858_v16 }
  0x42   :  { %598 = vmatpush.msra.mxu0 %v3851_v15  ;;  %797 = vmatpush.msra.mxu3 %v3858_v16 }
  0x43   :  { %777 = vmatpush.msra.mxu2 %v3839_v13  ;;  %618 = vmatpush.msra.mxu1 %v3872_v18 }
  0x44   :  { %599 = vmatpush.msra.mxu0 %v3865_v17  ;;  %798 = vmatpush.msra.mxu3 %v3872_v18 }
  0x45   :  { %778 = vmatpush.msra.mxu2 %v3851_v15  ;;  %619 = vmatpush.msra.mxu1 %v3881_v19 }
  0x46   :  { %960 = vmatpush.msrb.mxu0 %v3775_v2  ;;  %799 = vmatpush.msra.mxu3 %v3881_v19 }
  0x47   :  { %779 = vmatpush.msra.mxu2 %v3865_v17  ;;  %980 = vmatpush.msrb.mxu1 %v3780_v3 }
  0x48   :  { %961 = vmatpush.msrb.mxu0 %v3785_v4  ;;  %3216 = vset.pattern.permute.xlu0 %v3505_v49 }
  0x49   :  { %981 = vmatpush.msrb.mxu1 %v3790_v5  ;;  %3217 = vset.pattern.permute.xlu1 %v3505_v49 }
  0x4a   :  { %962 = vmatpush.msrb.mxu0 %v3797_v6  ;;  %3218 = vset.pattern.permute.xlu2 %v3505_v49 }
  0x4b   :  { %982 = vmatpush.msrb.mxu1 %v3802_v7 }
  0x4c   :  { %963 = vmatpush.msrb.mxu0 %v3811_v8 }
  0x4d   :  { %983 = vmatpush.msrb.mxu1 %v3834_v12 }
  0x4e   :  { %964 = vmatpush.msrb.mxu0 %v3826_v11 }
  0x4f   :  { %984 = vmatpush.msrb.mxu1 %v3845_v14 }
  0x50   :  { %965 = vmatpush.msrb.mxu0 %v3839_v13 }
  0x51   :  { %985 = vmatpush.msrb.mxu1 %v3858_v16 }
  0x52   :  { %966 = vmatpush.msrb.mxu0 %v3851_v15 }
  0x53   :  { %986 = vmatpush.msrb.mxu1 %v3872_v18 }
  0x54   :  { %967 = vmatpush.msrb.mxu0 %v3865_v17 }
  0x55   :  { %987 = vmatpush.msrb.mxu1 %v3881_v19 }
  0x9f   :  { %v133_v21 = vpop.f32.mrf.mxu0  ;;  %v156_v22 = vpop.f32.mrf.mxu1 }
  0xa0   :  { %v3947_v31 = vadd.f32 %v156_v22, %v133_v21 }
  0xa6   :  { %v179_v23 = vpop.f32.mrf.mxu2  ;;  %v202_v24 = vpop.f32.mrf.mxu3 }
  0xa7   :  { %v3940_v25 = vadd.f32 %v202_v24, %v179_v23  ;;  %v159_v26 = vpop.f32.mrf.mxu1 }
  0xa8   :  { %v136_v27 = vpop.f32.mrf.mxu0 }
  0xa9   :  { %v3942_v28 = vadd.f32 %v159_v26, %v136_v27 }
  0xae   :  { %v182_v30 = vpop.f32.mrf.mxu2 }
  0xaf   :  { %v205_v32 = vpop.f32.mrf.mxu3 }
  0xb0   :  { %v3951_v34 = vadd.f32 %v205_v32, %v182_v30  ;;  %v258_v35 = vpop.f32.mrf.mxu0 }
  0xb1   :  { %v281_v36 = vadd.f32 %v258_v35, %v3947_v31 }
  0xb2   :  { %v232_v37 = vrot.slane %v3951_v34, 6 }
  0xb3   :  { %v288_v38 = vadd.f32 %v3949_v33, %v281_v36  ;;  %v278_v39 = vpop.f32.mrf.mxu1  ;;  %v373_v36 = vsel %vm365_vm9, 1, %v3505_v49 }
  0xb4   :  { %v282_v40 = vadd.f32 %v278_v39, %v232_v37 }
  0xb5   :  { %3221 = vtanh.f32 %v288_v38  ;;  %v3144_v45 = vmul.f32 -1.442695, %v288_v38 }
  0xb6   :  { %v289_v42 = vadd.f32 %v3958_v41, %v282_v40 }
  0xb8   :  { %3223 = vtanh.f32 %v289_v42  ;;  %v3145_v46 = vmul.f32 -1.442695, %v289_v42 }
  0xb9   :  { %3225 = vpow2.f32 %v3144_v45 }
  0xba   :  { %3227 = vpow2.f32 %v3145_v46 }
  0xbb   :  { %v3222_v43 = vpop.eup %3221 }
  0xbc   :  { %332 = vrot.lane.b32.xlu0 %v3222_v43, %s3504_s4 }
  0xbe   :  { %v3224_v44 = vpop.eup %3223 }
  0xbf   :  { %v3226_v47 = vpop.eup %3225 }
  0xc0   :  { %v296_v48 = vadd.f32 1.0, %v3226_v47  ;;  %v3228_v52 = vpop.eup %3227 }
  0xc1   :  { %v297_v53 = vadd.f32 1.0, %v3228_v52 }
  0xc2   :  { %3229 = vrcp.f32 %v296_v48  ;;  %v309_v62 = vand.u32 2147483648, %v296_v48  ;;  %vm303_vm2 = vweird.f32 %v296_v48  ;;  %v307_v63 = vand.u32 2147483647, %v296_v48 }
  0xc3   :  { %3231 = vrcp.f32 %v297_v53  ;;  %vm318_vm5 = vweird.f32 %v297_v53  ;;  %v324_v24 = vand.u32 2147483648, %v297_v53  ;;  %v322_v26 = vand.u32 2147483647, %v297_v53 }
  0xc4   :  { %349 = vrot.lane.b32.xlu0 %v3224_v44, %s3504_s4  ;;  %v310_v9 = vor.u32 1.1754944e-38, %v309_v62  ;;  %vm308_vm4 = vcmp.eq.f32.partialorder %v307_v63, 8.507059e+37  ;;  %v381_v62 = vrot.slane %v3951_v34, 2 }
  0xc5   :  { %v325_v29 = vor.u32 1.1754944e-38, %v324_v24  ;;  %vm323_vm8 = vcmp.eq.f32.partialorder %v322_v26, 8.507059e+37 }
  0xc8   :  { %v3230_v54 = vpop.eup %3229 }
  0xc9   :  { %v299_v55 = vmul.f32 %v3230_v54, %v296_v48  ;;  %v3232_v57 = vpop.eup %3231  ;;  %vm304_vm1 = vweird.f32 %v3230_v54 }
  0xca   :  { %v314_v59 = vmul.f32 %v3232_v57, %v297_v53  ;;  %vm305_vm3 = vmor %vm303_vm2, %vm304_vm1  ;;  %vm319_vm6 = vweird.f32 %v3232_v57 }
  0xcb   :  { %v300_v56 = vsub.f32 1.0, %v299_v55  ;;  %vm320_vm7 = vmor %vm318_vm5, %vm319_vm6  ;;  %vm530_vm6 = vcmp.gt.s32.totalorder %v3968_v50, 6 }
  0xcc   :  { %368 = vperm.xlu0 %3216, %v366_v51   ;;  %v315_v61 = vsub.f32 1.0, %v314_v59 }
  0xcd   :  { %v301_v58 = vmul.f32 %v3230_v54, %v300_v56 }
  0xce   :  { %v316_v1 = vmul.f32 %v3232_v57, %v315_v61 }
  0xcf   :  { %v302_v60 = vadd.f32 %v3230_v54, %v301_v58 }
  0xd0   :  { %v317_v23 = vadd.f32 %v3232_v57, %v316_v1 }
  0xd1   :  { %v306_v0 = vsel %vm305_vm3, %v3230_v54, %v302_v60 }
  0xd2   :  { %v311_v21 = vsel %vm308_vm4, %v310_v9, %v306_v0  ;;  %v321_v27 = vsel %vm320_vm7, %v3232_v57, %v317_v23  ;;  %vm529_vm7 = vcmp.gt.s32.totalorder %v3968_v50, 1 }
  0xd3   :  { %v326_v30 = vsel %vm323_vm8, %v325_v29, %v321_v27  ;;  %v330_v38 = vmul.f32 0.0, %v311_v21 }
  0xd4   :  { %v347_v42 = vmul.f32 0.0, %v326_v30 }
 0x12e   :  { %v333_v10 = vpop.permute.xlu0 %332 }
 0x12f   :  { %v335_v22 = vmul.f32 %v333_v10, %v311_v21 }
 0x131   :  { %337 = vrot.lane.b32.xlu1 %v335_v22, %s3506_s0 }
 0x136   :  { %v350_v32 = vpop.permute.xlu0 %349 }
 0x137   :  { %v352_v35 = vmul.f32 %v350_v32, %v326_v30 }
 0x139   :  { %354 = vrot.lane.b32.xlu1 %v352_v35, %s3506_s0 }
 0x13e   :  { %v3985_v47 = vpop.permute.xlu0 %368 }
 0x13f   :  { %vm5146_vm10 = vcmp.eq.s32.totalorder %v3985_v47, 1 }
 0x141   :  { %375 = vperm.xlu1 %3217, %v373_v36  }
 0x1a3   :  { %v338_v39 = vpop.permute.xlu1 %337 }
 0x1a4   :  { %v3977_v40 = vadd.f32 %v338_v39, %v330_v38 }
 0x1a6   :  { %3233 = vtanh.f32 %v3977_v40 }
 0x1ab   :  { %v355_v43 = vpop.permute.xlu1 %354 }
 0x1ac   :  { %v3234_v44 = vpop.eup %3233  ;;  %v3980_v45 = vadd.f32 %v355_v43, %v347_v42 }
 0x1ad   :  { %343 = vrot.lane.b32.xlu2 %v3234_v44, %s3504_s4 }
 0x1ae   :  { %3235 = vtanh.f32 %v3980_v45 }
 0x1b3   :  { %v3991_v53 = vpop.permute.xlu1 %375 }
 0x1b4   :  { %v3236_v46 = vpop.eup %3235  ;;  %vm5145_vm11 = vcmp.eq.s32.totalorder %v3991_v53, 1 }
 0x1b5   :  { %360 = vrot.lane.b32.xlu2 %v3236_v46, %s3504_s4 }
 0x207   :  { %v344_v48 = vpop.permute.xlu2 %343 }
 0x208   :  { %v346_v51 = vmul.f32 %v344_v48, %v311_v21 }
 0x20a   :  { %v371_v52 = vsel %vm5146_vm10, %v346_v51, 0.0 }
 0x20b   :  { %387 = vrot.lane.b32.xlu2 %v371_v52, %s3506_s0 }
 0x20f   :  { %v361_v54 = vpop.permute.xlu2 %360 }
 0x210   :  { %v363_v55 = vmul.f32 %v361_v54, %v326_v30 }
 0x212   :  { %v3996_v56 = vsel %vm5145_vm11, %v363_v55, 0.0 }
 0x213   :  { %391 = vrot.lane.b32.xlu1 %v3996_v56, %s3504_s4 }
 0x265   :  { %v4000_v57 = vpop.permute.xlu2 %387 }
 0x285   :  { %v4002_v58 = vpop.permute.xlu1 %391 }
 0x286   :  { %v395_v59 = vsel %vm394_vm12, %v4000_v57, %v4002_v58 }
 0x287   :  { %3146 = vmatmul.msk.f32.vlgmr.msrb.gmra.mxu2 %vm237_vm13, %v395_v59  ;;  %3147 = vmatmul.msk.f32.vlgmr.msrb.gmra.mxu3 %vm237_vm13, %v395_v59 }
 0x288   :  { %1117 = vmatpush.msrb.mxu2 %v3775_v2  ;;  %1137 = vmatpush.msrb.mxu3 %v3780_v3 }
 0x28a   :  { %1118 = vmatpush.msrb.mxu2 %v3785_v4  ;;  %1138 = vmatpush.msrb.mxu3 %v3790_v5 }
 0x28c   :  { %1119 = vmatpush.msrb.mxu2 %v3797_v6  ;;  %1139 = vmatpush.msrb.mxu3 %v3802_v7 }
 0x28e   :  { %1120 = vmatpush.msrb.mxu2 %v3811_v8  ;;  %1140 = vmatpush.msrb.mxu3 %v3834_v12 }
 0x290   :  { %1121 = vmatpush.msrb.mxu2 %v3826_v11  ;;  %1141 = vmatpush.msrb.mxu3 %v3845_v14 }
 0x292   :  { %1122 = vmatpush.msrb.mxu2 %v3839_v13  ;;  %1142 = vmatpush.msrb.mxu3 %v3858_v16 }
 0x294   :  { %1123 = vmatpush.msrb.mxu2 %v3851_v15  ;;  %1143 = vmatpush.msrb.mxu3 %v3872_v18 }
 0x296   :  { %1124 = vmatpush.msrb.mxu2 %v3865_v17  ;;  %1144 = vmatpush.msrb.mxu3 %v3881_v19 }
 0x30a   :  { %v416_v60 = vpop.f32.mrf.mxu2  ;;  %v436_v61 = vpop.f32.mrf.mxu3 }
 0x30b   :  { %v441_v63 = vrot.slane %v416_v60, 6  ;;  %v442_v0 = vrot.slane %v436_v61, 6 }
 0x30d   :  { %v445_v1 = vadd.f32 %v441_v63, %v3947_v31  ;;  %v446_v9 = vadd.f32 %v442_v0, %v381_v62 }
 0x30f   :  { %v447_v10 = vadd.f32 %v445_v1, %v3949_v33  ;;  %v448_v21 = vadd.f32 %v446_v9, %v3958_v41 }
 0x311   :  { %3237 = vtanh.f32 %v447_v10  ;;  %v3149_v24 = vmul.f32 -1.442695, %v448_v21  ;;  %v3148_v30 = vmul.f32 -1.442695, %v447_v10 }
 0x312   :  { %3239 = vtanh.f32 %v448_v21 }
 0x313   :  { %3241 = vpow2.f32 %v3149_v24  ;;  %v551_v24 = vsel %vm530_vm6, 1, %v3505_v49  ;;  %vm719_vm6 = vcmp.gt.s32.totalorder %v3968_v50, 5 }
 0x317   :  { %v3238_v22 = vpop.eup %3237 }
 0x318   :  { %v3240_v23 = vpop.eup %3239  ;;  %494 = vrot.lane.b32.xlu0 %v3238_v22, %s3504_s4 }
 0x319   :  { %514 = vrot.lane.b32.xlu2 %v3240_v23, %s3504_s4  ;;  %v3242_v26 = vpop.eup %3241 }
 0x31a   :  { %v456_v27 = vadd.f32 1.0, %v3242_v26  ;;  %v531_v26 = vsel %vm529_vm7, 1, %v3505_v49  ;;  %vm718_vm7 = vcmp.gt.s32.totalorder %v3968_v50, 2 }
 0x31c   :  { %3243 = vrcp.f32 %v456_v27  ;;  %v483_v43 = vand.u32 2147483648, %v456_v27  ;;  %vm477_vm15 = vweird.f32 %v456_v27  ;;  %v481_v44 = vand.u32 2147483647, %v456_v27 }
 0x31d   :  { %3245 = vpow2.f32 %v3148_v30 }
 0x31e   :  { %v484_v48 = vor.u32 1.1754944e-38, %v483_v43  ;;  %vm482_vm1 = vcmp.eq.f32.partialorder %v481_v44, 8.507059e+37 }
 0x322   :  { %v3244_v29 = vpop.eup %3243 }
 0x323   :  { %v473_v32 = vmul.f32 %v3244_v29, %v456_v27  ;;  %v3246_v36 = vpop.eup %3245  ;;  %vm478_vm14 = vweird.f32 %v3244_v29  ;;  %v372_v27 = vsel %vm5146_vm10, %v3977_v40, 0.0 }
 0x324   :  { %v455_v39 = vadd.f32 1.0, %v3246_v36  ;;  %vm479_vm0 = vmor %vm477_vm15, %vm478_vm14  ;;  %v490_v30 = vrot.slane %v372_v27, 6 }
 0x325   :  { %v474_v35 = vsub.f32 1.0, %v473_v32 }
 0x326   :  { %3247 = vrcp.f32 %v455_v39  ;;  %v468_v0 = vand.u32 2147483648, %v455_v39  ;;  %vm462_vm3 = vweird.f32 %v455_v39  ;;  %v466_v1 = vand.u32 2147483647, %v455_v39 }
 0x327   :  { %v475_v38 = vmul.f32 %v3244_v29, %v474_v35 }
 0x328   :  { %v469_v10 = vor.u32 1.1754944e-38, %v468_v0  ;;  %vm467_vm5 = vcmp.eq.f32.partialorder %v466_v1, 8.507059e+37 }
 0x329   :  { %v476_v42 = vadd.f32 %v3244_v29, %v475_v38 }
 0x32b   :  { %v480_v46 = vsel %vm479_vm0, %v3244_v29, %v476_v42  ;;  %v379_v29 = vsel %vm5145_vm11, %v3980_v45, 0.0 }
 0x32c   :  { %v485_v52 = vsel %vm482_vm1, %v484_v48, %v480_v46  ;;  %v3248_v54 = vpop.eup %3247  ;;  %v510_v32 = vrot.slane %v379_v29, 6 }
 0x32d   :  { %v458_v59 = vmul.f32 %v3248_v54, %v455_v39  ;;  %vm463_vm2 = vweird.f32 %v3248_v54 }
 0x32e   :  { %vm464_vm4 = vmor %vm462_vm3, %vm463_vm2  ;;  %v512_v36 = vmul.f32 %v510_v32, %v485_v52 }
 0x32f   :  { %v459_v60 = vsub.f32 1.0, %v458_v59 }
 0x331   :  { %v460_v61 = vmul.f32 %v3248_v54, %v459_v60 }
 0x333   :  { %v461_v63 = vadd.f32 %v3248_v54, %v460_v61 }
 0x335   :  { %v465_v9 = vsel %vm464_vm4, %v3248_v54, %v461_v63 }
 0x336   :  { %v470_v22 = vsel %vm467_vm5, %v469_v10, %v465_v9 }
 0x337   :  { %v492_v35 = vmul.f32 %v490_v30, %v470_v22 }
 0x373   :  { %v515_v51 = vpop.permute.xlu2 %514 }
 0x374   :  { %v517_v55 = vmul.f32 %v515_v51, %v485_v52 }
 0x376   :  { %519 = vrot.lane.b32.xlu1 %v517_v55, %s3506_s0 }
 0x38a   :  { %v495_v21 = vpop.permute.xlu0 %494 }
 0x38b   :  { %v497_v23 = vmul.f32 %v495_v21, %v470_v22 }
 0x38d   :  { %499 = vrot.lane.b32.xlu2 %v497_v23, %s3506_s0 }
 0x395   :  { %553 = vperm.xlu2 %3218, %v551_v24  }
 0x39d   :  { %533 = vperm.xlu2 %3218, %v531_v26  }
 0x3e7   :  { %v500_v38 = vpop.permute.xlu2 %499 }
 0x3e8   :  { %v520_v39 = vpop.permute.xlu1 %519  ;;  %v502_v42 = vadd.f32 %v500_v38, %v492_v35 }
 0x3e9   :  { %v522_v43 = vadd.f32 %v520_v39, %v512_v36 }
 0x3ea   :  { %3249 = vtanh.f32 %v502_v42  ;;  %v543_v45 = vrot.slane %v502_v42, 2 }
 0x3eb   :  { %3251 = vtanh.f32 %v522_v43  ;;  %v566_v44 = vrot.slane %v522_v43, 2 }
 0x3ed   :  { %567 = vrot.lane.b32.xlu2 %v566_v44, %s3507_s27 }
 0x3ef   :  { %v4055_v61 = vpop.permute.xlu2 %553 }
 0x3f0   :  { %v3250_v46 = vpop.eup %3249  ;;  %vm555_vm8 = vcmp.eq.s32.totalorder %v4055_v61, 1 }
 0x3f1   :  { %v3252_v40 = vpop.eup %3251  ;;  %505 = vrot.lane.b32.xlu1 %v3250_v46, %s3504_s4 }
 0x3f2   :  { %525 = vrot.lane.b32.xlu0 %v3252_v40, %s3504_s4 }
 0x3f5   :  { %544 = vrot.lane.b32.xlu2 %v543_v45, %s3507_s27 }
 0x3f7   :  { %v4067_v0 = vpop.permute.xlu2 %533 }
 0x3f8   :  { %vm535_vm9 = vcmp.eq.s32.totalorder %v4067_v0, 1 }
 0x3f9   :  { %561 = vrot.lane.b32.xlu1 %v3996_v56, %s3506_s0 }
 0x447   :  { %v568_v9 = vpop.permute.xlu2 %567 }
 0x44f   :  { %v545_v46 = vpop.permute.xlu2 %544 }
 0x463   :  { %v506_v55 = vpop.permute.xlu1 %505 }
 0x464   :  { %v526_v48 = vpop.permute.xlu0 %525  ;;  %v508_v59 = vmul.f32 %v506_v55, %v470_v22 }
 0x465   :  { %v528_v51 = vmul.f32 %v526_v48, %v485_v52 }
 0x466   :  { %v537_v60 = vrot.slane %v508_v59, 2 }
 0x467   :  { %v557_v54 = vrot.slane %v528_v51, 2 }
 0x469   :  { %558 = vrot.lane.b32.xlu0 %v557_v54, %s3506_s0 }
 0x46b   :  { %v562_v63 = vpop.permute.xlu1 %561 }
 0x471   :  { %538 = vrot.lane.b32.xlu0 %v537_v60, %s3506_s0 }
 0x479   :  { %570 = vrot.lane.b32.xlu0 %v379_v29, %s3507_s27 }
 0x481   :  { %547 = vrot.lane.b32.xlu0 %v372_v27, %s3507_s27 }
 0x4db   :  { %v4058_v56 = vpop.permute.xlu0 %558 }
 0x4dc   :  { %v4063_v52 = vsel %vm555_vm8, %v4058_v56, %v562_v63 }
 0x4dd   :  { %577 = vrot.lane.b32.xlu1 %v4063_v52, %s3506_s0 }
 0x4e3   :  { %v4069_v1 = vpop.permute.xlu0 %538 }
 0x4e4   :  { %v4082_v23 = vsel %vm535_vm9, %v4069_v1, %v4000_v57 }
 0x4eb   :  { %v571_v10 = vpop.permute.xlu0 %570 }
 0x4ec   :  { %v4073_v21 = vsel %vm555_vm8, %v568_v9, %v571_v10 }
 0x4ed   :  { %v697_v22 = vrot.slane %v4073_v21, 4 }
 0x4ef   :  { %698 = vrot.lane.b32.xlu2 %v697_v22, %s3506_s0 }
 0x4f3   :  { %v548_v44 = vpop.permute.xlu0 %547 }
 0x54f   :  { %v578_v24 = vpop.permute.xlu1 %577 }
 0x550   :  { %v580_v26 = vsel %vm394_vm12, %v4082_v23, %v578_v24 }
 0x551   :  { %3150 = vmatmul.msk.f32.vlgmr.msra.gmra.mxu0 %vm237_vm13, %v580_v26  ;;  %3151 = vmatmul.msk.f32.vlgmr.msra.gmra.mxu1 %vm237_vm13, %v580_v26 }
 0x552   :  { %1290 = vmatpush.msra.mxu0 %v3775_v2  ;;  %1310 = vmatpush.msra.mxu1 %v3780_v3 }
 0x554   :  { %1291 = vmatpush.msra.mxu0 %v3785_v4  ;;  %1311 = vmatpush.msra.mxu1 %v3790_v5 }
 0x556   :  { %1292 = vmatpush.msra.mxu0 %v3797_v6  ;;  %1312 = vmatpush.msra.mxu1 %v3802_v7 }
 0x558   :  { %1293 = vmatpush.msra.mxu0 %v3811_v8  ;;  %1313 = vmatpush.msra.mxu1 %v3834_v12 }
 0x55a   :  { %1294 = vmatpush.msra.mxu0 %v3826_v11  ;;  %1314 = vmatpush.msra.mxu1 %v3845_v14 }
 0x55c   :  { %1295 = vmatpush.msra.mxu0 %v3839_v13  ;;  %1315 = vmatpush.msra.mxu1 %v3858_v16 }
 0x55e   :  { %1296 = vmatpush.msra.mxu0 %v3851_v15  ;;  %1316 = vmatpush.msra.mxu1 %v3872_v18 }
 0x560   :  { %1297 = vmatpush.msra.mxu0 %v3865_v17  ;;  %1317 = vmatpush.msra.mxu1 %v3881_v19 }
 0x5ce   :  { %v621_v27 = vpop.f32.mrf.mxu1  ;;  %v601_v29 = vpop.f32.mrf.mxu0 }
 0x5cf   :  { %v627_v30 = vrot.slane %v621_v27, 4  ;;  %v626_v35 = vrot.slane %v601_v29, 4 }
 0x5d1   :  { %v631_v32 = vadd.f32 %v627_v30, %v232_v37  ;;  %v630_v38 = vadd.f32 %v626_v35, %v3947_v31  ;;  %v4113_v37 = vsel %vm535_vm9, %v545_v46, %v548_v44 }
 0x5d2   :  { %v675_v40 = vrot.slane %v4113_v37, 4 }
 0x5d3   :  { %v633_v36 = vadd.f32 %v631_v32, %v3958_v41  ;;  %v632_v39 = vadd.f32 %v630_v38, %v3949_v33 }
 0x5d5   :  { %3253 = vtanh.f32 %v633_v36  ;;  %v3153_v45 = vmul.f32 -1.442695, %v633_v36  ;;  %v3152_v48 = vmul.f32 -1.442695, %v632_v39 }
 0x5d6   :  { %3255 = vtanh.f32 %v632_v39 }
 0x5d7   :  { %3257 = vpow2.f32 %v3153_v45 }
 0x5d8   :  { %3259 = vpow2.f32 %v3152_v48 }
 0x5db   :  { %v3254_v42 = vpop.eup %3253 }
 0x5dc   :  { %703 = vrot.lane.b32.xlu1 %v3254_v42, %s3504_s4  ;;  %v3256_v43 = vpop.eup %3255 }
 0x5dd   :  { %v3258_v51 = vpop.eup %3257 }
 0x5de   :  { %v641_v54 = vadd.f32 1.0, %v3258_v51  ;;  %v3260_v55 = vpop.eup %3259 }
 0x5df   :  { %v640_v59 = vadd.f32 1.0, %v3260_v55  ;;  %v737_v55 = vsel %vm719_vm6, 1, %v3505_v49 }
 0x5e0   :  { %3261 = vrcp.f32 %v641_v54  ;;  %v668_v29 = vand.u32 2147483648, %v641_v54  ;;  %vm662_vm15 = vweird.f32 %v641_v54  ;;  %v666_v30 = vand.u32 2147483647, %v641_v54 }
 0x5e1   :  { %3263 = vrcp.f32 %v640_v59  ;;  %v653_v44 = vand.u32 2147483648, %v640_v59  ;;  %vm647_vm3 = vweird.f32 %v640_v59  ;;  %v651_v46 = vand.u32 2147483647, %v640_v59 }
 0x5e2   :  { %v669_v36 = vor.u32 1.1754944e-38, %v668_v29  ;;  %vm667_vm1 = vcmp.eq.f32.partialorder %v666_v30, 8.507059e+37 }
 0x5e3   :  { %v654_v45 = vor.u32 1.1754944e-38, %v653_v44  ;;  %vm652_vm5 = vcmp.eq.f32.partialorder %v651_v46, 8.507059e+37 }
 0x5e4   :  { %681 = vrot.lane.b32.xlu1 %v3256_v43, %s3504_s4 }
 0x5e6   :  { %v3262_v60 = vpop.eup %3261 }
 0x5e7   :  { %v658_v63 = vmul.f32 %v3262_v60, %v641_v54  ;;  %v3264_v10 = vpop.eup %3263  ;;  %vm663_vm14 = vweird.f32 %v3262_v60 }
 0x5e8   :  { %v643_v24 = vmul.f32 %v3264_v10, %v640_v59  ;;  %vm664_vm0 = vmor %vm662_vm15, %vm663_vm14  ;;  %vm648_vm2 = vweird.f32 %v3264_v10 }
 0x5e9   :  { %v659_v9 = vsub.f32 1.0, %v658_v63  ;;  %vm649_vm4 = vmor %vm647_vm3, %vm648_vm2 }
 0x5ea   :  { %v644_v27 = vsub.f32 1.0, %v643_v24 }
 0x5eb   :  { %v660_v22 = vmul.f32 %v3262_v60, %v659_v9 }
 0x5ec   :  { %676 = vrot.lane.b32.xlu1 %v675_v40, %s3506_s0  ;;  %v645_v35 = vmul.f32 %v3264_v10, %v644_v27 }
 0x5ed   :  { %v661_v26 = vadd.f32 %v3262_v60, %v660_v22 }
 0x5ee   :  { %v646_v43 = vadd.f32 %v3264_v10, %v645_v35 }
 0x5ef   :  { %v665_v32 = vsel %vm664_vm0, %v3262_v60, %v661_v26  ;;  %v699_v60 = vpop.permute.xlu2 %698  ;;  %v720_v26 = vsel %vm718_vm7, 1, %v3505_v49 }
 0x5f0   :  { %v670_v39 = vsel %vm667_vm1, %v669_v36, %v665_v32  ;;  %v650_v40 = vsel %vm649_vm4, %v3264_v10, %v646_v43 }
 0x5f1   :  { %v655_v51 = vsel %vm652_vm5, %v654_v45, %v650_v40  ;;  %v701_v10 = vmul.f32 %v699_v60, %v670_v39 }
 0x64e   :  { %v704_v38 = vpop.permute.xlu1 %703 }
 0x64f   :  { %v706_v42 = vmul.f32 %v704_v38, %v670_v39 }
 0x651   :  { %708 = vrot.lane.b32.xlu0 %v706_v42, %s3506_s0 }
 0x656   :  { %v682_v48 = vpop.permute.xlu1 %681 }
 0x657   :  { %v684_v54 = vmul.f32 %v682_v48, %v655_v51 }
 0x659   :  { %686 = vrot.lane.b32.xlu2 %v684_v54, %s3506_s0 }
 0x65e   :  { %v677_v63 = vpop.permute.xlu1 %676 }
 0x65f   :  { %v679_v9 = vmul.f32 %v677_v63, %v655_v51 }
 0x661   :  { %739 = vperm.xlu2 %3218, %v737_v55  }
 0x6b3   :  { %v687_v22 = vpop.permute.xlu2 %686 }
 0x6b4   :  { %v689_v24 = vadd.f32 %v687_v22, %v679_v9 }
 0x6b6   :  { %3265 = vtanh.f32 %v689_v24  ;;  %v732_v48 = vrot.slane %v689_v24, 4 }
 0x6bb   :  { %v4128_v46 = vpop.permute.xlu2 %739 }
 0x6bc   :  { %v3266_v59 = vpop.eup %3265  ;;  %vm741_vm14 = vcmp.eq.s32.totalorder %v4128_v46, 1 }
 0x6bd   :  { %692 = vrot.lane.b32.xlu1 %v3266_v59, %s3504_s4 }
 0x6c3   :  { %v709_v27 = vpop.permute.xlu0 %708 }
 0x6c4   :  { %v711_v29 = vadd.f32 %v709_v27, %v701_v10 }
 0x6c5   :  { %722 = vperm.xlu1 %3217, %v720_v26  }
 0x6c6   :  { %3267 = vtanh.f32 %v711_v29  ;;  %v749_v30 = vrot.slane %v711_v29, 4 }
 0x6cc   :  { %v3268_v32 = vpop.eup %3267 }
 0x6cd   :  { %714 = vrot.lane.b32.xlu0 %v3268_v32, %s3504_s4  ;;  %750 = vrot.lane.b32.xlu1 %v749_v30, %s3507_s27 }
 0x72f   :  { %v693_v35 = vpop.permute.xlu1 %692 }
 0x730   :  { %v695_v36 = vmul.f32 %v693_v35, %v655_v51 }
 0x732   :  { %v726_v38 = vrot.slane %v695_v36, 4 }
 0x734   :  { %727 = vrot.lane.b32.xlu2 %v726_v38, %s3506_s0 }
 0x73f   :  { %v715_v42 = vpop.permute.xlu0 %714 }
 0x740   :  { %v717_v43 = vmul.f32 %v715_v42, %v670_v39  ;;  %v4142_v39 = vpop.permute.xlu1 %722 }
 0x741   :  { %vm724_vm15 = vcmp.eq.s32.totalorder %v4142_v39, 1 }
 0x742   :  { %v743_v44 = vrot.slane %v717_v43, 4 }
 0x744   :  { %744 = vrot.lane.b32.xlu0 %v743_v44, %s3506_s0 }
 0x78e   :  { %v4144_v51 = vpop.permute.xlu2 %727 }
 0x78f   :  { %v4151_v54 = vsel %vm724_vm15, %v4144_v51, %v4082_v23 }
 0x7b6   :  { %v4131_v40 = vpop.permute.xlu0 %744 }
 0x7b7   :  { %v4137_v45 = vsel %vm741_vm14, %v4131_v40, %v4063_v52 }
 0x7b8   :  { %757 = vrot.lane.b32.xlu0 %v4137_v45, %s3506_s0 }
 0x7c0   :  { %733 = vrot.lane.b32.xlu0 %v732_v48, %s3507_s27 }
 0x82a   :  { %v758_v52 = vpop.permute.xlu0 %757 }
 0x82b   :  { %v760_v55 = vsel %vm394_vm12, %v4151_v54, %v758_v52 }
 0x82c   :  { %3154 = vmatmul.msk.f32.vlgmr.msra.gmra.mxu2 %vm237_vm13, %v760_v55  ;;  %3155 = vmatmul.msk.f32.vlgmr.msra.gmra.mxu3 %vm237_vm13, %v760_v55 }
 0x82d   :  { %1458 = vmatpush.msra.mxu2 %v3775_v2  ;;  %1478 = vmatpush.msra.mxu3 %v3780_v3 }
 0x82f   :  { %1459 = vmatpush.msra.mxu2 %v3785_v4  ;;  %1479 = vmatpush.msra.mxu3 %v3790_v5 }
 0x831   :  { %1460 = vmatpush.msra.mxu2 %v3797_v6  ;;  %1480 = vmatpush.msra.mxu3 %v3802_v7 }
 0x833   :  { %1461 = vmatpush.msra.mxu2 %v3811_v8  ;;  %1481 = vmatpush.msra.mxu3 %v3834_v12 }
 0x835   :  { %1462 = vmatpush.msra.mxu2 %v3826_v11  ;;  %1482 = vmatpush.msra.mxu3 %v3845_v14  ;;  %v734_v14 = vpop.permute.xlu0 %733 }
 0x837   :  { %1463 = vmatpush.msra.mxu2 %v3839_v13  ;;  %1483 = vmatpush.msra.mxu3 %v3858_v16  ;;  %v4183_v16 = vsel %vm724_vm15, %v734_v14, %v4113_v37 }
 0x839   :  { %1464 = vmatpush.msra.mxu2 %v3851_v15  ;;  %1484 = vmatpush.msra.mxu3 %v3872_v18  ;;  %v751_v15 = vpop.permute.xlu1 %750  ;;  %v855_v18 = vrot.slane %v4183_v16, 2 }
 0x83b   :  { %1465 = vmatpush.msra.mxu2 %v3865_v17  ;;  %1485 = vmatpush.msra.mxu3 %v3881_v19  ;;  %v4188_v17 = vsel %vm741_vm14, %v751_v15, %v4073_v21 }
 0x83c   :  { %v877_v19 = vrot.slane %v4188_v17, 2 }
 0x8af   :  { %v781_v2 = vpop.f32.mrf.mxu2  ;;  %v801_v3 = vpop.f32.mrf.mxu3 }
 0x8b0   :  { %v806_v4 = vrot.slane %v781_v2, 2  ;;  %v807_v5 = vrot.slane %v801_v3, 2 }
 0x8b2   :  { %v810_v6 = vadd.f32 %v806_v4, %v3947_v31  ;;  %v811_v7 = vadd.f32 %v807_v5, %v381_v62 }
 0x8b4   :  { %v812_v8 = vadd.f32 %v810_v6, %v3949_v33  ;;  %v813_v11 = vadd.f32 %v811_v7, %v3958_v41 }
 0x8b6   :  { %3269 = vtanh.f32 %v812_v8  ;;  %v3157_v31 = vmul.f32 -1.442695, %v813_v11  ;;  %v3156_v37 = vmul.f32 -1.442695, %v812_v8 }
 0x8b7   :  { %3271 = vtanh.f32 %v813_v11 }
 0x8b8   :  { %3273 = vpow2.f32 %v3157_v31 }
 0x8bc   :  { %v3270_v12 = vpop.eup %3269 }
 0x8bd   :  { %v3272_v13 = vpop.eup %3271  ;;  %861 = vrot.lane.b32.xlu1 %v3270_v12, %s3504_s4 }
 0x8be   :  { %883 = vrot.lane.b32.xlu2 %v3272_v13, %s3504_s4  ;;  %v3274_v34 = vpop.eup %3273 }
 0x8bf   :  { %v821_v62 = vadd.f32 1.0, %v3274_v34 }
 0x8c1   :  { %3275 = vrcp.f32 %v821_v62  ;;  %v848_v59 = vand.u32 2147483648, %v821_v62  ;;  %vm842_vm1 = vweird.f32 %v821_v62  ;;  %v846_v10 = vand.u32 2147483647, %v821_v62 }
 0x8c2   :  { %3277 = vpow2.f32 %v3156_v37 }
 0x8c3   :  { %v849_v27 = vor.u32 1.1754944e-38, %v848_v59  ;;  %vm847_vm3 = vcmp.eq.f32.partialorder %v846_v10, 8.507059e+37 }
 0x8c5   :  { %856 = vrot.lane.b32.xlu1 %v855_v18, %s3506_s0 }
 0x8c6   :  { %878 = vrot.lane.b32.xlu2 %v877_v19, %s3506_s0 }
 0x8c7   :  { %v3276_v23 = vpop.eup %3275 }
 0x8c8   :  { %v838_v60 = vmul.f32 %v3276_v23, %v821_v62  ;;  %v3278_v21 = vpop.eup %3277  ;;  %vm843_vm0 = vweird.f32 %v3276_v23 }
 0x8c9   :  { %v820_v22 = vadd.f32 1.0, %v3278_v21  ;;  %vm844_vm2 = vmor %vm842_vm1, %vm843_vm0  ;;  %vm899_vm0 = vcmp.gt.s32.totalorder %v3968_v50, 4  ;;  %vm898_vm1 = vcmp.gt.s32.totalorder %v3968_v50, 3 }
 0x8ca   :  { %v839_v63 = vsub.f32 1.0, %v838_v60  ;;  %v917_v5 = vsel %vm899_vm0, 1, %v3505_v49  ;;  %v900_v31 = vsel %vm898_vm1, 1, %v3505_v49 }
 0x8cb   :  { %3279 = vrcp.f32 %v820_v22  ;;  %v833_v44 = vand.u32 2147483648, %v820_v22  ;;  %vm827_vm5 = vweird.f32 %v820_v22  ;;  %v831_v48 = vand.u32 2147483647, %v820_v22 }
 0x8cc   :  { %v840_v9 = vmul.f32 %v3276_v23, %v839_v63 }
 0x8cd   :  { %v834_v55 = vor.u32 1.1754944e-38, %v833_v44  ;;  %vm832_vm7 = vcmp.eq.f32.partialorder %v831_v48, 8.507059e+37 }
 0x8ce   :  { %v841_v24 = vadd.f32 %v3276_v23, %v840_v9 }
 0x8d0   :  { %v845_v26 = vsel %vm844_vm2, %v3276_v23, %v841_v24 }
 0x8d1   :  { %v850_v30 = vsel %vm847_vm3, %v849_v27, %v845_v26  ;;  %v3280_v32 = vpop.eup %3279 }
 0x8d2   :  { %v823_v36 = vmul.f32 %v3280_v32, %v820_v22  ;;  %vm828_vm4 = vweird.f32 %v3280_v32 }
 0x8d3   :  { %vm829_vm6 = vmor %vm827_vm5, %vm828_vm4 }
 0x8d4   :  { %v824_v38 = vsub.f32 1.0, %v823_v36 }
 0x8d6   :  { %v825_v42 = vmul.f32 %v3280_v32, %v824_v38 }
 0x8d8   :  { %v826_v43 = vadd.f32 %v3280_v32, %v825_v42 }
 0x8da   :  { %v830_v52 = vsel %vm829_vm6, %v3280_v32, %v826_v43 }
 0x8db   :  { %v835_v2 = vsel %vm832_vm7, %v834_v55, %v830_v52 }
 0x918   :  { %v884_v29 = vpop.permute.xlu2 %883 }
 0x919   :  { %v886_v35 = vmul.f32 %v884_v29, %v850_v30 }
 0x91b   :  { %888 = vrot.lane.b32.xlu0 %v886_v35, %s3506_s0 }
 0x920   :  { %v879_v6 = vpop.permute.xlu2 %878 }
 0x921   :  { %v881_v11 = vmul.f32 %v879_v6, %v850_v30 }
 0x92f   :  { %v862_v3 = vpop.permute.xlu1 %861 }
 0x930   :  { %v864_v4 = vmul.f32 %v862_v3, %v835_v2 }
 0x932   :  { %866 = vrot.lane.b32.xlu2 %v864_v4, %s3506_s0 }
 0x937   :  { %v857_v7 = vpop.permute.xlu1 %856 }
 0x938   :  { %v859_v8 = vmul.f32 %v857_v7, %v835_v2 }
 0x93a   :  { %919 = vperm.xlu2 %3218, %v917_v5  }
 0x98c   :  { %v867_v12 = vpop.permute.xlu2 %866 }
 0x98d   :  { %v889_v13 = vpop.permute.xlu0 %888  ;;  %v869_v14 = vadd.f32 %v867_v12, %v859_v8 }
 0x98e   :  { %v891_v15 = vadd.f32 %v889_v13, %v881_v11 }
 0x98f   :  { %3281 = vtanh.f32 %v869_v14  ;;  %v912_v34 = vrot.slane %v869_v14, 6 }
 0x990   :  { %3283 = vtanh.f32 %v891_v15  ;;  %v929_v22 = vrot.slane %v891_v15, 6 }
 0x994   :  { %v4213_v24 = vpop.permute.xlu2 %919 }
 0x995   :  { %v3282_v18 = vpop.eup %3281  ;;  %vm921_vm3 = vcmp.eq.s32.totalorder %v4213_v24, 1 }
 0x996   :  { %v3284_v19 = vpop.eup %3283  ;;  %872 = vrot.lane.b32.xlu1 %v3282_v18, %s3504_s4 }
 0x997   :  { %894 = vrot.lane.b32.xlu0 %v3284_v19, %s3504_s4 }
 0x99e   :  { %902 = vperm.xlu1 %3217, %v900_v31  }
 0x9a6   :  { %913 = vrot.lane.b32.xlu1 %v912_v34, %s3507_s27 }
 0xa08   :  { %v873_v62 = vpop.permute.xlu1 %872 }
 0xa09   :  { %v895_v23 = vpop.permute.xlu0 %894  ;;  %v875_v37 = vmul.f32 %v873_v62, %v835_v2 }
 0xa0a   :  { %v897_v60 = vmul.f32 %v895_v23, %v850_v30 }
 0xa0b   :  { %v906_v63 = vrot.slane %v875_v37, 6 }
 0xa0c   :  { %v923_v21 = vrot.slane %v897_v60, 6 }
 0xa0d   :  { %907 = vrot.lane.b32.xlu2 %v906_v63, %s3506_s0 }
 0xa0e   :  { %924 = vrot.lane.b32.xlu0 %v923_v21, %s3506_s0 }
 0xa10   :  { %v4205_v9 = vpop.permute.xlu1 %902 }
 0xa11   :  { %vm904_vm2 = vcmp.eq.s32.totalorder %v4205_v9, 1 }
 0xa15   :  { %930 = vrot.lane.b32.xlu2 %v929_v22, %s3507_s27 }
 0xa18   :  { %v914_v49 = vpop.permute.xlu1 %913 }
 0xa19   :  { %v916_v50 = vsel %vm904_vm2, %v914_v49, %v4183_v16 }
 0xa1d   :  { %1037 = vrot.lane.b32.xlu2 %v916_v50, %s3506_s0 }
 0xa67   :  { %v4226_v26 = vpop.permute.xlu2 %907 }
 0xa68   :  { %v4232_v16 = vsel %vm904_vm2, %v4226_v26, %v4151_v54 }
 0xa6f   :  { %v931_v44 = vpop.permute.xlu2 %930 }
 0xa70   :  { %v933_v48 = vsel %vm921_vm3, %v931_v44, %v4188_v17 }
 0xa80   :  { %v4216_v59 = vpop.permute.xlu0 %924 }
 0xa81   :  { %v4222_v10 = vsel %vm921_vm3, %v4216_v59, %v4137_v45  ;;  %v939_v45 = vrot.slane %v3940_v25, 6 }
 0xa82   :  { %945 = vrot.lane.b32.xlu0 %v4222_v10, %s3506_s0 }
 0xaf4   :  { %v946_v27 = vpop.permute.xlu0 %945 }
 0xaf5   :  { %v948_v29 = vsel %vm394_vm12, %v4232_v16, %v946_v27 }
 0xaf6   :  { %3158 = vmatmul.msk.f32.vlgmr.msrb.gmra.mxu0 %vm237_vm13, %v948_v29  ;;  %3159 = vmatmul.msk.f32.vlgmr.msrb.gmra.mxu1 %vm237_vm13, %v948_v29 }
 0xb73   :  { %v969_v30 = vpop.f32.mrf.mxu0  ;;  %v989_v32 = vpop.f32.mrf.mxu1 }
 0xb74   :  { %v992_v35 = vadd.f32 %v969_v30, %v3942_v28  ;;  %v993_v36 = vadd.f32 %v989_v32, %v939_v45  ;;  %v4254_v30 = vpop.permute.xlu2 %1037 }
 0xb76   :  { %v994_v54 = vadd.f32 %v992_v35, %v3949_v33  ;;  %v995_v38 = vadd.f32 %v993_v36, %v3958_v41 }
 0xb78   :  { %3285 = vtanh.f32 %v994_v54  ;;  %v3160_v52 = vmul.f32 -1.442695, %v994_v54  ;;  %v3161_v55 = vmul.f32 -1.442695, %v995_v38 }
 0xb79   :  { %3287 = vtanh.f32 %v995_v38 }
 0xb7a   :  { %3289 = vpow2.f32 %v3160_v52 }
 0xb7b   :  { %3291 = vpow2.f32 %v3161_v55 }
 0xb7e   :  { %v3286_v42 = vpop.eup %3285 }
 0xb7f   :  { %v3288_v43 = vpop.eup %3287  ;;  %1042 = vrot.lane.b32.xlu0 %v3286_v42, %s3504_s4 }
 0xb80   :  { %1063 = vrot.lane.b32.xlu1 %v3288_v43, %s3504_s4  ;;  %v3290_v2 = vpop.eup %3289 }
 0xb81   :  { %v3292_v3 = vpop.eup %3291  ;;  %v1002_v4 = vadd.f32 1.0, %v3290_v2 }
 0xb82   :  { %v1003_v5 = vadd.f32 1.0, %v3292_v3 }
 0xb83   :  { %3293 = vrcp.f32 %v1002_v4  ;;  %v1015_v18 = vand.u32 2147483648, %v1002_v4  ;;  %vm1009_vm6 = vweird.f32 %v1002_v4  ;;  %v1013_v31 = vand.u32 2147483647, %v1002_v4 }
 0xb84   :  { %3295 = vrcp.f32 %v1003_v5  ;;  %v1030_v34 = vand.u32 2147483648, %v1003_v5  ;;  %vm1024_vm0 = vweird.f32 %v1003_v5  ;;  %v1028_v62 = vand.u32 2147483647, %v1003_v5 }
 0xb85   :  { %v1016_v37 = vor.u32 1.1754944e-38, %v1015_v18  ;;  %vm1014_vm11 = vcmp.eq.f32.partialorder %v1013_v31, 8.507059e+37 }
 0xb86   :  { %v1031_v63 = vor.u32 1.1754944e-38, %v1030_v34  ;;  %vm1029_vm10 = vcmp.eq.f32.partialorder %v1028_v62, 8.507059e+37 }
 0xb87   :  { %1058 = vrot.lane.b32.xlu0 %v933_v48, %s3506_s0 }
 0xb89   :  { %v3294_v6 = vpop.eup %3293 }
 0xb8a   :  { %v3296_v7 = vpop.eup %3295  ;;  %v1005_v8 = vmul.f32 %v3294_v6, %v1002_v4  ;;  %vm1010_vm4 = vweird.f32 %v3294_v6 }
 0xb8b   :  { %v1020_v11 = vmul.f32 %v3296_v7, %v1003_v5  ;;  %vm1025_vm5 = vweird.f32 %v3296_v7  ;;  %vm1011_vm7 = vmor %vm1009_vm6, %vm1010_vm4 }
 0xb8c   :  { %v1006_v12 = vsub.f32 1.0, %v1005_v8  ;;  %vm1026_vm1 = vmor %vm1024_vm0, %vm1025_vm5 }
 0xb8d   :  { %v1021_v13 = vsub.f32 1.0, %v1020_v11 }
 0xb8e   :  { %v1007_v14 = vmul.f32 %v3294_v6, %v1006_v12 }
 0xb8f   :  { %v1022_v17 = vmul.f32 %v3296_v7, %v1021_v13  ;;  %v1092_v13 = vrot.slane %v3940_v25, 2 }
 0xb90   :  { %v1008_v15 = vadd.f32 %v3294_v6, %v1007_v14 }
 0xb91   :  { %v1023_v19 = vadd.f32 %v3296_v7, %v1022_v17 }
 0xb92   :  { %v1012_v23 = vsel %vm1011_vm7, %v3294_v6, %v1008_v15 }
 0xb93   :  { %v1027_v60 = vsel %vm1026_vm1, %v3296_v7, %v1023_v19  ;;  %v1017_v22 = vsel %vm1014_vm11, %v1016_v37, %v1012_v23 }
 0xb94   :  { %v1032_v50 = vsel %vm1029_vm10, %v1031_v63, %v1027_v60  ;;  %v1040_v42 = vmul.f32 %v4254_v30, %v1017_v22 }
 0xbf1   :  { %v1043_v21 = vpop.permute.xlu0 %1042 }
 0xbf2   :  { %v1045_v49 = vmul.f32 %v1043_v21, %v1017_v22  ;;  %v1064_v27 = vpop.permute.xlu1 %1063 }
 0xbf3   :  { %v1066_v29 = vmul.f32 %v1064_v27, %v1032_v50 }
 0xbf4   :  { %1047 = vrot.lane.b32.xlu1 %v1045_v49, %s3506_s0 }
 0xbf5   :  { %1068 = vrot.lane.b32.xlu2 %v1066_v29, %s3506_s0 }
 0xbf9   :  { %v4256_v32 = vpop.permute.xlu0 %1058 }
 0xbfa   :  { %v1061_v35 = vmul.f32 %v4256_v32, %v1032_v50 }
 0xbfd   :  { %1079 = vrot.lane.b32.xlu2 %v4232_v16, %s3507_s27 }
 0xc4f   :  { %v1069_v36 = vpop.permute.xlu2 %1068 }
 0xc50   :  { %v4259_v54 = vadd.f32 %v1069_v36, %v1061_v35 }
 0xc52   :  { %3297 = vtanh.f32 %v4259_v54 }
 0xc57   :  { %v1080_v55 = vpop.permute.xlu2 %1079 }
 0xc58   :  { %v3298_v38 = vpop.eup %3297 }
 0xc59   :  { %1074 = vrot.lane.b32.xlu1 %v3298_v38, %s3504_s4 }
 0xc66   :  { %v1048_v43 = vpop.permute.xlu1 %1047 }
 0xc67   :  { %v4264_v44 = vadd.f32 %v1048_v43, %v1040_v42 }
 0xc69   :  { %3299 = vtanh.f32 %v4264_v44 }
 0xc6f   :  { %v3300_v16 = vpop.eup %3299 }
 0xc70   :  { %1053 = vrot.lane.b32.xlu0 %v3300_v16, %s3504_s4 }
 0xc78   :  { %1084 = vrot.lane.b32.xlu0 %v4222_v10, %s3507_s27 }
 0xccb   :  { %v1075_v3 = vpop.permute.xlu1 %1074 }
 0xccc   :  { %v4276_v4 = vmul.f32 %v1075_v3, %v1032_v50 }
 0xce2   :  { %v1054_v48 = vpop.permute.xlu0 %1053 }
 0xce3   :  { %v4270_v52 = vmul.f32 %v1054_v48, %v1017_v22 }
 0xce5   :  { %v1082_v2 = vsel %vm921_vm3, %v4270_v52, %v1080_v55 }
 0xce6   :  { %1098 = vrot.lane.b32.xlu1 %v1082_v2, %s3506_s0 }
 0xcea   :  { %v1085_v5 = vpop.permute.xlu0 %1084 }
 0xceb   :  { %v4281_v6 = vsel %vm904_vm2, %v4276_v4, %v1085_v5 }
 0xcec   :  { %1102 = vrot.lane.b32.xlu2 %v4281_v6, %s3504_s4 }
 0xd46   :  { %v1103_v10 = vpop.permute.xlu2 %1102 }
 0xd58   :  { %v4285_v7 = vpop.permute.xlu1 %1098 }
 0xd59   :  { %v1105_v8 = vsel %vm394_vm12, %v4285_v7, %v1103_v10 }
 0xd5a   :  { %3162 = vmatmul.msk.f32.vlgmr.msrb.gmra.mxu2 %vm237_vm13, %v1105_v8  ;;  %3163 = vmatmul.msk.f32.vlgmr.msrb.gmra.mxu3 %vm237_vm13, %v1105_v8 }
 0xddd   :  { %v1126_v11 = vpop.f32.mrf.mxu2  ;;  %v1146_v12 = vpop.f32.mrf.mxu3 }
 0xdde   :  { %v1151_v14 = vrot.slane %v1126_v11, 6  ;;  %v1152_v17 = vrot.slane %v1146_v12, 6 }
 0xde0   :  { %v1155_v15 = vadd.f32 %v1151_v14, %v3942_v28  ;;  %v1156_v18 = vadd.f32 %v1152_v17, %v1092_v13 }
 0xde2   :  { %v1157_v19 = vadd.f32 %v1155_v15, %v3949_v33  ;;  %v1158_v31 = vadd.f32 %v1156_v18, %v3958_v41 }
 0xde4   :  { %3301 = vtanh.f32 %v1157_v19  ;;  %v3164_v23 = vmul.f32 -1.442695, %v1157_v19  ;;  %v3165_v37 = vmul.f32 -1.442695, %v1158_v31 }
 0xde5   :  { %3303 = vtanh.f32 %v1158_v31  ;;  %v1088_v31 = vsel %vm904_vm2, %v4259_v54, %v4256_v32 }
 0xde6   :  { %3305 = vpow2.f32 %v3164_v23 }
 0xde7   :  { %3307 = vpow2.f32 %v3165_v37 }
 0xdea   :  { %v3302_v34 = vpop.eup %3301 }
 0xdeb   :  { %v3304_v62 = vpop.eup %3303  ;;  %1204 = vrot.lane.b32.xlu1 %v3302_v34, %s3504_s4  ;;  %v1220_v34 = vrot.slane %v1088_v31, 6 }
 0xdec   :  { %1224 = vrot.lane.b32.xlu0 %v3304_v62, %s3504_s4  ;;  %v3306_v60 = vpop.eup %3305 }
 0xded   :  { %v3308_v63 = vpop.eup %3307  ;;  %v1165_v21 = vadd.f32 1.0, %v3306_v60 }
 0xdee   :  { %v1166_v22 = vadd.f32 1.0, %v3308_v63  ;;  %v1083_v63 = vsel %vm921_vm3, %v4264_v44, %v4254_v30 }
 0xdef   :  { %3309 = vrcp.f32 %v1165_v21  ;;  %v1178_v48 = vand.u32 2147483648, %v1165_v21  ;;  %vm1172_vm4 = vweird.f32 %v1165_v21  ;;  %v1176_v2 = vand.u32 2147483647, %v1165_v21 }
 0xdf0   :  { %3311 = vrcp.f32 %v1166_v22  ;;  %v1193_v55 = vand.u32 2147483648, %v1166_v22  ;;  %vm1187_vm5 = vweird.f32 %v1166_v22  ;;  %v1191_v3 = vand.u32 2147483647, %v1166_v22 }
 0xdf1   :  { %v1179_v8 = vor.u32 1.1754944e-38, %v1178_v48  ;;  %vm1177_vm0 = vcmp.eq.f32.partialorder %v1176_v2, 8.507059e+37 }
 0xdf2   :  { %v1194_v11 = vor.u32 1.1754944e-38, %v1193_v55  ;;  %vm1192_vm1 = vcmp.eq.f32.partialorder %v1191_v3, 8.507059e+37 }
 0xdf5   :  { %v3310_v49 = vpop.eup %3309 }
 0xdf6   :  { %v3312_v50 = vpop.eup %3311  ;;  %v1168_v27 = vmul.f32 %v3310_v49, %v1165_v21  ;;  %vm1173_vm10 = vweird.f32 %v3310_v49  ;;  %v1200_v21 = vrot.slane %v1083_v63, 6 }
 0xdf7   :  { %v1183_v29 = vmul.f32 %v3312_v50, %v1166_v22  ;;  %vm1188_vm11 = vweird.f32 %v3312_v50  ;;  %vm1174_vm6 = vmor %vm1172_vm4, %vm1173_vm10 }
 0xdf8   :  { %v1169_v35 = vsub.f32 1.0, %v1168_v27  ;;  %vm1189_vm7 = vmor %vm1187_vm5, %vm1188_vm11 }
 0xdf9   :  { %v1184_v36 = vsub.f32 1.0, %v1183_v29 }
 0xdfa   :  { %v1170_v38 = vmul.f32 %v3310_v49, %v1169_v35 }
 0xdfb   :  { %v1185_v42 = vmul.f32 %v3312_v50, %v1184_v36 }
 0xdfc   :  { %v1171_v43 = vadd.f32 %v3310_v49, %v1170_v38 }
 0xdfd   :  { %v1186_v16 = vadd.f32 %v3312_v50, %v1185_v42 }
 0xdfe   :  { %v1175_v5 = vsel %vm1174_vm6, %v3310_v49, %v1171_v43 }
 0xdff   :  { %v1190_v10 = vsel %vm1189_vm7, %v3312_v50, %v1186_v16  ;;  %v1180_v14 = vsel %vm1177_vm0, %v1179_v8, %v1175_v5 }
 0xe00   :  { %v1195_v15 = vsel %vm1192_vm1, %v1194_v11, %v1190_v10  ;;  %v1202_v22 = vmul.f32 %v1200_v21, %v1180_v14 }
 0xe01   :  { %v1222_v62 = vmul.f32 %v1220_v34, %v1195_v15 }
 0xe5d   :  { %v1205_v12 = vpop.permute.xlu1 %1204 }
 0xe5e   :  { %v1225_v17 = vpop.permute.xlu0 %1224  ;;  %v1207_v18 = vmul.f32 %v1205_v12, %v1180_v14 }
 0xe5f   :  { %v1227_v19 = vmul.f32 %v1225_v17, %v1195_v15 }
 0xe60   :  { %1209 = vrot.lane.b32.xlu0 %v1207_v18, %s3506_s0 }
 0xe61   :  { %1229 = vrot.lane.b32.xlu2 %v1227_v19, %s3506_s0 }
 0xebb   :  { %v1230_v23 = vpop.permute.xlu2 %1229 }
 0xebc   :  { %v1232_v37 = vadd.f32 %v1230_v23, %v1222_v62 }
 0xebe   :  { %3313 = vtanh.f32 %v1232_v37  ;;  %v1264_v32 = vrot.slane %v1232_v37, 2 }
 0xec4   :  { %v3314_v60 = vpop.eup %3313 }
 0xec5   :  { %1235 = vrot.lane.b32.xlu1 %v3314_v60, %s3504_s4 }
 0xecd   :  { %1259 = vrot.lane.b32.xlu1 %v4281_v6, %s3506_s0 }
 0xed2   :  { %v1210_v49 = vpop.permute.xlu0 %1209 }
 0xed3   :  { %v1212_v54 = vadd.f32 %v1210_v49, %v1202_v22 }
 0xed5   :  { %3315 = vtanh.f32 %v1212_v54  ;;  %1265 = vrot.lane.b32.xlu1 %v1264_v32, %s3507_s27  ;;  %v1246_v27 = vrot.slane %v1212_v54, 2 }
 0xedb   :  { %v3316_v50 = vpop.eup %3315 }
 0xedc   :  { %1215 = vrot.lane.b32.xlu2 %v3316_v50, %s3504_s4 }
 0xedd   :  { %1247 = vrot.lane.b32.xlu1 %v1246_v27, %s3507_s27 }
 0xf36   :  { %v1216_v29 = vpop.permute.xlu2 %1215 }
 0xf37   :  { %v1236_v35 = vpop.permute.xlu1 %1235  ;;  %v1218_v30 = vmul.f32 %v1216_v29, %v1180_v14 }
 0xf38   :  { %v1238_v44 = vmul.f32 %v1236_v35, %v1195_v15 }
 0xf39   :  { %v1240_v36 = vrot.slane %v1218_v30, 2 }
 0xf3a   :  { %v1255_v6 = vrot.slane %v1238_v44, 2 }
 0xf3b   :  { %1241 = vrot.lane.b32.xlu2 %v1240_v36, %s3506_s0 }
 0xf3c   :  { %1256 = vrot.lane.b32.xlu0 %v1255_v6, %s3506_s0 }
 0xf3f   :  { %v1260_v38 = vpop.permute.xlu1 %1259 }
 0xf43   :  { %1268 = vrot.lane.b32.xlu2 %v1088_v31, %s3507_s27 }
 0xf47   :  { %v1266_v43 = vpop.permute.xlu1 %1265 }
 0xf4b   :  { %1250 = vrot.lane.b32.xlu2 %v1083_v63, %s3507_s27 }
 0xf4f   :  { %v1248_v23 = vpop.permute.xlu1 %1247 }
 0xf95   :  { %v4319_v42 = vpop.permute.xlu2 %1241 }
 0xf96   :  { %v4340_v5 = vsel %vm741_vm14, %v4319_v42, %v4285_v7 }
 0xf9d   :  { %v1269_v16 = vpop.permute.xlu2 %1268 }
 0xf9e   :  { %v4323_v48 = vsel %vm724_vm15, %v1266_v43, %v1269_v16 }
 0xf9f   :  { %v1395_v55 = vrot.slane %v4323_v48, 4 }
 0xfa1   :  { %1396 = vrot.lane.b32.xlu1 %v1395_v55, %s3506_s0 }
 0xfa5   :  { %v1251_v62 = vpop.permute.xlu2 %1250 }
 0xfae   :  { %v4327_v2 = vpop.permute.xlu0 %1256 }
 0xfaf   :  { %v4332_v3 = vsel %vm724_vm15, %v4327_v2, %v1260_v38 }
 0xfb0   :  { %1275 = vrot.lane.b32.xlu0 %v4332_v3, %s3506_s0 }
0x1022   :  { %v1276_v10 = vpop.permute.xlu0 %1275 }
0x1023   :  { %v1278_v8 = vsel %vm394_vm12, %v4340_v5, %v1276_v10 }
0x1024   :  { %3166 = vmatmul.msk.f32.vlgmr.msra.gmra.mxu0 %vm237_vm13, %v1278_v8  ;;  %3167 = vmatmul.msk.f32.vlgmr.msra.gmra.mxu1 %vm237_vm13, %v1278_v8 }
0x10a1   :  { %v1319_v11 = vpop.f32.mrf.mxu1  ;;  %v1299_v12 = vpop.f32.mrf.mxu0 }
0x10a2   :  { %v1325_v14 = vrot.slane %v1319_v11, 4  ;;  %v1324_v15 = vrot.slane %v1299_v12, 4 }
0x10a4   :  { %v1329_v17 = vadd.f32 %v1325_v14, %v939_v45  ;;  %v1328_v7 = vadd.f32 %v1324_v15, %v3942_v28  ;;  %v4355_v45 = vsel %vm741_vm14, %v1248_v23, %v1251_v62 }
0x10a5   :  { %v1373_v37 = vrot.slane %v4355_v45, 4 }
0x10a6   :  { %v1331_v18 = vadd.f32 %v1329_v17, %v3958_v41  ;;  %v1330_v19 = vadd.f32 %v1328_v7, %v3949_v33 }
0x10a8   :  { %3317 = vtanh.f32 %v1331_v18  ;;  %v3169_v60 = vmul.f32 -1.442695, %v1331_v18  ;;  %v3168_v63 = vmul.f32 -1.442695, %v1330_v19 }
0x10a9   :  { %3319 = vtanh.f32 %v1330_v19 }
0x10aa   :  { %3321 = vpow2.f32 %v3169_v60 }
0x10ab   :  { %3323 = vpow2.f32 %v3168_v63 }
0x10ae   :  { %v3318_v31 = vpop.eup %3317 }
0x10af   :  { %1401 = vrot.lane.b32.xlu0 %v3318_v31, %s3504_s4  ;;  %v3320_v34 = vpop.eup %3319 }
0x10b0   :  { %v3322_v21 = vpop.eup %3321 }
0x10b1   :  { %v1339_v22 = vadd.f32 1.0, %v3322_v21  ;;  %v3324_v49 = vpop.eup %3323 }
0x10b2   :  { %v1338_v32 = vadd.f32 1.0, %v3324_v49 }
0x10b3   :  { %3325 = vrcp.f32 %v1339_v22  ;;  %v1366_v6 = vand.u32 2147483648, %v1339_v22  ;;  %vm1360_vm11 = vweird.f32 %v1339_v22  ;;  %v1364_v38 = vand.u32 2147483647, %v1339_v22 }
0x10b4   :  { %3327 = vrcp.f32 %v1338_v32  ;;  %v1351_v14 = vand.u32 2147483648, %v1338_v32  ;;  %vm1345_vm7 = vweird.f32 %v1338_v32  ;;  %v1349_v17 = vand.u32 2147483647, %v1338_v32 }
0x10b5   :  { %v1367_v55 = vor.u32 1.1754944e-38, %v1366_v6  ;;  %vm1365_vm5 = vcmp.eq.f32.partialorder %v1364_v38, 8.507059e+37 }
0x10b6   :  { %v1352_v18 = vor.u32 1.1754944e-38, %v1351_v14  ;;  %vm1350_vm1 = vcmp.eq.f32.partialorder %v1349_v17, 8.507059e+37 }
0x10b7   :  { %1379 = vrot.lane.b32.xlu0 %v3320_v34, %s3504_s4  ;;  %v1397_v34 = vpop.permute.xlu1 %1396 }
0x10b9   :  { %v3326_v54 = vpop.eup %3325 }
0x10ba   :  { %v1356_v50 = vmul.f32 %v3326_v54, %v1339_v22  ;;  %v3328_v29 = vpop.eup %3327  ;;  %vm1361_vm10 = vweird.f32 %v3326_v54 }
0x10bb   :  { %v1341_v30 = vmul.f32 %v3328_v29, %v1338_v32  ;;  %vm1362_vm4 = vmor %vm1360_vm11, %vm1361_vm10  ;;  %vm1346_vm6 = vweird.f32 %v3328_v29 }
0x10bc   :  { %v1357_v27 = vsub.f32 1.0, %v1356_v50  ;;  %vm1347_vm0 = vmor %vm1345_vm7, %vm1346_vm6 }
0x10bd   :  { %v1342_v36 = vsub.f32 1.0, %v1341_v30 }
0x10be   :  { %v1358_v35 = vmul.f32 %v3326_v54, %v1357_v27 }
0x10bf   :  { %1374 = vrot.lane.b32.xlu0 %v1373_v37, %s3506_s0  ;;  %v1343_v16 = vmul.f32 %v3328_v29, %v1342_v36 }
0x10c0   :  { %v1359_v44 = vadd.f32 %v3326_v54, %v1358_v35 }
0x10c1   :  { %v1344_v12 = vadd.f32 %v3328_v29, %v1343_v16 }
0x10c2   :  { %v1363_v43 = vsel %vm1362_vm4, %v3326_v54, %v1359_v44 }
0x10c3   :  { %v1368_v8 = vsel %vm1365_vm5, %v1367_v55, %v1363_v43  ;;  %v1348_v15 = vsel %vm1347_vm0, %v3328_v29, %v1344_v12 }
0x10c4   :  { %v1353_v19 = vsel %vm1350_vm1, %v1352_v18, %v1348_v15  ;;  %v1399_v62 = vmul.f32 %v1397_v34, %v1368_v8 }
0x1121   :  { %v1402_v10 = vpop.permute.xlu0 %1401 }
0x1122   :  { %v1404_v11 = vmul.f32 %v1402_v10, %v1368_v8 }
0x1124   :  { %1406 = vrot.lane.b32.xlu2 %v1404_v11, %s3506_s0 }
0x1129   :  { %v1380_v7 = vpop.permute.xlu0 %1379 }
0x112a   :  { %v1382_v31 = vmul.f32 %v1380_v7, %v1353_v19 }
0x112c   :  { %1384 = vrot.lane.b32.xlu1 %v1382_v31, %s3506_s0 }
0x1131   :  { %v1375_v63 = vpop.permute.xlu0 %1374 }
0x1132   :  { %v1377_v21 = vmul.f32 %v1375_v63, %v1353_v19 }
0x117e   :  { %v1407_v23 = vpop.permute.xlu2 %1406 }
0x117f   :  { %v1409_v37 = vadd.f32 %v1407_v23, %v1399_v62 }
0x1181   :  { %3329 = vtanh.f32 %v1409_v37  ;;  %v1435_v29 = vrot.slane %v1409_v37, 4 }
0x1187   :  { %v3330_v60 = vpop.eup %3329 }
0x1188   :  { %1412 = vrot.lane.b32.xlu2 %v3330_v60, %s3504_s4 }
0x119e   :  { %v1385_v22 = vpop.permute.xlu1 %1384 }
0x119f   :  { %v1387_v49 = vadd.f32 %v1385_v22, %v1377_v21 }
0x11a1   :  { %3331 = vtanh.f32 %v1387_v49  ;;  %v1423_v31 = vrot.slane %v1387_v49, 4 }
0x11a7   :  { %v3332_v32 = vpop.eup %3331 }
0x11a8   :  { %1390 = vrot.lane.b32.xlu0 %v3332_v32, %s3504_s4 }
0x11e2   :  { %v1413_v54 = vpop.permute.xlu2 %1412 }
0x11e3   :  { %v1415_v50 = vmul.f32 %v1413_v54, %v1368_v8 }
0x11e5   :  { %v1429_v27 = vrot.slane %v1415_v50, 4 }
0x11e7   :  { %1430 = vrot.lane.b32.xlu1 %v1429_v27, %s3506_s0 }
0x11ef   :  { %1436 = vrot.lane.b32.xlu1 %v1435_v29, %s3507_s27 }
0x121a   :  { %v1391_v35 = vpop.permute.xlu0 %1390 }
0x121b   :  { %v1393_v30 = vmul.f32 %v1391_v35, %v1353_v19 }
0x121d   :  { %v1417_v44 = vrot.slane %v1393_v30, 4 }
0x121f   :  { %1418 = vrot.lane.b32.xlu2 %v1417_v44, %s3506_s0 }
0x1259   :  { %v4366_v36 = vpop.permute.xlu1 %1430 }
0x125a   :  { %v1433_v6 = vsel %vm535_vm9, %v4366_v36, %v4332_v3 }
0x125b   :  { %1443 = vrot.lane.b32.xlu0 %v1433_v6, %s3506_s0 }
0x1261   :  { %v1437_v38 = vpop.permute.xlu1 %1436 }
0x1262   :  { %v1439_v43 = vsel %vm535_vm9, %v1437_v38, %v4323_v48 }
0x1263   :  { %v1563_v16 = vrot.slane %v1439_v43, 2 }
0x1265   :  { %1564 = vrot.lane.b32.xlu0 %v1563_v16, %s3506_s0 }
0x1279   :  { %v4377_v55 = vpop.permute.xlu2 %1418 }
0x127a   :  { %v1421_v10 = vsel %vm555_vm8, %v4377_v55, %v4340_v5 }
0x12cd   :  { %v1444_v8 = vpop.permute.xlu0 %1443 }
0x12ce   :  { %v1446_v3 = vsel %vm394_vm12, %v1421_v10, %v1444_v8 }
0x12cf   :  { %3170 = vmatmul.msk.f32.vlgmr.msra.gmra.mxu2 %vm237_vm13, %v1446_v3  ;;  %3171 = vmatmul.msk.f32.vlgmr.msra.gmra.mxu3 %vm237_vm13, %v1446_v3 }
0x12d7   :  { %v1565_v16 = vpop.permute.xlu0 %1564 }
0x1352   :  { %v1467_v11 = vpop.f32.mrf.mxu2  ;;  %v1487_v12 = vpop.f32.mrf.mxu3 }
0x1353   :  { %v1492_v48 = vrot.slane %v1467_v11, 2  ;;  %v1493_v14 = vrot.slane %v1487_v12, 2 }
0x1355   :  { %v1496_v17 = vadd.f32 %v1492_v48, %v3942_v28  ;;  %v1497_v15 = vadd.f32 %v1493_v14, %v1092_v13 }
0x1357   :  { %v1498_v18 = vadd.f32 %v1496_v17, %v3949_v33  ;;  %v1499_v5 = vadd.f32 %v1497_v15, %v3958_v41 }
0x1359   :  { %3333 = vtanh.f32 %v1498_v18  ;;  %v3173_v34 = vmul.f32 -1.442695, %v1499_v5  ;;  %v3172_v33 = vmul.f32 -1.442695, %v1498_v18 }
0x135a   :  { %3335 = vtanh.f32 %v1499_v5 }
0x135b   :  { %3337 = vpow2.f32 %v3173_v34 }
0x135f   :  { %v3334_v7 = vpop.eup %3333 }
0x1360   :  { %v3336_v19 = vpop.eup %3335  ;;  %1547 = vrot.lane.b32.xlu0 %v3334_v7, %s3504_s4 }
0x1361   :  { %1569 = vrot.lane.b32.xlu2 %v3336_v19, %s3504_s4  ;;  %v3338_v28 = vpop.eup %3337 }
0x1362   :  { %v1507_v25 = vadd.f32 1.0, %v3338_v28  ;;  %v1441_v28 = vsel %vm535_vm9, %v4366_v36, 0.0 }
0x1364   :  { %3339 = vrcp.f32 %v1507_v25  ;;  %v1534_v21 = vand.u32 2147483648, %v1507_v25  ;;  %vm1528_vm11 = vweird.f32 %v1507_v25  ;;  %v1532_v22 = vand.u32 2147483647, %v1507_v25 }
0x1365   :  { %3341 = vpow2.f32 %v3172_v33  ;;  %v575_v33 = vsel %vm555_vm8, %v4058_v56, 0.0  ;;  %v755_v56 = vsel %vm741_vm14, %v4131_v40, 0.0  ;;  %v1677_v40 = vld [vmem:[%s5137_s5 + $0x70] sm:$0xff] }
0x1366   :  { %v1535_v32 = vor.u32 1.1754944e-38, %v1534_v21  ;;  %vm1533_vm5 = vcmp.eq.f32.partialorder %v1532_v22, 8.507059e+37  ;;  %v4431_v21 = vld [vmem:[%s5138_s6 + $0x70] sm:$0xff]  ;;  %1693 = vmatpush.msrb.mxu0 %v1677_v40 }
0x1367   :  { %1764 = vmatpush.msrb.mxu2 %v4431_v21  ;;  %v4448_v22 = vld [vmem:[%s5138_s6 + $0x50] sm:$0xff] }
0x1369   :  { %1424 = vrot.lane.b32.xlu2 %v1423_v31, %s3507_s27 }
0x136a   :  { %v3340_v13 = vpop.eup %3339 }
0x136b   :  { %v1524_v62 = vmul.f32 %v3340_v13, %v1507_v25  ;;  %v3342_v23 = vpop.eup %3341  ;;  %vm1529_vm10 = vweird.f32 %v3340_v13 }
0x136c   :  { %v1506_v60 = vadd.f32 1.0, %v3342_v23  ;;  %vm1530_vm4 = vmor %vm1528_vm11, %vm1529_vm10  ;;  %vm5147_vm10 = vcmp.eq.s32.totalorder %v3985_v47, 1  ;;  %vm1654_vm11 = vcmask 1041408  }
0x136d   :  { %v1525_v41 = vsub.f32 1.0, %v1524_v62 }
0x136e   :  { %3343 = vrcp.f32 %v1506_v60  ;;  %v1519_v8 = vand.u32 2147483648, %v1506_v60  ;;  %vm1513_vm7 = vweird.f32 %v1506_v60  ;;  %v1517_v3 = vand.u32 2147483647, %v1506_v60 }
0x136f   :  { %v1526_v37 = vmul.f32 %v3340_v13, %v1525_v41 }
0x1370   :  { %v1520_v12 = vor.u32 1.1754944e-38, %v1519_v8  ;;  %vm1518_vm1 = vcmp.eq.f32.partialorder %v1517_v3, 8.507059e+37  ;;  %v1670_v8 = vld [vmem:[%s5137_s5 + $0x38] sm:$0xff] }
0x1371   :  { %v1527_v63 = vadd.f32 %v3340_v13, %v1526_v37 }
0x1373   :  { %v1531_v49 = vsel %vm1530_vm4, %v3340_v13, %v1527_v63  ;;  %v1090_v13 = vsel %vm904_vm2, %v4276_v4, 0.0  ;;  %v1273_v4 = vsel %vm724_vm15, %v4327_v2, 0.0  ;;  %v1089_v63 = vsel %vm921_vm3, %v4270_v52, 0.0  ;;  %v4436_v2 = vld [vmem:[%s5138_s6 + $0x60] sm:$0xff]  ;;  %v1678_v52 = vld [vmem:[%s5137_s5 + $0x78] sm:$0xff] }
0x1374   :  { %v1536_v50 = vsel %vm1533_vm5, %v1535_v32, %v1531_v49  ;;  %v3344_v27 = vpop.eup %3343  ;;  %1716 = vmatpush.msrb.mxu1 %v1678_v52  ;;  %v1675_v49 = vld [vmem:[%s5137_s5 + $0x60] sm:$0xff]  ;;  %v1676_v32 = vld [vmem:[%s5137_s5 + $0x68] sm:$0xff]  ;;  %1765 = vmatpush.msrb.mxu2 %v4436_v2  ;;  %vm1656_vm4 = vcmask 1043456   ;;  %vm1658_vm5 = vcmask 1045504  }
0x1375   :  { %v1509_v35 = vmul.f32 %v3344_v27, %v1506_v60  ;;  %vm1514_vm6 = vweird.f32 %v3344_v27  ;;  %1694 = vmatpush.msrb.mxu0 %v1675_v49  ;;  %v1272_v49 = vsel %vm741_vm14, %v4319_v42, 0.0 }
0x1376   :  { %vm1515_vm0 = vmor %vm1513_vm7, %vm1514_vm6  ;;  %1717 = vmatpush.msrb.mxu1 %v1676_v32  ;;  %1766 = vmatpush.msrb.mxu2 %v4448_v22  ;;  %vm5148_vm6 = vcmp.eq.s32.totalorder %v3991_v53, 1 }
0x1377   :  { %v1510_v44 = vsub.f32 1.0, %v1509_v35  ;;  %v1671_v35 = vld [vmem:[%s5137_s5 + $0x40] sm:$0xff] }
0x1379   :  { %v1511_v43 = vmul.f32 %v3344_v27, %v1510_v44  ;;  %v4484_v44 = vld [vmem:[%s5138_s6 + $0x68] sm:$0xff] }
0x137b   :  { %v1512_v10 = vadd.f32 %v3344_v27, %v1511_v43  ;;  %v1669_v43 = vld [vmem:[%s5137_s5 + $0x30] sm:$0xff] }
0x137d   :  { %v1516_v11 = vsel %vm1515_vm0, %v3344_v27, %v1512_v10  ;;  %v4466_v27 = vld [vmem:[%s5138_s6 + $0x40] sm:$0xff] }
0x137e   :  { %v1521_v14 = vsel %vm1518_vm1, %v1520_v12, %v1516_v11  ;;  %1767 = vmatpush.msrb.mxu2 %v4466_v27  ;;  %v4504_v10 = vld [vmem:[%s5138_s6 + $0x20] sm:$0xff]  ;;  %v4519_v12 = vld [vmem:[%s5138_s6 + $0x48] sm:$0xff] }
0x137f   :  { %v1667_v11 = vld [vmem:[%s5137_s5 + $0x20] sm:$0xff] }
0x13bb   :  { %v1570_v54 = vpop.permute.xlu2 %1569 }
0x13bc   :  { %v1572_v29 = vmul.f32 %v1570_v54, %v1536_v50  ;;  %v1673_v54 = vld [vmem:[%s5137_s5 + $0x50] sm:$0xff] }
0x13bd   :  { %1695 = vmatpush.msrb.mxu0 %v1673_v54 }
0x13be   :  { %1574 = vrot.lane.b32.xlu1 %v1572_v29, %s3506_s0  ;;  %v4471_v29 = vld [vmem:[%s5138_s6 + $0x78] sm:$0xff] }
0x13bf   :  { %1784 = vmatpush.msrb.mxu3 %v4471_v29  ;;  %1696 = vmatpush.msrb.mxu0 %v1671_v35 }
0x13c1   :  { %1785 = vmatpush.msrb.mxu3 %v4484_v44  ;;  %1697 = vmatpush.msrb.mxu0 %v1669_v43 }
0x13c3   :  { %v1425_v30 = vpop.permute.xlu2 %1424  ;;  %1698 = vmatpush.msrb.mxu0 %v1667_v11 }
0x13c4   :  { %v1427_v6 = vsel %vm555_vm8, %v1425_v30, %v4355_v45  ;;  %v1567_v45 = vmul.f32 %v1565_v16, %v1536_v50  ;;  %v1672_v30 = vld [vmem:[%s5137_s5 + $0x48] sm:$0xff] }
0x13c5   :  { %v1541_v38 = vrot.slane %v1427_v6, 2  ;;  %v4489_v6 = vld [vmem:[%s5138_s6 + $0x30] sm:$0xff] }
0x13c6   :  { %1768 = vmatpush.msrb.mxu2 %v4489_v6 }
0x13c7   :  { %1542 = vrot.lane.b32.xlu1 %v1541_v38, %s3506_s0  ;;  %v4494_v38 = vld [vmem:[%s5138_s6 + $0x58] sm:$0xff] }
0x13c8   :  { %1786 = vmatpush.msrb.mxu3 %v4494_v38  ;;  %1769 = vmatpush.msrb.mxu2 %v4504_v10 }
0x13ca   :  { %1787 = vmatpush.msrb.mxu3 %v4519_v12 }
0x13d2   :  { %v1548_v48 = vpop.permute.xlu0 %1547 }
0x13d3   :  { %v1550_v17 = vmul.f32 %v1548_v48, %v1521_v14  ;;  %v4525_v48 = vld [vmem:[%s5138_s6 + $0x10] sm:$0xff] }
0x13d4   :  { %1770 = vmatpush.msrb.mxu2 %v4525_v48 }
0x13d5   :  { %1552 = vrot.lane.b32.xlu2 %v1550_v17, %s3506_s0  ;;  %v4534_v17 = vld [vmem:[%s5138_s6] sm:$0xff] }
0x13d6   :  { %1771 = vmatpush.msrb.mxu2 %v4534_v17 }
0x13d7   :  { %1772 = vmatmul.f32.vlgmr.msrb.gmra.mxu2 %v3503_v20 }
0x13d8   :  { %2080 = vmatpush.msra.mxu2 %v4431_v21 }
0x13da   :  { %2081 = vmatpush.msra.mxu2 %v4436_v2 }
0x13dc   :  { %2082 = vmatpush.msra.mxu2 %v4448_v22 }
0x13de   :  { %2083 = vmatpush.msra.mxu2 %v4466_v27 }
0x13e0   :  { %2084 = vmatpush.msra.mxu2 %v4489_v6 }
0x13e2   :  { %2085 = vmatpush.msra.mxu2 %v4504_v10 }
0x13e4   :  { %2086 = vmatpush.msra.mxu2 %v4525_v48 }
0x13e6   :  { %2087 = vmatpush.msra.mxu2 %v4534_v17 }
0x13e8   :  { %2420 = vmatpush.msrb.mxu2 %v4431_v21 }
0x13ea   :  { %2421 = vmatpush.msrb.mxu2 %v4436_v2 }
0x13ec   :  { %2422 = vmatpush.msrb.mxu2 %v4448_v22 }
0x13ee   :  { %2423 = vmatpush.msrb.mxu2 %v4466_v27 }
0x13f0   :  { %2424 = vmatpush.msrb.mxu2 %v4489_v6 }
0x13f2   :  { %2425 = vmatpush.msrb.mxu2 %v4504_v10 }
0x13f4   :  { %2426 = vmatpush.msrb.mxu2 %v4525_v48 }
0x13f6   :  { %2427 = vmatpush.msrb.mxu2 %v4534_v17 }
0x142f   :  { %v1553_v31 = vpop.permute.xlu2 %1552 }
0x1430   :  { %v1575_v15 = vpop.permute.xlu1 %1574 }
0x1431   :  { %v1577_v18 = vadd.f32 %v1575_v15, %v1567_v45  ;;  %v935_v45 = vsel %vm921_vm3, %v4216_v59, 0.0  ;;  %v1665_v59 = vld [vmem:[%s5137_s5 + $0x10] sm:$0xff]  ;;  %v1666_v15 = vld [vmem:[%s5137_s5 + $0x18] sm:$0xff] }
0x1432   :  { %1699 = vmatpush.msrb.mxu0 %v1665_v59 }
0x1433   :  { %3345 = vtanh.f32 %v1577_v18  ;;  %v4569_v18 = vld [vmem:[%s5138_s6 + $0x38] sm:$0xff] }
0x1434   :  { %1788 = vmatpush.msrb.mxu3 %v4569_v18 }
0x1439   :  { %v3346_v5 = vpop.eup %3345  ;;  %v1543_v7 = vpop.permute.xlu1 %1542 }
0x143a   :  { %v1545_v19 = vmul.f32 %v1543_v7, %v1521_v14  ;;  %1580 = vrot.lane.b32.xlu0 %v3346_v5, %s3504_s4  ;;  %v1663_v5 = vld [vmem:[%s5137_s5] sm:$0xff]  ;;  %v1664_v7 = vld [vmem:[%s5137_s5 + $0x8] sm:$0xff] }
0x143b   :  { %1700 = vmatpush.msrb.mxu0 %v1663_v5 }
0x143c   :  { %v1555_v34 = vadd.f32 %v1553_v31, %v1545_v19  ;;  %v4581_v19 = vld [vmem:[%s5138_s6 + $0x28] sm:$0xff]  ;;  %v4587_v31 = vld [vmem:[%s5138_s6 + $0x18] sm:$0xff] }
0x143d   :  { %1789 = vmatpush.msrb.mxu3 %v4581_v19  ;;  %1909 = vmatpush.msra.mxu0 %v4431_v21 }
0x143e   :  { %3347 = vtanh.f32 %v1555_v34  ;;  %v4593_v34 = vld [vmem:[%s5138_s6 + $0x8] sm:$0xff] }
0x143f   :  { %1790 = vmatpush.msrb.mxu3 %v4587_v31  ;;  %1910 = vmatpush.msra.mxu0 %v4436_v2 }
0x1441   :  { %1791 = vmatpush.msrb.mxu3 %v4593_v34  ;;  %1911 = vmatpush.msra.mxu0 %v4448_v22 }
0x1442   :  { %1602 = vrot.lane.b32.xlu0 %v1441_v28, %s3506_s0  ;;  %1792 = vmatmul.f32.vlgmr.msrb.gmra.mxu3 %v3503_v20 }
0x1443   :  { %2100 = vmatpush.msra.mxu3 %v4471_v29  ;;  %1912 = vmatpush.msra.mxu0 %v4466_v27 }
0x1444   :  { %v3348_v25 = vpop.eup %3347 }
0x1445   :  { %1558 = vrot.lane.b32.xlu2 %v3348_v25, %s3504_s4  ;;  %2101 = vmatpush.msra.mxu3 %v4484_v44 }
0x1446   :  { %1913 = vmatpush.msra.mxu0 %v4489_v6 }
0x1447   :  { %2102 = vmatpush.msra.mxu3 %v4494_v38 }
0x1448   :  { %1914 = vmatpush.msra.mxu0 %v4504_v10 }
0x1449   :  { %2103 = vmatpush.msra.mxu3 %v4519_v12 }
0x144a   :  { %1612 = vrot.lane.b32.xlu0 %v1090_v13, %s3504_s4  ;;  %1915 = vmatpush.msra.mxu0 %v4525_v48 }
0x144b   :  { %2104 = vmatpush.msra.mxu3 %v4569_v18 }
0x144c   :  { %1916 = vmatpush.msra.mxu0 %v4534_v17 }
0x144d   :  { %2105 = vmatpush.msra.mxu3 %v4581_v19 }
0x144f   :  { %2106 = vmatpush.msra.mxu3 %v4587_v31 }
0x1451   :  { %2107 = vmatpush.msra.mxu3 %v4593_v34 }
0x1452   :  { %1631 = vrot.lane.b32.xlu0 %v575_v33, %s3506_s0  ;;  %v574_v33 = vsel %vm535_vm9, %v4069_v1, 0.0 }
0x1453   :  { %2440 = vmatpush.msrb.mxu3 %v4471_v29 }
0x1455   :  { %2441 = vmatpush.msrb.mxu3 %v4484_v44 }
0x1457   :  { %2442 = vmatpush.msrb.mxu3 %v4494_v38 }
0x1459   :  { %2443 = vmatpush.msrb.mxu3 %v4519_v12 }
0x145a   :  { %v1773_v59 = vpop.f32.mrf.mxu2 }
0x145b   :  { %2444 = vmatpush.msrb.mxu3 %v4569_v18 }
0x145d   :  { %2445 = vmatpush.msrb.mxu3 %v4581_v19 }
0x145f   :  { %2446 = vmatpush.msrb.mxu3 %v4587_v31 }
0x1461   :  { %2447 = vmatpush.msrb.mxu3 %v4593_v34 }
0x149f   :  { %v1559_v62 = vpop.permute.xlu2 %1558 }
0x14a0   :  { %v1561_v41 = vmul.f32 %v1559_v62, %v1521_v14  ;;  %v1668_v14 = vld [vmem:[%s5137_s5 + $0x28] sm:$0xff]  ;;  %v754_v62 = vsel %vm724_vm15, %v4144_v51, 0.0 }
0x14a2   :  { %v1585_v36 = vrot.slane %v1561_v41, 6 }
0x14a4   :  { %1586 = vrot.lane.b32.xlu2 %v1585_v36, %s3506_s0  ;;  %v934_v36 = vsel %vm904_vm2, %v4226_v26, 0.0 }
0x14ac   :  { %v1581_v23 = vpop.permute.xlu0 %1580 }
0x14ad   :  { %v1583_v37 = vmul.f32 %v1581_v23, %v1536_v50  ;;  %v1674_v50 = vld [vmem:[%s5137_s5 + $0x58] sm:$0xff] }
0x14ae   :  { %1718 = vmatpush.msrb.mxu1 %v1674_v50 }
0x14af   :  { %v1591_v60 = vrot.slane %v1583_v37, 6 }
0x14b0   :  { %1719 = vmatpush.msrb.mxu1 %v1672_v30 }
0x14b1   :  { %1592 = vrot.lane.b32.xlu1 %v1591_v60, %s3506_s0 }
0x14b2   :  { %1720 = vmatpush.msrb.mxu1 %v1670_v8 }
0x14b4   :  { %1721 = vmatpush.msrb.mxu1 %v1668_v14  ;;  %v1603_v28 = vpop.permute.xlu0 %1602 }
0x14b5   :  { %v1605_v41 = vsel %vm394_vm12, %v574_v33, %v1603_v28 }
0x14b6   :  { %1722 = vmatpush.msrb.mxu1 %v1666_v15  ;;  %v1637_v1 = vrot.slane %v1605_v41, 6 }
0x14b8   :  { %1723 = vmatpush.msrb.mxu1 %v1664_v7 }
0x14b9   :  { %1607 = vrot.lane.b32.xlu1 %v1273_v4, %s3506_s0 }
0x14ba   :  { %1929 = vmatpush.msra.mxu1 %v4471_v29 }
0x14bc   :  { %1930 = vmatpush.msra.mxu1 %v4484_v44  ;;  %v1613_v13 = vpop.permute.xlu0 %1612 }
0x14bd   :  { %v1615_v60 = vsel %vm394_vm12, %v934_v36, %v1613_v13 }
0x14be   :  { %1931 = vmatpush.msra.mxu1 %v4494_v38 }
0x14c0   :  { %1932 = vmatpush.msra.mxu1 %v4519_v12 }
0x14c1   :  { %1626 = vrot.lane.b32.xlu1 %v755_v56, %s3506_s0 }
0x14c2   :  { %1933 = vmatpush.msra.mxu1 %v4569_v18 }
0x14c4   :  { %1934 = vmatpush.msra.mxu1 %v4581_v19  ;;  %v1632_v40 = vpop.permute.xlu0 %1631 }
0x14c5   :  { %v1793_v13 = vpop.f32.mrf.mxu3 }
0x14c6   :  { %1935 = vmatpush.msra.mxu1 %v4587_v31 }
0x14c8   :  { %1936 = vmatpush.msra.mxu1 %v4593_v34 }
0x14c9   :  { %1617 = vrot.lane.b32.xlu1 %v1089_v63, %s3506_s0  ;;  %v1643_v63 = vrot.slane %v1615_v60, 2 }
0x14fe   :  { %v1587_v25 = vpop.permute.xlu2 %1586 }
0x14ff   :  { %v1589_v32 = vsel %vm5148_vm6, %v1587_v25, 0.0 }
0x1500   :  { %v1635_v42 = vsel %vm394_vm12, %v1589_v32, %v4002_v58 }
0x1523   :  { %v1593_v16 = vpop.permute.xlu1 %1592 }
0x1524   :  { %v1595_v3 = vsel %vm5147_vm10, %v1593_v16, 0.0 }
0x1525   :  { %1597 = vrot.lane.b32.xlu2 %v1595_v3, %s3506_s0  ;;  %v1652_v3 = vrot.slane %v1635_v42, 2 }
0x152b   :  { %v1608_v20 = vpop.permute.xlu1 %1607 }
0x152c   :  { %v1610_v23 = vsel %vm394_vm12, %v754_v62, %v1608_v20 }
0x152d   :  { %1621 = vrot.lane.b32.xlu2 %v935_v45, %s3506_s0  ;;  %v1640_v51 = vrot.slane %v1610_v23, 4  ;;  %v1747_v45 = vld [vmem:[%s5139_s7] sm:$0x3] }
0x152e   :  { %v4685_v15 = vperm.slane %v1747_v45, 0  ;;  %v4696_v62 = vperm.slane %v1747_v45, 1 }
0x1533   :  { %v1627_v37 = vpop.permute.xlu1 %1626 }
0x1534   :  { %v1629_v50 = vsel %vm394_vm12, %v1272_v49, %v1627_v37 }
0x1535   :  { %v1646_v30 = vrot.slane %v1629_v50, 6 }
0x153b   :  { %v1618_v43 = vpop.permute.xlu1 %1617 }
0x157f   :  { %v1598_v4 = vpop.permute.xlu2 %1597 }
0x1580   :  { %v1600_v56 = vsel %vm394_vm12, %v4000_v57, %v1598_v4  ;;  %v1440_v57 = vsel %vm555_vm8, %v4377_v55, 0.0 }
0x1581   :  { %v1655_v26 = vsel %vm1654_vm11, %v1600_v56, %v1637_v1  ;;  %v1634_v35 = vsel %vm394_vm12, %v1440_v57, %v1632_v40 }
0x1582   :  { %v1657_v52 = vsel %vm1656_vm4, %v1655_v26, %v1640_v51  ;;  %v1649_v16 = vrot.slane %v1634_v35, 4 }
0x1583   :  { %v1659_v54 = vsel %vm1658_vm5, %v1657_v52, %v1643_v63 }
0x1584   :  { %3174 = vmatmul.msk.f32.vlgmr.msrb.gmra.mxu0 %vm237_vm13, %v1659_v54  ;;  %3176 = vmatmul.msk.f32.vlgmr.msrb.gmra.mxu1 %vm237_vm13, %v1659_v54 }
0x1585   :  { %2246 = vmatpush.msrb.mxu0 %v4431_v21  ;;  %2266 = vmatpush.msrb.mxu1 %v4471_v29 }
0x1587   :  { %v1622_v55 = vpop.permute.xlu2 %1621  ;;  %2247 = vmatpush.msrb.mxu0 %v4436_v2  ;;  %2267 = vmatpush.msrb.mxu1 %v4484_v44 }
0x1588   :  { %v1624_v8 = vsel %vm394_vm12, %v1618_v43, %v1622_v55 }
0x1589   :  { %v1660_v11 = vsel %vm1654_vm11, %v1624_v8, %v1646_v30  ;;  %2248 = vmatpush.msrb.mxu0 %v4448_v22  ;;  %2268 = vmatpush.msrb.mxu1 %v4494_v38 }
0x158a   :  { %v1661_v58 = vsel %vm1656_vm4, %v1660_v11, %v1649_v16 }
0x158b   :  { %v1662_v14 = vsel %vm1658_vm5, %v1661_v58, %v1652_v3  ;;  %2249 = vmatpush.msrb.mxu0 %v4466_v27  ;;  %2269 = vmatpush.msrb.mxu1 %v4519_v12 }
0x158c   :  { %3175 = vmatmul.msk.f32.gmra.mxu0 %vm237_vm13, %v1662_v14  ;;  %3177 = vmatmul.msk.f32.gmra.mxu1 %vm237_vm13, %v1662_v14 }
0x158d   :  { %2250 = vmatpush.msrb.mxu0 %v4489_v6  ;;  %2270 = vmatpush.msrb.mxu1 %v4569_v18 }
0x158f   :  { %2251 = vmatpush.msrb.mxu0 %v4504_v10  ;;  %2271 = vmatpush.msrb.mxu1 %v4581_v19 }
0x1591   :  { %2252 = vmatpush.msrb.mxu0 %v4525_v48  ;;  %2272 = vmatpush.msrb.mxu1 %v4587_v31 }
0x1593   :  { %2253 = vmatpush.msrb.mxu0 %v4534_v17  ;;  %2273 = vmatpush.msrb.mxu1 %v4593_v34 }
0x1601   :  { %v4687_v5 = vpop.f32.mrf.mxu0  ;;  %v4689_v7 = vpop.f32.mrf.mxu1 }
0x1602   :  { %v1796_v28 = vadd.f32 %v1773_v59, %v4687_v5 }
0x1604   :  { %v1803_v20 = vadd.f32 %v4685_v15, %v1796_v28 }
0x1606   :  { %3349 = vtanh.f32 %v1803_v20  ;;  %v3178_v60 = vmul.f32 -1.442695, %v1803_v20 }
0x1609   :  { %v4693_v25 = vpop.f32.mrf.mxu1 }
0x160a   :  { %v1751_v33 = vrot.slane %v4693_v25, 6 }
0x160c   :  { %v3350_v41 = vpop.eup %3349  ;;  %v1797_v36 = vadd.f32 %v1793_v13, %v1751_v33 }
0x160d   :  { %1847 = vrot.lane.b32.xlu0 %v3350_v41, %s3504_s4 }
0x160e   :  { %v1804_v23 = vadd.f32 %v4696_v62, %v1797_v36 }
0x1610   :  { %3351 = vtanh.f32 %v1804_v23  ;;  %v3179_v4 = vmul.f32 -1.442695, %v1804_v23 }
0x1611   :  { %3353 = vpow2.f32 %v3178_v60 }
0x1612   :  { %3355 = vpow2.f32 %v3179_v4 }
0x1616   :  { %v3352_v37 = vpop.eup %3351 }
0x1617   :  { %1864 = vrot.lane.b32.xlu1 %v3352_v37, %s3504_s4  ;;  %v3354_v1 = vpop.eup %3353 }
0x1618   :  { %v1811_v51 = vadd.f32 1.0, %v3354_v1  ;;  %v3356_v56 = vpop.eup %3355 }
0x1619   :  { %v1812_v26 = vadd.f32 1.0, %v3356_v56 }
0x161a   :  { %3357 = vrcp.f32 %v1811_v51  ;;  %v1824_v50 = vand.u32 2147483648, %v1811_v51  ;;  %vm1818_vm0 = vweird.f32 %v1811_v51  ;;  %v1822_v35 = vand.u32 2147483647, %v1811_v51 }
0x161b   :  { %3359 = vrcp.f32 %v1812_v26  ;;  %v1839_v58 = vand.u32 2147483648, %v1812_v26  ;;  %vm1833_vm4 = vweird.f32 %v1812_v26  ;;  %v1837_v14 = vand.u32 2147483647, %v1812_v26 }
0x161c   :  { %v1825_v43 = vor.u32 1.1754944e-38, %v1824_v50  ;;  %vm1823_vm10 = vcmp.eq.f32.partialorder %v1822_v35, 8.507059e+37  ;;  %v4744_v50 = vpop.f32.mrf.mxu0 }
0x161d   :  { %v1840_v59 = vor.u32 1.1754944e-38, %v1839_v58  ;;  %vm1838_vm6 = vcmp.eq.f32.partialorder %v1837_v14, 8.507059e+37 }
0x1620   :  { %v3358_v63 = vpop.eup %3357 }
0x1621   :  { %v1814_v40 = vmul.f32 %v3358_v63, %v1811_v51  ;;  %v3360_v49 = vpop.eup %3359  ;;  %vm1819_vm7 = vweird.f32 %v3358_v63 }
0x1622   :  { %v1829_v54 = vmul.f32 %v3360_v49, %v1812_v26  ;;  %vm1820_vm1 = vmor %vm1818_vm0, %vm1819_vm7  ;;  %vm1834_vm11 = vweird.f32 %v3360_v49  ;;  %vm5149_vm7 = vcmp.eq.s32.totalorder %v3985_v47, 1  ;;  %vm5150_vm0 = vcmp.eq.s32.totalorder %v3991_v53, 1 }
0x1623   :  { %v1815_v52 = vsub.f32 1.0, %v1814_v40  ;;  %vm1835_vm5 = vmor %vm1833_vm4, %vm1834_vm11 }
0x1624   :  { %v1830_v42 = vsub.f32 1.0, %v1829_v54 }
0x1625   :  { %v1816_v32 = vmul.f32 %v3358_v63, %v1815_v52 }
0x1626   :  { %v1831_v55 = vmul.f32 %v3360_v49, %v1830_v42 }
0x1627   :  { %v1817_v57 = vadd.f32 %v3358_v63, %v1816_v32 }
0x1628   :  { %v1832_v11 = vadd.f32 %v3360_v49, %v1831_v55 }
0x1629   :  { %v1821_v30 = vsel %vm1820_vm1, %v3358_v63, %v1817_v57 }
0x162a   :  { %v1826_v8 = vsel %vm1823_vm10, %v1825_v43, %v1821_v30  ;;  %v1836_v45 = vsel %vm1835_vm5, %v3360_v49, %v1832_v11  ;;  %v1884_v30 = vrot.slane %v4693_v25, 2 }
0x162b   :  { %v1841_v20 = vsel %vm1838_vm6, %v1840_v59, %v1836_v45  ;;  %v1845_v41 = vmul.f32 0.0, %v1826_v8 }
0x162c   :  { %v1862_v60 = vmul.f32 0.0, %v1841_v20 }
0x167f   :  { %v1848_v16 = vpop.permute.xlu0 %1847 }
0x1680   :  { %v1850_v3 = vmul.f32 %v1848_v16, %v1826_v8 }
0x1682   :  { %1852 = vrot.lane.b32.xlu2 %v1850_v3, %s3506_s0 }
0x1689   :  { %v1865_v28 = vpop.permute.xlu1 %1864 }
0x168a   :  { %v1867_v13 = vmul.f32 %v1865_v28, %v1841_v20 }
0x168c   :  { %1869 = vrot.lane.b32.xlu0 %v1867_v13, %s3506_s0 }
0x16dc   :  { %v1853_v36 = vpop.permute.xlu2 %1852 }
0x16dd   :  { %v4705_v23 = vadd.f32 %v1853_v36, %v1845_v41 }
0x16df   :  { %3361 = vtanh.f32 %v4705_v23 }
0x16e5   :  { %v3362_v37 = vpop.eup %3361 }
0x16e6   :  { %1858 = vrot.lane.b32.xlu1 %v3362_v37, %s3504_s4 }
0x16fe   :  { %v1870_v1 = vpop.permute.xlu0 %1869 }
0x16ff   :  { %v4709_v4 = vadd.f32 %v1870_v1, %v1862_v60 }
0x1701   :  { %3363 = vtanh.f32 %v4709_v4 }
0x1707   :  { %v3364_v51 = vpop.eup %3363 }
0x1708   :  { %1875 = vrot.lane.b32.xlu2 %v3364_v51, %s3504_s4 }
0x1758   :  { %v1859_v56 = vpop.permute.xlu1 %1858 }
0x1759   :  { %v1861_v63 = vmul.f32 %v1859_v56, %v1826_v8 }
0x175b   :  { %v1879_v26 = vsel %vm5149_vm7, %v1861_v63, 0.0 }
0x175c   :  { %1890 = vrot.lane.b32.xlu0 %v1879_v26, %s3506_s0 }
0x1762   :  { %v1876_v40 = vpop.permute.xlu2 %1875 }
0x1763   :  { %v1878_v52 = vmul.f32 %v1876_v40, %v1841_v20 }
0x1765   :  { %v4718_v49 = vsel %vm5150_vm0, %v1878_v52, 0.0 }
0x1766   :  { %1894 = vrot.lane.b32.xlu1 %v4718_v49, %s3504_s4 }
0x17ce   :  { %v4722_v32 = vpop.permute.xlu0 %1890 }
0x17d8   :  { %v1895_v54 = vpop.permute.xlu1 %1894 }
0x17d9   :  { %v1897_v57 = vsel %vm394_vm12, %v4722_v32, %v1895_v54 }
0x17da   :  { %3180 = vmatmul.msk.f32.vlgmr.msra.gmra.mxu0 %vm237_vm13, %v1897_v57  ;;  %3181 = vmatmul.msk.f32.vlgmr.msra.gmra.mxu1 %vm237_vm13, %v1897_v57 }
0x17db   :  { %2575 = vmatpush.msra.mxu0 %v4431_v21  ;;  %2595 = vmatpush.msra.mxu1 %v4471_v29 }
0x17dd   :  { %2576 = vmatpush.msra.mxu0 %v4436_v2  ;;  %2596 = vmatpush.msra.mxu1 %v4484_v44 }
0x17df   :  { %2577 = vmatpush.msra.mxu0 %v4448_v22  ;;  %2597 = vmatpush.msra.mxu1 %v4494_v38 }
0x17e1   :  { %2578 = vmatpush.msra.mxu0 %v4466_v27  ;;  %2598 = vmatpush.msra.mxu1 %v4519_v12 }
0x17e3   :  { %2579 = vmatpush.msra.mxu0 %v4489_v6  ;;  %2599 = vmatpush.msra.mxu1 %v4569_v18 }
0x17e5   :  { %2580 = vmatpush.msra.mxu0 %v4504_v10  ;;  %2600 = vmatpush.msra.mxu1 %v4581_v19 }
0x17e7   :  { %2581 = vmatpush.msra.mxu0 %v4525_v48  ;;  %2601 = vmatpush.msra.mxu1 %v4587_v31 }
0x17e9   :  { %2582 = vmatpush.msra.mxu0 %v4534_v17  ;;  %2602 = vmatpush.msra.mxu1 %v4593_v34 }
0x1857   :  { %v1918_v35 = vpop.f32.mrf.mxu0  ;;  %v1938_v42 = vpop.f32.mrf.mxu1 }
0x1858   :  { %v1943_v43 = vrot.slane %v1918_v35, 6  ;;  %v1944_v55 = vrot.slane %v1938_v42, 6 }
0x185a   :  { %v1947_v16 = vadd.f32 %v1943_v43, %v4687_v5  ;;  %v1948_v8 = vadd.f32 %v1944_v55, %v1884_v30 }
0x185c   :  { %v1949_v3 = vadd.f32 %v1947_v16, %v4685_v15  ;;  %v1950_v11 = vadd.f32 %v1948_v8, %v4696_v62 }
0x185e   :  { %3365 = vtanh.f32 %v1949_v3  ;;  %v3183_v45 = vmul.f32 -1.442695, %v1950_v11  ;;  %v3182_v13 = vmul.f32 -1.442695, %v1949_v3 }
0x185f   :  { %3367 = vtanh.f32 %v1950_v11 }
0x1860   :  { %3369 = vpow2.f32 %v3183_v45 }
0x1864   :  { %v3366_v58 = vpop.eup %3365 }
0x1865   :  { %v3368_v14 = vpop.eup %3367  ;;  %1996 = vrot.lane.b32.xlu0 %v3366_v58, %s3504_s4 }
0x1866   :  { %2016 = vrot.lane.b32.xlu2 %v3368_v14, %s3504_s4  ;;  %v3370_v59 = vpop.eup %3369 }
0x1867   :  { %v1958_v28 = vadd.f32 1.0, %v3370_v59 }
0x1869   :  { %3371 = vrcp.f32 %v1958_v28  ;;  %v1985_v56 = vand.u32 2147483648, %v1958_v28  ;;  %vm1979_vm10 = vweird.f32 %v1958_v28  ;;  %v1983_v63 = vand.u32 2147483647, %v1958_v28 }
0x186a   :  { %3373 = vpow2.f32 %v3182_v13 }
0x186b   :  { %v1986_v40 = vor.u32 1.1754944e-38, %v1985_v56  ;;  %vm1984_vm4 = vcmp.eq.f32.partialorder %v1983_v63, 8.507059e+37 }
0x186f   :  { %v3372_v20 = vpop.eup %3371 }
0x1870   :  { %v1975_v41 = vmul.f32 %v3372_v20, %v1958_v28  ;;  %v3374_v37 = vpop.eup %3373  ;;  %vm1980_vm1 = vweird.f32 %v3372_v20 }
0x1871   :  { %v1957_v1 = vadd.f32 1.0, %v3374_v37  ;;  %vm1981_vm11 = vmor %vm1979_vm10, %vm1980_vm1  ;;  %vm5151_vm1 = vcmp.eq.s32.totalorder %v3985_v47, 1  ;;  %vm5152_vm10 = vcmp.eq.s32.totalorder %v3991_v53, 1 }
0x1872   :  { %v1976_v36 = vsub.f32 1.0, %v1975_v41  ;;  %v1880_v28 = vsel %vm5151_vm1, %v4705_v23, 0.0 }
0x1873   :  { %3375 = vrcp.f32 %v1957_v1  ;;  %v1970_v8 = vand.u32 2147483648, %v1957_v1  ;;  %vm1964_vm6 = vweird.f32 %v1957_v1  ;;  %v1968_v3 = vand.u32 2147483647, %v1957_v1 }
0x1874   :  { %v1977_v60 = vmul.f32 %v3372_v20, %v1976_v36  ;;  %v1992_v13 = vrot.slane %v1880_v28, 6 }
0x1875   :  { %v1971_v58 = vor.u32 1.1754944e-38, %v1970_v8  ;;  %vm1969_vm0 = vcmp.eq.f32.partialorder %v1968_v3, 8.507059e+37 }
0x1876   :  { %v1978_v51 = vadd.f32 %v3372_v20, %v1977_v60 }
0x1878   :  { %v1982_v26 = vsel %vm1981_vm11, %v3372_v20, %v1978_v51  ;;  %v1882_v20 = vsel %vm5152_vm10, %v4709_v4, 0.0 }
0x1879   :  { %v1987_v54 = vsel %vm1984_vm4, %v1986_v40, %v1982_v26  ;;  %v3376_v57 = vpop.eup %3375  ;;  %v2012_v41 = vrot.slane %v1882_v20, 6 }
0x187a   :  { %v1960_v42 = vmul.f32 %v3376_v57, %v1957_v1  ;;  %vm1965_vm5 = vweird.f32 %v3376_v57 }
0x187b   :  { %vm1966_vm7 = vmor %vm1964_vm6, %vm1965_vm5  ;;  %v2014_v37 = vmul.f32 %v2012_v41, %v1987_v54 }
0x187c   :  { %v1961_v43 = vsub.f32 1.0, %v1960_v42 }
0x187e   :  { %v1962_v55 = vmul.f32 %v3376_v57, %v1961_v43 }
0x1880   :  { %v1963_v16 = vadd.f32 %v3376_v57, %v1962_v55 }
0x1882   :  { %v1967_v11 = vsel %vm1966_vm7, %v3376_v57, %v1963_v16 }
0x1883   :  { %v1972_v45 = vsel %vm1969_vm0, %v1971_v58, %v1967_v11 }
0x1884   :  { %v1994_v36 = vmul.f32 %v1992_v13, %v1972_v45 }
0x18c0   :  { %v2017_v52 = vpop.permute.xlu2 %2016 }
0x18c1   :  { %v2019_v35 = vmul.f32 %v2017_v52, %v1987_v54 }
0x18c3   :  { %2021 = vrot.lane.b32.xlu1 %v2019_v35, %s3506_s0 }
0x18d7   :  { %v1997_v14 = vpop.permute.xlu0 %1996 }
0x18d8   :  { %v1999_v59 = vmul.f32 %v1997_v14, %v1972_v45 }
0x18da   :  { %2001 = vrot.lane.b32.xlu2 %v1999_v59, %s3506_s0 }
0x1934   :  { %v2002_v60 = vpop.permute.xlu2 %2001 }
0x1935   :  { %v2022_v1 = vpop.permute.xlu1 %2021  ;;  %v2004_v51 = vadd.f32 %v2002_v60, %v1994_v36 }
0x1936   :  { %v2024_v56 = vadd.f32 %v2022_v1, %v2014_v37 }
0x1937   :  { %3377 = vtanh.f32 %v2004_v51  ;;  %v2038_v4 = vrot.slane %v2004_v51, 2 }
0x1938   :  { %3379 = vtanh.f32 %v2024_v56  ;;  %v2056_v23 = vrot.slane %v2024_v56, 2 }
0x193d   :  { %v3378_v63 = vpop.eup %3377 }
0x193e   :  { %v3380_v26 = vpop.eup %3379  ;;  %2007 = vrot.lane.b32.xlu1 %v3378_v63, %s3504_s4 }
0x193f   :  { %2027 = vrot.lane.b32.xlu0 %v3380_v26, %s3504_s4 }
0x1947   :  { %2051 = vrot.lane.b32.xlu0 %v4718_v49, %s3506_s0 }
0x194f   :  { %2057 = vrot.lane.b32.xlu0 %v2056_v23, %s3507_s27 }
0x1957   :  { %2039 = vrot.lane.b32.xlu0 %v2038_v4, %s3507_s27 }
0x19b0   :  { %v2008_v40 = vpop.permute.xlu1 %2007 }
0x19b1   :  { %v2028_v52 = vpop.permute.xlu0 %2027  ;;  %v2010_v57 = vmul.f32 %v2008_v40, %v1972_v45 }
0x19b2   :  { %v2030_v35 = vmul.f32 %v2028_v52, %v1987_v54 }
0x19b3   :  { %v2032_v42 = vrot.slane %v2010_v57, 2 }
0x19b4   :  { %v2047_v43 = vrot.slane %v2030_v35, 2 }
0x19b5   :  { %2033 = vrot.lane.b32.xlu1 %v2032_v42, %s3506_s0 }
0x19b6   :  { %2048 = vrot.lane.b32.xlu2 %v2047_v43, %s3506_s0 }
0x19b9   :  { %v2052_v49 = vpop.permute.xlu0 %2051 }
0x19bd   :  { %2060 = vrot.lane.b32.xlu1 %v1882_v20, %s3507_s27 }
0x19c1   :  { %v2058_v8 = vpop.permute.xlu0 %2057 }
0x19c5   :  { %2042 = vrot.lane.b32.xlu1 %v1880_v28, %s3507_s27 }
0x19c9   :  { %v2040_v63 = vpop.permute.xlu0 %2039 }
0x1a10   :  { %v2049_v55 = vpop.permute.xlu2 %2048 }
0x1a11   :  { %v4774_v16 = vsel %vm555_vm8, %v2049_v55, %v2052_v49 }
0x1a12   :  { %2065 = vrot.lane.b32.xlu2 %v4774_v16, %s3506_s0 }
0x1a27   :  { %v2034_v54 = vpop.permute.xlu1 %2033 }
0x1a28   :  { %v4787_v14 = vsel %vm535_vm9, %v2034_v54, %v4722_v32 }
0x1a2f   :  { %v2061_v3 = vpop.permute.xlu1 %2060 }
0x1a30   :  { %v4780_v11 = vsel %vm555_vm8, %v2058_v8, %v2061_v3 }
0x1a31   :  { %v2185_v58 = vrot.slane %v4780_v11, 4 }
0x1a33   :  { %2186 = vrot.lane.b32.xlu0 %v2185_v58, %s3506_s0 }
0x1a37   :  { %v2043_v56 = vpop.permute.xlu1 %2042 }
0x1a6c   :  { %v2066_v45 = vpop.permute.xlu2 %2065 }
0x1a6d   :  { %v2068_v59 = vsel %vm394_vm12, %v4787_v14, %v2066_v45 }
0x1a6e   :  { %3184 = vmatmul.msk.f32.vlgmr.msra.gmra.mxu2 %vm237_vm13, %v2068_v59  ;;  %3185 = vmatmul.msk.f32.vlgmr.msra.gmra.mxu3 %vm237_vm13, %v2068_v59 }
0x1a6f   :  { %2746 = vmatpush.msra.mxu2 %v4431_v21  ;;  %2766 = vmatpush.msra.mxu3 %v4471_v29 }
0x1a71   :  { %2747 = vmatpush.msra.mxu2 %v4436_v2  ;;  %2767 = vmatpush.msra.mxu3 %v4484_v44 }
0x1a73   :  { %2748 = vmatpush.msra.mxu2 %v4448_v22  ;;  %2768 = vmatpush.msra.mxu3 %v4494_v38 }
0x1a75   :  { %2749 = vmatpush.msra.mxu2 %v4466_v27  ;;  %2769 = vmatpush.msra.mxu3 %v4519_v12 }
0x1a77   :  { %2750 = vmatpush.msra.mxu2 %v4489_v6  ;;  %2770 = vmatpush.msra.mxu3 %v4569_v18 }
0x1a79   :  { %2751 = vmatpush.msra.mxu2 %v4504_v10  ;;  %2771 = vmatpush.msra.mxu3 %v4581_v19 }
0x1a7b   :  { %2752 = vmatpush.msra.mxu2 %v4525_v48  ;;  %2772 = vmatpush.msra.mxu3 %v4587_v31 }
0x1a7d   :  { %2753 = vmatpush.msra.mxu2 %v4534_v17  ;;  %2773 = vmatpush.msra.mxu3 %v4593_v34 }
0x1af1   :  { %v2109_v32 = vpop.f32.mrf.mxu3  ;;  %v2089_v28 = vpop.f32.mrf.mxu2 }
0x1af2   :  { %v2115_v20 = vrot.slane %v2109_v32, 4  ;;  %v2114_v41 = vrot.slane %v2089_v28, 4 }
0x1af4   :  { %v2119_v13 = vadd.f32 %v2115_v20, %v1751_v33  ;;  %v2118_v37 = vadd.f32 %v2114_v41, %v4687_v5  ;;  %v4818_v33 = vsel %vm535_vm9, %v2040_v63, %v2043_v56 }
0x1af5   :  { %v2163_v26 = vrot.slane %v4818_v33, 4 }
0x1af6   :  { %v2121_v36 = vadd.f32 %v2119_v13, %v4696_v62  ;;  %v2120_v60 = vadd.f32 %v2118_v37, %v4685_v15 }
0x1af8   :  { %3381 = vtanh.f32 %v2121_v36  ;;  %v3187_v23 = vmul.f32 -1.442695, %v2121_v36  ;;  %v3186_v4 = vmul.f32 -1.442695, %v2120_v60 }
0x1af9   :  { %3383 = vtanh.f32 %v2120_v60 }
0x1afa   :  { %3385 = vpow2.f32 %v3187_v23 }
0x1afb   :  { %3387 = vpow2.f32 %v3186_v4  ;;  %v2187_v4 = vpop.permute.xlu0 %2186 }
0x1afe   :  { %v3382_v1 = vpop.eup %3381 }
0x1aff   :  { %2191 = vrot.lane.b32.xlu2 %v3382_v1, %s3504_s4  ;;  %v3384_v51 = vpop.eup %3383 }
0x1b00   :  { %v3386_v40 = vpop.eup %3385 }
0x1b01   :  { %v2129_v52 = vadd.f32 1.0, %v3386_v40  ;;  %v3388_v57 = vpop.eup %3387 }
0x1b02   :  { %v2128_v35 = vadd.f32 1.0, %v3388_v57 }
0x1b03   :  { %3389 = vrcp.f32 %v2129_v52  ;;  %v2156_v45 = vand.u32 2147483648, %v2129_v52  ;;  %vm2150_vm4 = vweird.f32 %v2129_v52  ;;  %v2154_v59 = vand.u32 2147483647, %v2129_v52 }
0x1b04   :  { %3391 = vrcp.f32 %v2128_v35  ;;  %v2141_v60 = vand.u32 2147483648, %v2128_v35  ;;  %vm2135_vm0 = vweird.f32 %v2128_v35  ;;  %v2139_v1 = vand.u32 2147483647, %v2128_v35 }
0x1b05   :  { %v2157_v20 = vor.u32 1.1754944e-38, %v2156_v45  ;;  %vm2155_vm6 = vcmp.eq.f32.partialorder %v2154_v59, 8.507059e+37 }
0x1b06   :  { %v2142_v56 = vor.u32 1.1754944e-38, %v2141_v60  ;;  %vm2140_vm10 = vcmp.eq.f32.partialorder %v2139_v1, 8.507059e+37 }
0x1b07   :  { %2169 = vrot.lane.b32.xlu2 %v3384_v51, %s3504_s4 }
0x1b09   :  { %v3390_v42 = vpop.eup %3389 }
0x1b0a   :  { %v2146_v43 = vmul.f32 %v3390_v42, %v2129_v52  ;;  %v3392_v55 = vpop.eup %3391  ;;  %vm2151_vm11 = vweird.f32 %v3390_v42 }
0x1b0b   :  { %v2131_v8 = vmul.f32 %v3392_v55, %v2128_v35  ;;  %vm2152_vm5 = vmor %vm2150_vm4, %vm2151_vm11  ;;  %vm2136_vm7 = vweird.f32 %v3392_v55 }
0x1b0c   :  { %v2147_v49 = vsub.f32 1.0, %v2146_v43  ;;  %vm2137_vm1 = vmor %vm2135_vm0, %vm2136_vm7 }
0x1b0d   :  { %v2132_v58 = vsub.f32 1.0, %v2131_v8 }
0x1b0e   :  { %v2148_v54 = vmul.f32 %v3390_v42, %v2147_v49 }
0x1b0f   :  { %2164 = vrot.lane.b32.xlu2 %v2163_v26, %s3506_s0  ;;  %v2133_v28 = vmul.f32 %v3392_v55, %v2132_v58 }
0x1b10   :  { %v2149_v3 = vadd.f32 %v3390_v42, %v2148_v54 }
0x1b11   :  { %v2134_v37 = vadd.f32 %v3392_v55, %v2133_v28 }
0x1b12   :  { %v2153_v32 = vsel %vm2152_vm5, %v3390_v42, %v2149_v3 }
0x1b13   :  { %v2158_v41 = vsel %vm2155_vm6, %v2157_v20, %v2153_v32  ;;  %v2138_v51 = vsel %vm2137_vm1, %v3392_v55, %v2134_v37 }
0x1b14   :  { %v2143_v26 = vsel %vm2140_vm10, %v2142_v56, %v2138_v51  ;;  %v2189_v40 = vmul.f32 %v2187_v4, %v2158_v41 }
0x1b59   :  { %v2192_v13 = vpop.permute.xlu2 %2191 }
0x1b5a   :  { %v2194_v36 = vmul.f32 %v2192_v13, %v2158_v41 }
0x1b5c   :  { %2196 = vrot.lane.b32.xlu1 %v2194_v36, %s3506_s0 }
0x1b61   :  { %v2170_v63 = vpop.permute.xlu2 %2169 }
0x1b62   :  { %v2172_v23 = vmul.f32 %v2170_v63, %v2143_v26 }
0x1b64   :  { %2174 = vrot.lane.b32.xlu0 %v2172_v23, %s3506_s0 }
0x1b69   :  { %v2165_v42 = vpop.permute.xlu2 %2164 }
0x1b6a   :  { %v2167_v43 = vmul.f32 %v2165_v42, %v2143_v26 }
0x1bce   :  { %v2197_v52 = vpop.permute.xlu1 %2196 }
0x1bcf   :  { %v2199_v57 = vadd.f32 %v2197_v52, %v2189_v40 }
0x1bd1   :  { %3393 = vtanh.f32 %v2199_v57  ;;  %v2225_v28 = vrot.slane %v2199_v57, 4 }
0x1bd6   :  { %v2175_v49 = vpop.permute.xlu0 %2174 }
0x1bd7   :  { %v3394_v54 = vpop.eup %3393  ;;  %v2177_v8 = vadd.f32 %v2175_v49, %v2167_v43 }
0x1bd8   :  { %2202 = vrot.lane.b32.xlu1 %v3394_v54, %s3504_s4 }
0x1bd9   :  { %3395 = vtanh.f32 %v2177_v8  ;;  %v2213_v36 = vrot.slane %v2177_v8, 4 }
0x1bdf   :  { %v3396_v35 = vpop.eup %3395 }
0x1be0   :  { %2180 = vrot.lane.b32.xlu2 %v3396_v35, %s3504_s4 }
0x1c3a   :  { %v2181_v55 = vpop.permute.xlu2 %2180 }
0x1c3b   :  { %v2183_v3 = vmul.f32 %v2181_v55, %v2143_v26 }
0x1c3d   :  { %v2207_v58 = vrot.slane %v2183_v3, 4 }
0x1c3f   :  { %2208 = vrot.lane.b32.xlu1 %v2207_v58, %s3506_s0 }
0x1c4a   :  { %v2203_v45 = vpop.permute.xlu1 %2202 }
0x1c4b   :  { %v2205_v59 = vmul.f32 %v2203_v45, %v2158_v41 }
0x1c4d   :  { %v2219_v32 = vrot.slane %v2205_v59, 4 }
0x1c4f   :  { %2220 = vrot.lane.b32.xlu0 %v2219_v32, %s3506_s0 }
0x1c57   :  { %2226 = vrot.lane.b32.xlu0 %v2225_v28, %s3507_s27 }
0x1cb1   :  { %v2209_v37 = vpop.permute.xlu1 %2208 }
0x1cb2   :  { %v4840_v41 = vsel %vm724_vm15, %v2209_v37, %v4787_v14 }
0x1cc1   :  { %v2221_v20 = vpop.permute.xlu0 %2220 }
0x1cc2   :  { %v4832_v13 = vsel %vm741_vm14, %v2221_v20, %v4774_v16 }
0x1cc3   :  { %2231 = vrot.lane.b32.xlu2 %v4832_v13, %s3506_s0 }
0x1ccb   :  { %2214 = vrot.lane.b32.xlu2 %v2213_v36, %s3507_s27 }
0x1d1d   :  { %v2232_v60 = vpop.permute.xlu2 %2231 }
0x1d1e   :  { %v2234_v1 = vsel %vm394_vm12, %v4840_v41, %v2232_v60 }
0x1d1f   :  { %3188 = vmatmul.msk.f32.vlgmr.msrb.gmra.mxu0 %vm237_vm13, %v2234_v1  ;;  %3189 = vmatmul.msk.f32.vlgmr.msrb.gmra.mxu1 %vm237_vm13, %v2234_v1 }
0x1d20   :  { %2912 = vmatpush.msrb.mxu0 %v4431_v21  ;;  %2932 = vmatpush.msrb.mxu1 %v4471_v29 }
0x1d22   :  { %2913 = vmatpush.msrb.mxu0 %v4436_v2  ;;  %2933 = vmatpush.msrb.mxu1 %v4484_v44 }
0x1d24   :  { %2914 = vmatpush.msrb.mxu0 %v4448_v22  ;;  %2934 = vmatpush.msrb.mxu1 %v4494_v38 }
0x1d26   :  { %2915 = vmatpush.msrb.mxu0 %v4466_v27  ;;  %2935 = vmatpush.msrb.mxu1 %v4519_v12 }
0x1d28   :  { %2916 = vmatpush.msrb.mxu0 %v4489_v6  ;;  %2936 = vmatpush.msrb.mxu1 %v4569_v18 }
0x1d2a   :  { %2917 = vmatpush.msrb.mxu0 %v4504_v10  ;;  %2937 = vmatpush.msrb.mxu1 %v4581_v19 }
0x1d2c   :  { %2918 = vmatpush.msrb.mxu0 %v4525_v48  ;;  %2938 = vmatpush.msrb.mxu1 %v4587_v31  ;;  %v2215_v48 = vpop.permute.xlu2 %2214 }
0x1d2d   :  { %v4872_v18 = vsel %vm724_vm15, %v2215_v48, %v4818_v33 }
0x1d2e   :  { %2919 = vmatpush.msrb.mxu0 %v4534_v17  ;;  %2939 = vmatpush.msrb.mxu1 %v4593_v34  ;;  %v2227_v17 = vpop.permute.xlu0 %2226  ;;  %v2329_v31 = vrot.slane %v4872_v18, 2 }
0x1d2f   :  { %v4877_v19 = vsel %vm741_vm14, %v2227_v17, %v4780_v11 }
0x1d30   :  { %v2351_v34 = vrot.slane %v4877_v19, 2 }
0x1d9c   :  { %v2255_v21 = vpop.f32.mrf.mxu0  ;;  %v2275_v2 = vpop.f32.mrf.mxu1 }
0x1d9d   :  { %v2280_v22 = vrot.slane %v2255_v21, 2  ;;  %v2281_v27 = vrot.slane %v2275_v2, 2 }
0x1d9f   :  { %v2284_v29 = vadd.f32 %v2280_v22, %v4687_v5  ;;  %v2285_v44 = vadd.f32 %v2281_v27, %v1884_v30 }
0x1da1   :  { %v2286_v6 = vadd.f32 %v2284_v29, %v4685_v15  ;;  %v2287_v38 = vadd.f32 %v2285_v44, %v4696_v62 }
0x1da3   :  { %3397 = vtanh.f32 %v2286_v6  ;;  %v3190_v5 = vmul.f32 -1.442695, %v2286_v6  ;;  %v3191_v25 = vmul.f32 -1.442695, %v2287_v38 }
0x1da4   :  { %3399 = vtanh.f32 %v2287_v38 }
0x1da5   :  { %3401 = vpow2.f32 %v3190_v5 }
0x1da6   :  { %3403 = vpow2.f32 %v3191_v25 }
0x1da9   :  { %v3398_v10 = vpop.eup %3397 }
0x1daa   :  { %v3400_v12 = vpop.eup %3399  ;;  %2335 = vrot.lane.b32.xlu0 %v3398_v10, %s3504_s4 }
0x1dab   :  { %2357 = vrot.lane.b32.xlu1 %v3400_v12, %s3504_s4  ;;  %v3402_v30 = vpop.eup %3401 }
0x1dac   :  { %v3404_v16 = vpop.eup %3403  ;;  %v2294_v14 = vadd.f32 1.0, %v3402_v30 }
0x1dad   :  { %v2295_v33 = vadd.f32 1.0, %v3404_v16 }
0x1dae   :  { %3405 = vrcp.f32 %v2294_v14  ;;  %v2307_v42 = vand.u32 2147483648, %v2294_v14  ;;  %vm2301_vm5 = vweird.f32 %v2294_v14  ;;  %v2305_v49 = vand.u32 2147483647, %v2294_v14 }
0x1daf   :  { %3407 = vrcp.f32 %v2295_v33  ;;  %v2322_v43 = vand.u32 2147483648, %v2295_v33  ;;  %vm2316_vm6 = vweird.f32 %v2295_v33  ;;  %v2320_v54 = vand.u32 2147483647, %v2295_v33 }
0x1db0   :  { %v2308_v55 = vor.u32 1.1754944e-38, %v2307_v42  ;;  %vm2306_vm1 = vcmp.eq.f32.partialorder %v2305_v49, 8.507059e+37 }
0x1db1   :  { %v2323_v3 = vor.u32 1.1754944e-38, %v2322_v43  ;;  %vm2321_vm10 = vcmp.eq.f32.partialorder %v2320_v54, 8.507059e+37 }
0x1db2   :  { %2330 = vrot.lane.b32.xlu0 %v2329_v31, %s3506_s0 }
0x1db3   :  { %2352 = vrot.lane.b32.xlu1 %v2351_v34, %s3506_s0 }
0x1db4   :  { %v3406_v11 = vpop.eup %3405 }
0x1db5   :  { %v3408_v51 = vpop.eup %3407  ;;  %v2297_v56 = vmul.f32 %v3406_v11, %v2294_v14  ;;  %vm2302_vm11 = vweird.f32 %v3406_v11 }
0x1db6   :  { %v2312_v63 = vmul.f32 %v3408_v51, %v2295_v33  ;;  %vm2317_vm4 = vweird.f32 %v3408_v51  ;;  %vm2303_vm7 = vmor %vm2301_vm5, %vm2302_vm11 }
0x1db7   :  { %v2298_v26 = vsub.f32 1.0, %v2297_v56  ;;  %vm2318_vm0 = vmor %vm2316_vm6, %vm2317_vm4 }
0x1db8   :  { %v2313_v23 = vsub.f32 1.0, %v2312_v63 }
0x1db9   :  { %v2299_v4 = vmul.f32 %v3406_v11, %v2298_v26 }
0x1dba   :  { %v2314_v40 = vmul.f32 %v3408_v51, %v2313_v23 }
0x1dbb   :  { %v2300_v52 = vadd.f32 %v3406_v11, %v2299_v4 }
0x1dbc   :  { %v2315_v57 = vadd.f32 %v3408_v51, %v2314_v40 }
0x1dbd   :  { %v2304_v8 = vsel %vm2303_vm7, %v3406_v11, %v2300_v52 }
0x1dbe   :  { %v2319_v35 = vsel %vm2318_vm0, %v3408_v51, %v2315_v57  ;;  %v2309_v45 = vsel %vm2306_vm1, %v2308_v55, %v2304_v8  ;;  %v2399_v51 = vrot.slane %v4689_v7, 6 }
0x1dbf   :  { %v2324_v32 = vsel %vm2321_vm10, %v2323_v3, %v2319_v35 }
0x1e1c   :  { %v2336_v58 = vpop.permute.xlu0 %2335 }
0x1e1d   :  { %v2358_v59 = vpop.permute.xlu1 %2357  ;;  %v2338_v28 = vmul.f32 %v2336_v58, %v2309_v45 }
0x1e1e   :  { %v2360_v20 = vmul.f32 %v2358_v59, %v2324_v32 }
0x1e1f   :  { %2340 = vrot.lane.b32.xlu1 %v2338_v28, %s3506_s0 }
0x1e20   :  { %2362 = vrot.lane.b32.xlu2 %v2360_v20, %s3506_s0 }
0x1e24   :  { %v2331_v2 = vpop.permute.xlu0 %2330 }
0x1e25   :  { %v2353_v36 = vpop.permute.xlu1 %2352  ;;  %v2333_v22 = vmul.f32 %v2331_v2, %v2309_v45 }
0x1e26   :  { %v2355_v37 = vmul.f32 %v2353_v36, %v2324_v32 }
0x1e7a   :  { %v2363_v60 = vpop.permute.xlu2 %2362 }
0x1e7b   :  { %v2365_v1 = vadd.f32 %v2363_v60, %v2355_v37 }
0x1e7d   :  { %3409 = vtanh.f32 %v2365_v1  ;;  %v2391_v34 = vrot.slane %v2365_v1, 6 }
0x1e83   :  { %v3410_v21 = vpop.eup %3409 }
0x1e84   :  { %2368 = vrot.lane.b32.xlu2 %v3410_v21, %s3504_s4 }
0x1e91   :  { %v2341_v27 = vpop.permute.xlu1 %2340 }
0x1e92   :  { %v2343_v29 = vadd.f32 %v2341_v27, %v2333_v22 }
0x1e94   :  { %3411 = vtanh.f32 %v2343_v29  ;;  %v2379_v12 = vrot.slane %v2343_v29, 6 }
0x1e9a   :  { %v3412_v44 = vpop.eup %3411 }
0x1e9b   :  { %2346 = vrot.lane.b32.xlu0 %v3412_v44, %s3504_s4 }
0x1ede   :  { %v2369_v6 = vpop.permute.xlu2 %2368 }
0x1edf   :  { %v2371_v38 = vmul.f32 %v2369_v6, %v2324_v32 }
0x1ee1   :  { %v2385_v10 = vrot.slane %v2371_v38, 6 }
0x1ee3   :  { %2386 = vrot.lane.b32.xlu1 %v2385_v10, %s3506_s0 }
0x1eeb   :  { %2380 = vrot.lane.b32.xlu1 %v2379_v12, %s3507_s27 }
0x1f0d   :  { %v2347_v48 = vpop.permute.xlu0 %2346 }
0x1f0e   :  { %v2349_v17 = vmul.f32 %v2347_v48, %v2309_v45 }
0x1f10   :  { %v2373_v31 = vrot.slane %v2349_v17, 6 }
0x1f12   :  { %2374 = vrot.lane.b32.xlu2 %v2373_v31, %s3506_s0 }
0x1f1a   :  { %2392 = vrot.lane.b32.xlu2 %v2391_v34, %s3507_s27 }
0x1f55   :  { %v2387_v5 = vpop.permute.xlu1 %2386 }
0x1f56   :  { %v4894_v25 = vsel %vm921_vm3, %v2387_v5, %v4832_v13 }
0x1f57   :  { %2405 = vrot.lane.b32.xlu0 %v4894_v25, %s3506_s0 }
0x1f5d   :  { %v2381_v30 = vpop.permute.xlu1 %2380 }
0x1f5e   :  { %v2383_v16 = vsel %vm904_vm2, %v2381_v30, %v4872_v18 }
0x1f5f   :  { %2497 = vrot.lane.b32.xlu2 %v2383_v16, %s3506_s0 }
0x1f6c   :  { %v2375_v14 = vpop.permute.xlu2 %2374 }
0x1f6d   :  { %v4905_v33 = vsel %vm904_vm2, %v2375_v14, %v4840_v41 }
0x1f74   :  { %v2393_v52 = vpop.permute.xlu2 %2392 }
0x1f75   :  { %v2395_v57 = vsel %vm921_vm3, %v2393_v52, %v4877_v19 }
0x1fb9   :  { %v4927_v17 = vpop.permute.xlu2 %2497 }
0x1fc9   :  { %v2406_v11 = vpop.permute.xlu0 %2405 }
0x1fca   :  { %v2408_v13 = vsel %vm394_vm12, %v4905_v33, %v2406_v11 }
0x1fcb   :  { %3192 = vmatmul.msk.f32.vlgmr.msrb.gmra.mxu2 %vm237_vm13, %v2408_v13  ;;  %3193 = vmatmul.msk.f32.vlgmr.msrb.gmra.mxu3 %vm237_vm13, %v2408_v13 }
0x204e   :  { %v2429_v56 = vpop.f32.mrf.mxu2  ;;  %v2449_v18 = vpop.f32.mrf.mxu3 }
0x204f   :  { %v2452_v63 = vadd.f32 %v2429_v56, %v4744_v50  ;;  %v2453_v26 = vadd.f32 %v2449_v18, %v2399_v51 }
0x2051   :  { %v2454_v41 = vadd.f32 %v2452_v63, %v4685_v15  ;;  %v2455_v23 = vadd.f32 %v2453_v26, %v4696_v62 }
0x2053   :  { %3413 = vtanh.f32 %v2454_v41  ;;  %v3194_v42 = vmul.f32 -1.442695, %v2454_v41  ;;  %v3195_v43 = vmul.f32 -1.442695, %v2455_v23 }
0x2054   :  { %3415 = vtanh.f32 %v2455_v23 }
0x2055   :  { %3417 = vpow2.f32 %v3194_v42 }
0x2056   :  { %3419 = vpow2.f32 %v3195_v43 }
0x2059   :  { %v3414_v4 = vpop.eup %3413 }
0x205a   :  { %v3416_v40 = vpop.eup %3415  ;;  %2502 = vrot.lane.b32.xlu0 %v3414_v4, %s3504_s4 }
0x205b   :  { %2523 = vrot.lane.b32.xlu1 %v3416_v40, %s3504_s4  ;;  %v3418_v49 = vpop.eup %3417 }
0x205c   :  { %v3420_v54 = vpop.eup %3419  ;;  %v2462_v8 = vadd.f32 1.0, %v3418_v49  ;;  %v2550_v49 = vrot.slane %v4689_v7, 2 }
0x205d   :  { %v2463_v35 = vadd.f32 1.0, %v3420_v54 }
0x205e   :  { %3421 = vrcp.f32 %v2462_v8  ;;  %v2475_v37 = vand.u32 2147483648, %v2462_v8  ;;  %vm2469_vm5 = vweird.f32 %v2462_v8  ;;  %v2473_v1 = vand.u32 2147483647, %v2462_v8 }
0x205f   :  { %3423 = vrcp.f32 %v2463_v35  ;;  %v2490_v60 = vand.u32 2147483648, %v2463_v35  ;;  %vm2484_vm6 = vweird.f32 %v2463_v35  ;;  %v2488_v21 = vand.u32 2147483647, %v2463_v35 }
0x2060   :  { %v2476_v27 = vor.u32 1.1754944e-38, %v2475_v37  ;;  %vm2474_vm1 = vcmp.eq.f32.partialorder %v2473_v1, 8.507059e+37 }
0x2061   :  { %v2491_v29 = vor.u32 1.1754944e-38, %v2490_v60  ;;  %vm2489_vm10 = vcmp.eq.f32.partialorder %v2488_v21, 8.507059e+37 }
0x2062   :  { %2518 = vrot.lane.b32.xlu0 %v2395_v57, %s3506_s0 }
0x2064   :  { %v3422_v55 = vpop.eup %3421 }
0x2065   :  { %v3424_v3 = vpop.eup %3423  ;;  %v2465_v58 = vmul.f32 %v3422_v55, %v2462_v8  ;;  %vm2470_vm11 = vweird.f32 %v3422_v55 }
0x2066   :  { %v2480_v45 = vmul.f32 %v3424_v3, %v2463_v35  ;;  %vm2485_vm4 = vweird.f32 %v3424_v3  ;;  %vm2471_vm7 = vmor %vm2469_vm5, %vm2470_vm11 }
0x2067   :  { %v2466_v59 = vsub.f32 1.0, %v2465_v58  ;;  %vm2486_vm0 = vmor %vm2484_vm6, %vm2485_vm4 }
0x2068   :  { %v2481_v32 = vsub.f32 1.0, %v2480_v45 }
0x2069   :  { %v2467_v28 = vmul.f32 %v3422_v55, %v2466_v59 }
0x206a   :  { %v2482_v19 = vmul.f32 %v3424_v3, %v2481_v32 }
0x206b   :  { %v2468_v20 = vadd.f32 %v3422_v55, %v2467_v28 }
0x206c   :  { %v2483_v36 = vadd.f32 %v3424_v3, %v2482_v19 }
0x206d   :  { %v2472_v2 = vsel %vm2471_vm7, %v3422_v55, %v2468_v20 }
0x206e   :  { %v2487_v22 = vsel %vm2486_vm0, %v3424_v3, %v2483_v36  ;;  %v2477_v6 = vsel %vm2474_vm1, %v2476_v27, %v2472_v2 }
0x206f   :  { %v2492_v10 = vsel %vm2489_vm10, %v2491_v29, %v2487_v22  ;;  %v2500_v14 = vmul.f32 %v4927_v17, %v2477_v6 }
0x20cc   :  { %v2503_v44 = vpop.permute.xlu0 %2502 }
0x20cd   :  { %v2524_v38 = vpop.permute.xlu1 %2523  ;;  %v2505_v12 = vmul.f32 %v2503_v44, %v2477_v6 }
0x20ce   :  { %v2526_v48 = vmul.f32 %v2524_v38, %v2492_v10 }
0x20cf   :  { %2507 = vrot.lane.b32.xlu1 %v2505_v12, %s3506_s0 }
0x20d0   :  { %2528 = vrot.lane.b32.xlu2 %v2526_v48, %s3506_s0 }
0x20d4   :  { %v4929_v31 = vpop.permute.xlu0 %2518 }
0x20d5   :  { %v2521_v34 = vmul.f32 %v4929_v31, %v2492_v10 }
0x20d8   :  { %2539 = vrot.lane.b32.xlu2 %v4905_v33, %s3507_s27 }
0x212a   :  { %v2529_v5 = vpop.permute.xlu2 %2528 }
0x212b   :  { %v4932_v30 = vadd.f32 %v2529_v5, %v2521_v34 }
0x212d   :  { %3425 = vtanh.f32 %v4932_v30 }
0x2132   :  { %v2540_v63 = vpop.permute.xlu2 %2539 }
0x2133   :  { %v3426_v16 = vpop.eup %3425 }
0x2134   :  { %2534 = vrot.lane.b32.xlu1 %v3426_v16, %s3504_s4 }
0x2141   :  { %v2508_v11 = vpop.permute.xlu1 %2507 }
0x2142   :  { %v4937_v13 = vadd.f32 %v2508_v11, %v2500_v14 }
0x2144   :  { %3427 = vtanh.f32 %v4937_v13 }
0x214a   :  { %v3428_v33 = vpop.eup %3427 }
0x214b   :  { %2513 = vrot.lane.b32.xlu0 %v3428_v33, %s3504_s4 }
0x2153   :  { %2544 = vrot.lane.b32.xlu0 %v4894_v25, %s3507_s27 }
0x21a6   :  { %v2535_v41 = vpop.permute.xlu1 %2534 }
0x21a7   :  { %v2537_v23 = vmul.f32 %v2535_v41, %v2492_v10 }
0x21bd   :  { %v2514_v56 = vpop.permute.xlu0 %2513 }
0x21be   :  { %v2516_v18 = vmul.f32 %v2514_v56, %v2477_v6 }
0x21c0   :  { %v2542_v26 = vsel %vm921_vm3, %v2516_v18, %v2540_v63 }
0x21c1   :  { %2556 = vrot.lane.b32.xlu1 %v2542_v26, %s3506_s0 }
0x21c5   :  { %v2545_v4 = vpop.permute.xlu0 %2544 }
0x21c6   :  { %v4948_v40 = vsel %vm904_vm2, %v2537_v23, %v2545_v4  ;;  %v2548_v23 = vsel %vm904_vm2, %v4932_v30, %v4929_v31 }
0x21c7   :  { %2560 = vrot.lane.b32.xlu2 %v4948_v40, %s3504_s4  ;;  %v2678_v4 = vrot.slane %v2548_v23, 6 }
0x2221   :  { %v2561_v52 = vpop.permute.xlu2 %2560 }
0x2233   :  { %v4952_v25 = vpop.permute.xlu1 %2556 }
0x2234   :  { %v2563_v57 = vsel %vm394_vm12, %v4952_v25, %v2561_v52 }
0x2235   :  { %3196 = vmatmul.msk.f32.vlgmr.msra.gmra.mxu0 %vm237_vm13, %v2563_v57  ;;  %3197 = vmatmul.msk.f32.vlgmr.msra.gmra.mxu1 %vm237_vm13, %v2563_v57 }
0x22b2   :  { %v2584_v42 = vpop.f32.mrf.mxu0  ;;  %v2604_v43 = vpop.f32.mrf.mxu1 }
0x22b3   :  { %v2609_v54 = vrot.slane %v2584_v42, 6  ;;  %v2610_v8 = vrot.slane %v2604_v43, 6 }
0x22b5   :  { %v2613_v35 = vadd.f32 %v2609_v54, %v4744_v50  ;;  %v2614_v55 = vadd.f32 %v2610_v8, %v2550_v49  ;;  %v2543_v54 = vsel %vm921_vm3, %v4937_v13, %v4927_v17 }
0x22b6   :  { %v2658_v8 = vrot.slane %v2543_v54, 6 }
0x22b7   :  { %v2615_v3 = vadd.f32 %v2613_v35, %v4685_v15  ;;  %v2616_v58 = vadd.f32 %v2614_v55, %v4696_v62 }
0x22b9   :  { %3429 = vtanh.f32 %v2615_v3  ;;  %v3198_v32 = vmul.f32 -1.442695, %v2615_v3  ;;  %v3199_v28 = vmul.f32 -1.442695, %v2616_v58 }
0x22ba   :  { %3431 = vtanh.f32 %v2616_v58 }
0x22bb   :  { %3433 = vpow2.f32 %v3198_v32 }
0x22bc   :  { %3435 = vpow2.f32 %v3199_v28 }
0x22bf   :  { %v3430_v45 = vpop.eup %3429 }
0x22c0   :  { %v3432_v59 = vpop.eup %3431  ;;  %2662 = vrot.lane.b32.xlu1 %v3430_v45, %s3504_s4 }
0x22c1   :  { %2682 = vrot.lane.b32.xlu0 %v3432_v59, %s3504_s4  ;;  %v3434_v19 = vpop.eup %3433 }
0x22c2   :  { %v3436_v20 = vpop.eup %3435  ;;  %v2623_v36 = vadd.f32 1.0, %v3434_v19 }
0x22c3   :  { %v2624_v37 = vadd.f32 1.0, %v3436_v20 }
0x22c4   :  { %3437 = vrcp.f32 %v2623_v36  ;;  %v2636_v10 = vand.u32 2147483648, %v2623_v36  ;;  %vm2630_vm5 = vweird.f32 %v2623_v36  ;;  %v2634_v48 = vand.u32 2147483647, %v2623_v36 }
0x22c5   :  { %3439 = vrcp.f32 %v2624_v37  ;;  %v2651_v12 = vand.u32 2147483648, %v2624_v37  ;;  %vm2645_vm6 = vweird.f32 %v2624_v37  ;;  %v2649_v34 = vand.u32 2147483647, %v2624_v37 }
0x22c6   :  { %v2637_v14 = vor.u32 1.1754944e-38, %v2636_v10  ;;  %vm2635_vm1 = vcmp.eq.f32.partialorder %v2634_v48, 8.507059e+37 }
0x22c7   :  { %v2652_v11 = vor.u32 1.1754944e-38, %v2651_v12  ;;  %vm2650_vm10 = vcmp.eq.f32.partialorder %v2649_v34, 8.507059e+37 }
0x22ca   :  { %v3438_v60 = vpop.eup %3437 }
0x22cb   :  { %v3440_v1 = vpop.eup %3439  ;;  %v2626_v21 = vmul.f32 %v3438_v60, %v2623_v36  ;;  %vm2631_vm11 = vweird.f32 %v3438_v60 }
0x22cc   :  { %v2641_v2 = vmul.f32 %v3440_v1, %v2624_v37  ;;  %vm2646_vm4 = vweird.f32 %v3440_v1  ;;  %vm2632_vm7 = vmor %vm2630_vm5, %vm2631_vm11 }
0x22cd   :  { %v2627_v22 = vsub.f32 1.0, %v2626_v21  ;;  %vm2647_vm0 = vmor %vm2645_vm6, %vm2646_vm4 }
0x22ce   :  { %v2642_v27 = vsub.f32 1.0, %v2641_v2 }
0x22cf   :  { %v2628_v29 = vmul.f32 %v3438_v60, %v2627_v22 }
0x22d0   :  { %v2643_v44 = vmul.f32 %v3440_v1, %v2642_v27 }
0x22d1   :  { %v2629_v6 = vadd.f32 %v3438_v60, %v2628_v29 }
0x22d2   :  { %v2644_v38 = vadd.f32 %v3440_v1, %v2643_v44 }
0x22d3   :  { %v2633_v5 = vsel %vm2632_vm7, %v3438_v60, %v2629_v6 }
0x22d4   :  { %v2648_v16 = vsel %vm2647_vm0, %v3440_v1, %v2644_v38  ;;  %v2638_v56 = vsel %vm2635_vm1, %v2637_v14, %v2633_v5 }
0x22d5   :  { %v2653_v63 = vsel %vm2650_vm10, %v2652_v11, %v2648_v16  ;;  %v2660_v35 = vmul.f32 %v2658_v8, %v2638_v56 }
0x22d6   :  { %v2680_v52 = vmul.f32 %v2678_v4, %v2653_v63 }
0x2332   :  { %v2663_v33 = vpop.permute.xlu1 %2662 }
0x2333   :  { %v2683_v18 = vpop.permute.xlu0 %2682  ;;  %v2665_v26 = vmul.f32 %v2663_v33, %v2638_v56 }
0x2334   :  { %v2685_v41 = vmul.f32 %v2683_v18, %v2653_v63 }
0x2335   :  { %2667 = vrot.lane.b32.xlu0 %v2665_v26, %s3506_s0 }
0x2336   :  { %2687 = vrot.lane.b32.xlu2 %v2685_v41, %s3506_s0 }
0x2390   :  { %v2688_v57 = vpop.permute.xlu2 %2687 }
0x2391   :  { %v2690_v42 = vadd.f32 %v2688_v57, %v2680_v52 }
0x2393   :  { %3441 = vtanh.f32 %v2690_v42  ;;  %v2722_v31 = vrot.slane %v2690_v42, 2 }
0x2399   :  { %v3442_v43 = vpop.eup %3441 }
0x239a   :  { %2693 = vrot.lane.b32.xlu1 %v3442_v43, %s3504_s4 }
0x23a2   :  { %2717 = vrot.lane.b32.xlu1 %v4948_v40, %s3506_s0 }
0x23a7   :  { %v2668_v9 = vpop.permute.xlu0 %2667 }
0x23a8   :  { %v2670_v30 = vadd.f32 %v2668_v9, %v2660_v35 }
0x23aa   :  { %3443 = vtanh.f32 %v2670_v30  ;;  %2723 = vrot.lane.b32.xlu1 %v2722_v31, %s3507_s27  ;;  %v2704_v3 = vrot.slane %v2670_v30, 2 }
0x23b0   :  { %v3444_v55 = vpop.eup %3443 }
0x23b1   :  { %2673 = vrot.lane.b32.xlu2 %v3444_v55, %s3504_s4 }
0x23b2   :  { %2705 = vrot.lane.b32.xlu1 %v2704_v3, %s3507_s27 }
0x240b   :  { %v2674_v58 = vpop.permute.xlu2 %2673 }
0x240c   :  { %v2694_v24 = vpop.permute.xlu1 %2693  ;;  %v2676_v17 = vmul.f32 %v2674_v58, %v2638_v56 }
0x240d   :  { %v2696_v13 = vmul.f32 %v2694_v24, %v2653_v63 }
0x240e   :  { %v2698_v45 = vrot.slane %v2676_v17, 2 }
0x240f   :  { %v2713_v40 = vrot.slane %v2696_v13, 2 }
0x2410   :  { %2699 = vrot.lane.b32.xlu2 %v2698_v45, %s3506_s0 }
0x2411   :  { %2714 = vrot.lane.b32.xlu0 %v2713_v40, %s3506_s0 }
0x2414   :  { %v2718_v59 = vpop.permute.xlu1 %2717 }
0x2418   :  { %2726 = vrot.lane.b32.xlu2 %v2548_v23, %s3507_s27 }
0x241c   :  { %v2724_v28 = vpop.permute.xlu1 %2723 }
0x2420   :  { %2708 = vrot.lane.b32.xlu2 %v2543_v54, %s3507_s27 }
0x2424   :  { %v2706_v34 = vpop.permute.xlu1 %2705 }
0x246a   :  { %v2700_v32 = vpop.permute.xlu2 %2699 }
0x246b   :  { %v5001_v1 = vsel %vm741_vm14, %v2700_v32, %v4952_v25 }
0x2472   :  { %v2727_v19 = vpop.permute.xlu2 %2726 }
0x2473   :  { %v4988_v20 = vsel %vm724_vm15, %v2724_v28, %v2727_v19 }
0x2474   :  { %v2851_v36 = vrot.slane %v4988_v20, 4 }
0x2476   :  { %2852 = vrot.lane.b32.xlu1 %v2851_v36, %s3506_s0 }
0x247a   :  { %v2709_v48 = vpop.permute.xlu2 %2708 }
0x2483   :  { %v2715_v37 = vpop.permute.xlu0 %2714 }
0x2484   :  { %v4994_v60 = vsel %vm724_vm15, %v2715_v37, %v2718_v59 }
0x2485   :  { %2731 = vrot.lane.b32.xlu0 %v4994_v60, %s3506_s0 }
0x24e8   :  { %v2853_v59 = vpop.permute.xlu1 %2852 }
0x24f7   :  { %v2732_v21 = vpop.permute.xlu0 %2731 }
0x24f8   :  { %v2734_v2 = vsel %vm394_vm12, %v5001_v1, %v2732_v21 }
0x24f9   :  { %3200 = vmatmul.msk.f32.vlgmr.msra.gmra.mxu2 %vm237_vm13, %v2734_v2  ;;  %3201 = vmatmul.msk.f32.vlgmr.msra.gmra.mxu3 %vm237_vm13, %v2734_v2 }
0x257c   :  { %v2775_v22 = vpop.f32.mrf.mxu3  ;;  %v2755_v39 = vpop.f32.mrf.mxu2 }
0x257d   :  { %v2781_v27 = vrot.slane %v2775_v22, 4  ;;  %v2780_v44 = vrot.slane %v2755_v39, 4 }
0x257f   :  { %v2785_v29 = vadd.f32 %v2781_v27, %v2399_v51  ;;  %v2784_v25 = vadd.f32 %v2780_v44, %v4744_v50  ;;  %v5016_v51 = vsel %vm741_vm14, %v2706_v34, %v2709_v48 }
0x2580   :  { %v2829_v5 = vrot.slane %v5016_v51, 4 }
0x2581   :  { %v2787_v6 = vadd.f32 %v2785_v29, %v4696_v62  ;;  %v2786_v38 = vadd.f32 %v2784_v25, %v4685_v15 }
0x2583   :  { %3445 = vtanh.f32 %v2787_v6  ;;  %v3203_v16 = vmul.f32 -1.442695, %v2787_v6  ;;  %v3202_v14 = vmul.f32 -1.442695, %v2786_v38 }
0x2584   :  { %3447 = vtanh.f32 %v2786_v38 }
0x2585   :  { %3449 = vpow2.f32 %v3203_v16 }
0x2586   :  { %3451 = vpow2.f32 %v3202_v14 }
0x2589   :  { %v3446_v10 = vpop.eup %3445 }
0x258a   :  { %2857 = vrot.lane.b32.xlu0 %v3446_v10, %s3504_s4  ;;  %v3448_v12 = vpop.eup %3447 }
0x258b   :  { %v3450_v11 = vpop.eup %3449 }
0x258c   :  { %v2795_v33 = vadd.f32 1.0, %v3450_v11  ;;  %v3452_v56 = vpop.eup %3451 }
0x258d   :  { %v2794_v18 = vadd.f32 1.0, %v3452_v56 }
0x258e   :  { %3453 = vrcp.f32 %v2795_v33  ;;  %v2822_v42 = vand.u32 2147483648, %v2795_v33  ;;  %vm2816_vm15 = vweird.f32 %v2795_v33  ;;  %v2820_v43 = vand.u32 2147483647, %v2795_v33 }
0x258f   :  { %3455 = vrcp.f32 %v2794_v18  ;;  %v2807_v3 = vand.u32 2147483648, %v2794_v18  ;;  %vm2801_vm4 = vweird.f32 %v2794_v18  ;;  %v2805_v58 = vand.u32 2147483647, %v2794_v18 }
0x2590   :  { %v2823_v35 = vor.u32 1.1754944e-38, %v2822_v42  ;;  %vm2821_vm3 = vcmp.eq.f32.partialorder %v2820_v43, 8.507059e+37 }
0x2591   :  { %v2808_v17 = vor.u32 1.1754944e-38, %v2807_v3  ;;  %vm2806_vm6 = vcmp.eq.f32.partialorder %v2805_v58, 8.507059e+37 }
0x2592   :  { %2835 = vrot.lane.b32.xlu0 %v3448_v12, %s3504_s4 }
0x2594   :  { %v3454_v63 = vpop.eup %3453 }
0x2595   :  { %v2812_v26 = vmul.f32 %v3454_v63, %v2795_v33  ;;  %v3456_v46 = vpop.eup %3455  ;;  %vm2817_vm14 = vweird.f32 %v3454_v63 }
0x2596   :  { %v2797_v4 = vmul.f32 %v3456_v46, %v2794_v18  ;;  %vm2818_vm2 = vmor %vm2816_vm15, %vm2817_vm14  ;;  %vm2802_vm11 = vweird.f32 %v3456_v46 }
0x2597   :  { %v2813_v41 = vsub.f32 1.0, %v2812_v26  ;;  %vm2803_vm5 = vmor %vm2801_vm4, %vm2802_vm11 }
0x2598   :  { %v2798_v57 = vsub.f32 1.0, %v2797_v4 }
0x2599   :  { %v2814_v23 = vmul.f32 %v3454_v63, %v2813_v41 }
0x259a   :  { %2830 = vrot.lane.b32.xlu0 %v2829_v5, %s3506_s0  ;;  %v2799_v8 = vmul.f32 %v3456_v46, %v2798_v57 }
0x259b   :  { %v2815_v52 = vadd.f32 %v3454_v63, %v2814_v23 }
0x259c   :  { %v2800_v55 = vadd.f32 %v3456_v46, %v2799_v8 }
0x259d   :  { %v2819_v54 = vsel %vm2818_vm2, %v3454_v63, %v2815_v52  ;;  %vm5153_vm2 = vcmp.eq.s32.totalorder %v3985_v47, 1  ;;  %v3097_v47 = vld [vmem:[%s5142_s10 + $0x30] sm:$0xff] }
0x259e   :  { %v2824_v31 = vsel %vm2821_vm3, %v2823_v35, %v2819_v54  ;;  %v2804_v24 = vsel %vm2803_vm5, %v3456_v46, %v2800_v55  ;;  %vm5154_vm3 = vcmp.eq.s32.totalorder %v3991_v53, 1  ;;  %v3091_v53 = vld [vmem:[%s5142_s10] sm:$0xff] }
0x259f   :  { %v2809_v45 = vsel %vm2806_vm6, %v2808_v17, %v2804_v24  ;;  %v2855_v32 = vmul.f32 %v2853_v59, %v2824_v31 }
0x25fc   :  { %v2858_v9 = vpop.permute.xlu0 %2857 }
0x25fd   :  { %v2860_v30 = vmul.f32 %v2858_v9, %v2824_v31 }
0x25ff   :  { %2862 = vrot.lane.b32.xlu2 %v2860_v30, %s3506_s0 }
0x2604   :  { %v2836_v13 = vpop.permute.xlu0 %2835 }
0x2605   :  { %v2838_v40 = vmul.f32 %v2836_v13, %v2809_v45 }
0x2607   :  { %2840 = vrot.lane.b32.xlu1 %v2838_v40, %s3506_s0 }
0x260c   :  { %v2831_v37 = vpop.permute.xlu0 %2830 }
0x260d   :  { %v2833_v21 = vmul.f32 %v2831_v37, %v2809_v45 }
0x2659   :  { %v2863_v28 = vpop.permute.xlu2 %2862 }
0x265a   :  { %v2865_v19 = vadd.f32 %v2863_v28, %v2855_v32 }
0x265c   :  { %3457 = vtanh.f32 %v2865_v19  ;;  %v2891_v6 = vrot.slane %v2865_v19, 4 }
0x2662   :  { %v3458_v36 = vpop.eup %3457 }
0x2663   :  { %2868 = vrot.lane.b32.xlu2 %v3458_v36, %s3504_s4 }
0x2679   :  { %v2841_v2 = vpop.permute.xlu1 %2840 }
0x267a   :  { %v2843_v22 = vadd.f32 %v2841_v2, %v2833_v21 }
0x267c   :  { %3459 = vtanh.f32 %v2843_v22  ;;  %v2879_v34 = vrot.slane %v2843_v22, 4 }
0x2682   :  { %v3460_v39 = vpop.eup %3459 }
0x2683   :  { %2846 = vrot.lane.b32.xlu0 %v3460_v39, %s3504_s4 }
0x26bd   :  { %v2869_v27 = vpop.permute.xlu2 %2868 }
0x26be   :  { %v2871_v29 = vmul.f32 %v2869_v27, %v2824_v31 }
0x26c0   :  { %v2885_v44 = vrot.slane %v2871_v29, 4 }
0x26c2   :  { %2886 = vrot.lane.b32.xlu1 %v2885_v44, %s3506_s0 }
0x26ca   :  { %2892 = vrot.lane.b32.xlu1 %v2891_v6, %s3507_s27 }
0x26f5   :  { %v2847_v25 = vpop.permute.xlu0 %2846 }
0x26f6   :  { %v2849_v38 = vmul.f32 %v2847_v25, %v2809_v45 }
0x26f8   :  { %v2873_v10 = vrot.slane %v2849_v38, 4 }
0x26fa   :  { %2874 = vrot.lane.b32.xlu2 %v2873_v10, %s3506_s0 }
0x2734   :  { %v2887_v12 = vpop.permute.xlu1 %2886 }
0x2735   :  { %v5030_v48 = vsel %vm535_vm9, %v2887_v12, %v4994_v60 }
0x2736   :  { %2897 = vrot.lane.b32.xlu0 %v5030_v48, %s3506_s0 }
0x273c   :  { %v2893_v52 = vpop.permute.xlu1 %2892 }
0x273e   :  { %2880 = vrot.lane.b32.xlu0 %v2879_v34, %s3507_s27 }
0x2754   :  { %v2875_v5 = vpop.permute.xlu2 %2874 }
0x2755   :  { %v5038_v16 = vsel %vm555_vm8, %v2875_v5, %v5001_v1 }
0x27a8   :  { %v2898_v14 = vpop.permute.xlu0 %2897 }
0x27a9   :  { %v2900_v11 = vsel %vm394_vm12, %v5038_v16, %v2898_v14 }
0x27aa   :  { %3204 = vmatmul.msk.f32.vlgmr.msrb.gmra.mxu0 %vm237_vm13, %v2900_v11  ;;  %3205 = vmatmul.msk.f32.vlgmr.msrb.gmra.mxu1 %vm237_vm13, %v2900_v11 }
0x27b0   :  { %v2881_v4 = vpop.permute.xlu0 %2880 }
0x2827   :  { %v2921_v60 = vpop.f32.mrf.mxu0  ;;  %v2941_v33 = vpop.f32.mrf.mxu1 }
0x2828   :  { %v2946_v56 = vrot.slane %v2921_v60, 2  ;;  %v2947_v18 = vrot.slane %v2941_v33, 2 }
0x282a   :  { %v2950_v63 = vadd.f32 %v2946_v56, %v4744_v50  ;;  %v2951_v26 = vadd.f32 %v2947_v18, %v2550_v49  ;;  %v2883_v50 = vsel %vm555_vm8, %v2881_v4, %v5016_v51  ;;  %v3062_v56 = vld [vmem:[%s5140_s8 + $0x38] sm:$0xff]  ;;  %v3061_v18 = vld [vmem:[%s5140_s8 + $0x30] sm:$0xff]  ;;  %v3056_v4 = vld [vmem:[%s5140_s8 + $0x8] sm:$0xff] }
0x282b   :  { %v2995_v7 = vrot.slane %v2883_v50, 2  ;;  %3078 = vmatpush.msrb.mxu2 %v3062_v56  ;;  %v3098_v50 = vld [vmem:[%s5142_s10 + $0x38] sm:$0xff] }
0x282c   :  { %v2952_v1 = vadd.f32 %v2950_v63, %v4685_v15  ;;  %v2953_v41 = vadd.f32 %v2951_v26, %v4696_v62  ;;  %v2895_v15 = vsel %vm535_vm9, %v2893_v52, %v4988_v20  ;;  %v3060_v63 = vld [vmem:[%s5140_s8 + $0x28] sm:$0xff]  ;;  %v3059_v26 = vld [vmem:[%s5140_s8 + $0x20] sm:$0xff]  ;;  %3114 = vmatpush.msrb.mxu3 %v3098_v50 }
0x282d   :  { %v3017_v62 = vrot.slane %v2895_v15, 2  ;;  %3079 = vmatpush.msrb.mxu2 %v3061_v18  ;;  %v3055_v52 = vld [vmem:[%s5140_s8] sm:$0xff] }
0x282e   :  { %3461 = vtanh.f32 %v2952_v1  ;;  %v3207_v49 = vmul.f32 -1.442695, %v2953_v41  ;;  %v3206_v54 = vmul.f32 -1.442695, %v2952_v1  ;;  %v3058_v1 = vld [vmem:[%s5140_s8 + $0x18] sm:$0xff]  ;;  %3115 = vmatpush.msrb.mxu3 %v3097_v47  ;;  %v3095_v15 = vld [vmem:[%s5142_s10 + $0x20] sm:$0xff] }
0x282f   :  { %3463 = vtanh.f32 %v2953_v41  ;;  %3080 = vmatpush.msrb.mxu2 %v3060_v63 }
0x2830   :  { %3465 = vpow2.f32 %v3207_v49 }
0x2831   :  { %3081 = vmatpush.msrb.mxu2 %v3059_v26 }
0x2833   :  { %3082 = vmatpush.msrb.mxu2 %v3058_v1 }
0x2834   :  { %v3462_v46 = vpop.eup %3461 }
0x2835   :  { %v3464_v23 = vpop.eup %3463  ;;  %3001 = vrot.lane.b32.xlu1 %v3462_v46, %s3504_s4  ;;  %v3057_v46 = vld [vmem:[%s5140_s8 + $0x10] sm:$0xff] }
0x2836   :  { %3023 = vrot.lane.b32.xlu2 %v3464_v23, %s3504_s4  ;;  %v3466_v57 = vpop.eup %3465  ;;  %3083 = vmatpush.msrb.mxu2 %v3057_v46 }
0x2837   :  { %v2961_v42 = vadd.f32 1.0, %v3466_v57 }
0x2838   :  { %3084 = vmatpush.msrb.mxu2 %v3056_v4 }
0x2839   :  { %3467 = vrcp.f32 %v2961_v42  ;;  %v2988_v9 = vand.u32 2147483648, %v2961_v42  ;;  %vm2982_vm9 = vweird.f32 %v2961_v42  ;;  %v2986_v31 = vand.u32 2147483647, %v2961_v42 }
0x283a   :  { %3469 = vpow2.f32 %v3206_v54  ;;  %3085 = vmatpush.msrb.mxu2 %v3055_v52  ;;  %v3092_v54 = vld [vmem:[%s5142_s10 + $0x8] sm:$0xff] }
0x283b   :  { %v2989_v55 = vor.u32 1.1754944e-38, %v2988_v9  ;;  %vm2987_vm0 = vcmp.eq.f32.partialorder %v2986_v31, 8.507059e+37 }
0x283d   :  { %2996 = vrot.lane.b32.xlu1 %v2995_v7, %s3506_s0  ;;  %v3094_v7 = vld [vmem:[%s5142_s10 + $0x18] sm:$0xff] }
0x283e   :  { %3018 = vrot.lane.b32.xlu2 %v3017_v62, %s3506_s0 }
0x283f   :  { %v3468_v43 = vpop.eup %3467 }
0x2840   :  { %v2978_v8 = vmul.f32 %v3468_v43, %v2961_v42  ;;  %v3470_v51 = vpop.eup %3469  ;;  %vm2983_vm8 = vweird.f32 %v3468_v43 }
0x2841   :  { %v2960_v0 = vadd.f32 1.0, %v3470_v51  ;;  %vm2984_vm7 = vmor %vm2982_vm9, %vm2983_vm8 }
0x2842   :  { %v2979_v61 = vsub.f32 1.0, %v2978_v8 }
0x2843   :  { %3471 = vrcp.f32 %v2960_v0  ;;  %v2973_v32 = vand.u32 2147483648, %v2960_v0  ;;  %vm2967_vm10 = vweird.f32 %v2960_v0  ;;  %v2971_v28 = vand.u32 2147483647, %v2960_v0 }
0x2844   :  { %v2980_v35 = vmul.f32 %v3468_v43, %v2979_v61 }
0x2845   :  { %v2974_v36 = vor.u32 1.1754944e-38, %v2973_v32  ;;  %vm2972_vm15 = vcmp.eq.f32.partialorder %v2971_v28, 8.507059e+37 }
0x2846   :  { %v2981_v20 = vadd.f32 %v3468_v43, %v2980_v35  ;;  %v3220_v35 = vld [vmem:[%s5143_s11] ss:$0 sm:$0xff] }
0x2848   :  { %v2985_v30 = vsel %vm2984_vm7, %v3468_v43, %v2981_v20  ;;  %v3093_v43 = vld [vmem:[%s5142_s10 + $0x10] sm:$0xff] }
0x2849   :  { %v2990_v58 = vsel %vm2987_vm0, %v2989_v55, %v2985_v30  ;;  %v3472_v24 = vpop.eup %3471 }
0x284a   :  { %v2963_v13 = vmul.f32 %v3472_v24, %v2960_v0  ;;  %vm2968_vm1 = vweird.f32 %v3472_v24 }
0x284b   :  { %vm2969_vm14 = vmor %vm2967_vm10, %vm2968_vm1 }
0x284c   :  { %v2964_v45 = vsub.f32 1.0, %v2963_v13 }
0x284e   :  { %v2965_v40 = vmul.f32 %v3472_v24, %v2964_v45 }
0x2850   :  { %v2966_v59 = vadd.f32 %v3472_v24, %v2965_v40 }
0x2852   :  { %v2970_v19 = vsel %vm2969_vm14, %v3472_v24, %v2966_v59 }
0x2853   :  { %v2975_v21 = vsel %vm2972_vm15, %v2974_v36, %v2970_v19 }
0x2890   :  { %v3024_v3 = vpop.permute.xlu2 %3023 }
0x2891   :  { %v3026_v17 = vmul.f32 %v3024_v3, %v2990_v58 }
0x2893   :  { %3028 = vrot.lane.b32.xlu0 %v3026_v17, %s3506_s0 }
0x2898   :  { %v3019_v22 = vpop.permute.xlu2 %3018 }
0x2899   :  { %v3021_v29 = vmul.f32 %v3019_v22, %v2990_v58 }
0x28a7   :  { %v3002_v37 = vpop.permute.xlu1 %3001 }
0x28a8   :  { %v3004_v2 = vmul.f32 %v3002_v37, %v2975_v21 }
0x28aa   :  { %3006 = vrot.lane.b32.xlu2 %v3004_v2, %s3506_s0 }
0x28af   :  { %v2997_v39 = vpop.permute.xlu1 %2996 }
0x28b0   :  { %v2999_v27 = vmul.f32 %v2997_v39, %v2975_v21 }
0x2904   :  { %v3007_v44 = vpop.permute.xlu2 %3006 }
0x2905   :  { %v3029_v6 = vpop.permute.xlu0 %3028  ;;  %v3009_v25 = vadd.f32 %v3007_v44, %v2999_v27 }
0x2906   :  { %v3031_v38 = vadd.f32 %v3029_v6, %v3021_v29 }
0x2907   :  { %3473 = vtanh.f32 %v3009_v25 }
0x2908   :  { %3475 = vtanh.f32 %v3031_v38 }
0x290d   :  { %v3474_v10 = vpop.eup %3473 }
0x290e   :  { %v3476_v12 = vpop.eup %3475  ;;  %3012 = vrot.lane.b32.xlu1 %v3474_v10, %s3504_s4 }
0x290f   :  { %3034 = vrot.lane.b32.xlu0 %v3476_v12, %s3504_s4 }
0x2980   :  { %v3013_v34 = vpop.permute.xlu1 %3012 }
0x2981   :  { %v3035_v5 = vpop.permute.xlu0 %3034  ;;  %v3015_v14 = vmul.f32 %v3013_v34, %v2975_v21 }
0x2982   :  { %v3037_v11 = vmul.f32 %v3035_v5, %v2990_v58 }
0x2983   :  { %v3039_v60 = vrot.slane %v3015_v14, 6 }
0x2984   :  { %v3045_v33 = vrot.slane %v3037_v11, 6 }
0x2985   :  { %3040 = vrot.lane.b32.xlu0 %v3039_v60, %s3506_s0 }
0x2986   :  { %3046 = vrot.lane.b32.xlu2 %v3045_v33, %s3506_s0 }
0x29e0   :  { %v3047_v41 = vpop.permute.xlu2 %3046 }
0x29e1   :  { %v3049_v23 = vsel %vm5153_vm2, %v3047_v41, %v5030_v48  ;;  %v3096_v48 = vld [vmem:[%s5142_s10 + $0x28] sm:$0xff]  ;;  %s3135_s10 = sshll.u32 %s5144_s12, 4  ;;  %s3136_s10 = int_to_ptr.hbm [resolvable:$true] %s3135_s10 }
0x29e2   :  { %3051 = vrot.lane.b32.xlu1 %v3049_v23, %s3506_s0  ;;  %3116 = vmatpush.msrb.mxu3 %v3096_v48 }
0x29e4   :  { %3117 = vmatpush.msrb.mxu3 %v3095_v15 }
0x29e6   :  { %3118 = vmatpush.msrb.mxu3 %v3094_v7 }
0x29e8   :  { %3119 = vmatpush.msrb.mxu3 %v3093_v43 }
0x29ea   :  { %3120 = vmatpush.msrb.mxu3 %v3092_v54 }
0x29ec   :  { %3121 = vmatpush.msrb.mxu3 %v3091_v53 }
0x29f7   :  { %v3041_v62 = vpop.permute.xlu0 %3040 }
0x29f8   :  { %v3043_v49 = vsel %vm5154_vm3, %v3041_v62, %v5038_v16  ;;  %v3219_v16 = vld [vmem:[%s5141_s9] ss:$0 sm:$0xff] }
0x2a54   :  { %v3052_v57 = vpop.permute.xlu1 %3051 }
0x2a55   :  { %v3054_v42 = vsel %vm394_vm12, %v3043_v49, %v3052_v57  ;;  %vm3126_vm12 = vcmask 74752  }
0x2a56   :  { %3208 = vmatmul.msk.f32.vlgmr.msrb.gmra.mxu2 %vm237_vm13, %v3054_v42 }
0x2ad9   :  { %v3087_v8 = vpop.f32.mrf.mxu2 }
0x2ada   :  { %v3088_v61 = vadd.f32 %v3219_v16, %v3087_v8 }
0x2adc   :  { %v3090_v51 = vmax.f32 %v3088_v61, 0.0 }
0x2ade   :  { %3209 = vmatmul.msk.f32.vlgmr.msrb.gmra.mxu3 %vm237_vm13, %v3090_v51 }
0x2b61   :  { %v3123_v0 = vpop.f32.mrf.mxu3 }
0x2b62   :  { %v3124_v20 = vadd.f32 %v3220_v35, %v3123_v0 }
0x2b64   :  { %3127 = vst.msk [vmem:[#allocation2] sm:$0x3] %vm3126_vm12, %v3124_v20 }
0x2b65   :  { %3138 = dma.vmem_to_hbm [thread:$0]  %s3134_s19, 32, %s3136_s10, [#allocation3]  }
0x2b66   :  { %3501 = dma.done.wait [#allocation3], 32  }
0x2b67   :  { %3502 = vsyncadd [#allocation3], 4294967264 }
0x2b68   :  { %3143 = vsyncpa [#allocation3], 1 }

</bundles_post_ra>
